<compile_context>
chip_gen: v6e
topology: v6e:2x2x1
jax: 0.10.0
libtpu: 0.0.40
codegen_flags: <defaults>
</compile_context>

<pallas_src>
import jax
import jax.numpy as jnp
from jax.experimental import pallas as pl
from jax.experimental.pallas import tpu as pltpu

MXU_DTYPE = jnp.bfloat16
VMEM_LIMIT = 32 * 1024 * 1024


# ----------------------------- fused forward kernel -------------------------

def _lenet_kernel(x_ref, w1_ref, b1_ref, w2_ref, b2_ref,
                  f1w_ref, f1b_ref, f2w_ref, f2b_ref, f3w_ref, f3b_ref,
                  o_ref):
    """Whole playground_net forward for one batch tile, entirely in VMEM.

    x_ref  : (tb, 28, 28) f32   input images, W on lanes
    w1_ref : (5, 28, 256) bf16  conv1 band; out lane = dx*128 + x2*6 + oc
    b1_ref : (1, 256) f32
    w2_ref : (5, 128, 256) bf16 conv2 band; in lane = x2*6+ic, out lane = dx*128 + x4*16 + oc
    b2_ref : (1, 256) f32
    f1w_ref: (512, 128) bf16    fc1, rows pre-permuted to the kernel's flatten order
    f2w_ref, f3w_ref: (128, 128) bf16;  f*b_ref: (1, 128) f32
    o_ref  : (tb, 128) f32      logits in lanes 0..9
    """
    tb = x_ref.shape[0]
    x = x_ref[...]                                               # (tb, 28, 28) f32

    # ---- conv1 (5x5, 1->6): one banded MXU matmul per kernel row ----
    # acc1 rows = (b, y1), lanes = dx*128 + x2*6 + oc   (output x1 = 2*x2 + dx)
    acc1 = None
    for i in range(5):
        lhs = x[:, i:i + 24, :].reshape(tb * 24, 28).astype(MXU_DTYPE)
        part = jnp.dot(lhs, w1_ref[i], preferred_element_type=jnp.float32)
        acc1 = part if acc1 is None else acc1 + part
    acc1 = jnp.maximum(acc1 + b1_ref[...], 0.0)                  # bias + ReLU (f32)

    # 2x2/2 max pool: x-pairs are the two aligned lane halves, y-pairs are
    # adjacent rows (row-pair-merge reshape keeps everything 128-lane dense).
    xp1 = jnp.maximum(acc1[:, :128], acc1[:, 128:])              # (tb*24, 128)
    yp1 = xp1.reshape(tb * 12, 256)
    h1 = jnp.maximum(yp1[:, :128], yp1[:, 128:])                 # (tb*12, 128) lanes = x2*6+ic

    # ---- conv2 (5x5, 6->16): same banded-matmul trick on pooled activations ----
    h1_3 = h1.reshape(tb, 12, 128)
    acc2 = None
    for i in range(5):
        lhs = h1_3[:, i:i + 8, :].reshape(tb * 8, 128).astype(MXU_DTYPE)
        part = jnp.dot(lhs, w2_ref[i], preferred_element_type=jnp.float32)
        acc2 = part if acc2 is None else acc2 + part
    acc2 = jnp.maximum(acc2 + b2_ref[...], 0.0)

    xp2 = jnp.maximum(acc2[:, :128], acc2[:, 128:])              # (tb*8, 128)
    yp2 = xp2.reshape(tb * 4, 256)
    h2 = jnp.maximum(yp2[:, :128], yp2[:, 128:])                 # (tb*4, 128) lanes = x4*16+oc

    # ---- flatten (fused): merge the 4 pooled rows into lanes -> (tb, 512). ----
    # PyTorch's channel-major view(-1,256) ordering is absorbed into f1w's rows;
    # the 64 zero pad lanes per row hit all-zero fc1 rows.
    flat = h2.reshape(tb, 512).astype(MXU_DTYPE)

    # ---- fc1 -> fc2 -> fc3 (f32 accumulation, bf16 MXU operands) ----
    h = jnp.dot(flat, f1w_ref[...], preferred_element_type=jnp.float32)
    h = jnp.maximum(h + f1b_ref[...], 0.0)
    h = jnp.dot(h.astype(MXU_DTYPE), f2w_ref[...], preferred_element_type=jnp.float32)
    h = jnp.maximum(h + f2b_ref[...], 0.0)
    out = jnp.dot(h.astype(MXU_DTYPE), f3w_ref[...],
                  preferred_element_type=jnp.float32) + f3b_ref[...]
    o_ref[...] = out.astype(o_ref.dtype)


# ------------------------------ wrapper / glue -------------------------------

def _pick_batch_tile(B):
    if B <= 16:
        tb = 8
    elif B <= 64:
        tb = 16
    else:
        tb = 32
    nb = max(2, pl.cdiv(B, tb))          # >= 2 grid steps: both v7x TensorCores busy
    return tb, nb


def forward(x_nchw, params):
    """Exact playground_net.forward semantics; input NCHW (B, 1, 28, 28)."""
    B = x_nchw.shape[0]
    assert x_nchw.shape[1:] == (1, 28, 28), "playground_net expects 1x28x28 input"
    x = x_nchw[:, 0, :, :].astype(jnp.float32)                   # (B, 28, 28)
    tb, nb = _pick_batch_tile(B)
    BP = tb * nb
    if BP != B:
        x = jnp.pad(x, ((0, BP - B), (0, 0), (0, 0)))            # padded rows sliced off at end

    flops = 2 * BP * (24 * 140 * 256 + 8 * 640 * 256 + 512 * 128 + 2 * 128 * 128)
    bytes_accessed = (BP * (28 * 28 + 128) * 4
                      + sum(int(params[k].size) * params[k].dtype.itemsize for k in params))

    out = pl.pallas_call(
        _lenet_kernel,
        out_shape=jax.ShapeDtypeStruct((BP, 128), jnp.float32),
        grid=(nb,),
        in_specs=[
            pl.BlockSpec((tb, 28, 28), lambda i: (i, 0, 0)),      # batch tile
            pl.BlockSpec((5, 28, 256), lambda i: (0, 0, 0)),      # resident conv1 band
            pl.BlockSpec((1, 256), lambda i: (0, 0)),
            pl.BlockSpec((5, 128, 256), lambda i: (0, 0, 0)),     # resident conv2 band
            pl.BlockSpec((1, 256), lambda i: (0, 0)),
            pl.BlockSpec((512, 128), lambda i: (0, 0)),           # resident fc weights
            pl.BlockSpec((1, 128), lambda i: (0, 0)),
            pl.BlockSpec((128, 128), lambda i: (0, 0)),
            pl.BlockSpec((1, 128), lambda i: (0, 0)),
            pl.BlockSpec((128, 128), lambda i: (0, 0)),
            pl.BlockSpec((1, 128), lambda i: (0, 0)),
        ],
        out_specs=pl.BlockSpec((tb, 128), lambda i: (i, 0)),
        compiler_params=pltpu.CompilerParams(
            dimension_semantics=("parallel",),
            vmem_limit_bytes=VMEM_LIMIT,
        ),
        cost_estimate=pl.CostEstimate(flops=int(flops), transcendentals=0,
                                      bytes_accessed=int(bytes_accessed)),
    )(x, params["w1"], params["b1"], params["w2"], params["b2"],
      params["fc1_w"], params["fc1_b"], params["fc2_w"], params["fc2_b"],
      params["fc3_w"], params["fc3_b"])
    return out[:B, :10]


# ------------------------------ parameters -----------------------------------

def init_params():
    """Deterministic synthetic parameters matching playground_net shapes."""
    keys = jax.random.split(jax.random.PRNGKey(42), 10)
    s = 0.05
    return {
        "conv1_w": s * jax.random.normal(keys[0], (6, 1, 5, 5), jnp.float32),   # OIHW
        "conv1_b": s * jax.random.normal(keys[1], (6,), jnp.float32),
        "conv2_w": s * jax.random.normal(keys[2], (16, 6, 5, 5), jnp.float32),
        "conv2_b": s * jax.random.normal(keys[3], (16,), jnp.float32),
        "fc1_w": s * jax.random.normal(keys[4], (120, 256), jnp.float32),       # [out, in]
        "fc1_b": s * jax.random.normal(keys[5], (120,), jnp.float32),
        "fc2_w": s * jax.random.normal(keys[6], (84, 120), jnp.float32),
        "fc2_b": s * jax.random.normal(keys[7], (84,), jnp.float32),
        "fc3_w": s * jax.random.normal(keys[8], (10, 84), jnp.float32),
        "fc3_b": s * jax.random.normal(keys[9], (10,), jnp.float32),
    }


def prepare_params(raw):
    """Precompute banded conv weights and permuted/padded fc weights (bf16)."""
    f32 = jnp.float32

    # conv1 (6,1,5,5) OIHW -> band (5, 28, 256); column = dx*128 + x2*6 + oc.
    w1_hwo = jnp.transpose(raw["conv1_w"][:, 0], (1, 2, 0))            # (5,5,6) [ki,kj,oc]
    xin = jnp.arange(28).reshape(28, 1, 1)
    dx = jnp.arange(2).reshape(1, 2, 1)
    x2 = jnp.arange(12).reshape(1, 1, 12)
    d = xin - (2 * x2 + dx)                                            # (28,2,12)
    valid = (d >= 0) & (d < 5)
    tap = w1_hwo[:, jnp.clip(d, 0, 4), :]                              # (5,28,2,12,6)
    tap = jnp.where(valid[None, :, :, :, None], tap, 0.0)
    tap = tap.reshape(5, 28, 2, 72)
    tap = jnp.pad(tap, ((0, 0), (0, 0), (0, 0), (0, 56)))              # (5,28,2,128)
    w1 = tap.reshape(5, 28, 256).astype(MXU_DTYPE)

    b1 = jnp.pad(jnp.tile(raw["conv1_b"], 12), (0, 56))                # (128,) idx x2*6+oc
    b1 = jnp.tile(b1, 2).reshape(1, 256).astype(f32)

    # conv2 (16,6,5,5) OIHW -> band (5, 128, 256); row = x2*6+ic, col = dx*128 + x4*16 + oc.
    w2_p = jnp.transpose(raw["conv2_w"], (2, 3, 1, 0))                 # (5,5,6,16) [ki,kj,ic,oc]
    x2i = jnp.arange(12).reshape(12, 1, 1)
    dx2 = jnp.arange(2).reshape(1, 2, 1)
    x4 = jnp.arange(4).reshape(1, 1, 4)
    d2 = x2i - (2 * x4 + dx2)                                          # (12,2,4)
    valid2 = (d2 >= 0) & (d2 < 5)
    tap2 = w2_p[:, jnp.clip(d2, 0, 4), :, :]                           # (5,12,2,4,6,16)
    tap2 = jnp.where(valid2[None, :, :, :, None, None], tap2, 0.0)
    tap2 = jnp.transpose(tap2, (0, 1, 4, 2, 3, 5))                     # [ki,x2,ic,dx,x4,oc]
    tap2 = tap2.reshape(5, 72, 2, 64)
    tap2 = jnp.pad(tap2, ((0, 0), (0, 56), (0, 0), (0, 64)))           # (5,128,2,128)
    w2 = tap2.reshape(5, 128, 256).astype(MXU_DTYPE)

    b2 = jnp.pad(jnp.tile(raw["conv2_b"], 4), (0, 64))                 # (128,) idx x4*16+oc
    b2 = jnp.tile(b2, 2).reshape(1, 256).astype(f32)

    # fc1: reorder rows from PyTorch flatten order (oc,y4,x4) to the kernel's
    # lane order (y4*128 + x4*16 + oc), with zero rows on the pad lanes.
    wt = raw["fc1_w"].T                                                # (256,120) rows = oc*16 + y4*4 + x4
    wt = wt.reshape(16, 4, 4, 120)                                     # [oc,y4,x4,n]
    wt = jnp.transpose(wt, (1, 2, 0, 3)).reshape(4, 64, 120)           # [y4, x4*16+oc, n]
    wt = jnp.pad(wt, ((0, 0), (0, 64), (0, 0))).reshape(512, 120)
    fc1_w = jnp.pad(wt, ((0, 0), (0, 8))).astype(MXU_DTYPE)            # (512,128)

    def pad_mat(w, rows=128, cols=128):
        return jnp.zeros((rows, cols), f32).at[:w.shape[0], :w.shape[1]].set(w).astype(MXU_DTYPE)

    def pad_vec(v, n=128):
        return jnp.zeros((1, n), f32).at[0, :v.shape[0]].set(v)

    return {
        "w1": w1, "b1": b1, "w2": w2, "b2": b2,
        "fc1_w": fc1_w, "fc1_b": pad_vec(raw["fc1_b"]),
        "fc2_w": pad_mat(raw["fc2_w"].T), "fc2_b": pad_vec(raw["fc2_b"]),
        "fc3_w": pad_mat(raw["fc3_w"].T), "fc3_b": pad_vec(raw["fc3_b"]),
    }


# ------------------------------ pure-JAX reference ---------------------------

def reference_forward(x_nchw, raw):
    """f32 XLA reference with exact playground_net semantics."""
    def conv(x, w, b):
        y = jax.lax.conv_general_dilated(x, w, window_strides=(1, 1), padding="VALID",
                                         dimension_numbers=("NCHW", "OIHW", "NCHW"))
        return y + b[None, :, None, None]

    def pool(x):
        return jax.lax.reduce_window(x, -jnp.inf, jax.lax.max,
                                     (1, 1, 2, 2), (1, 1, 2, 2), "VALID")

    x = x_nchw.astype(jnp.float32)
    y = pool(jax.nn.relu(conv(x, raw["conv1_w"], raw["conv1_b"])))
    y = pool(jax.nn.relu(conv(y, raw["conv2_w"], raw["conv2_b"])))
    y = y.reshape(y.shape[0], -1)                                  # == x.view(-1, 256)
    y = jax.nn.relu(y @ raw["fc1_w"].T + raw["fc1_b"])
    y = jax.nn.relu(y @ raw["fc2_w"].T + raw["fc2_b"])
    return y @ raw["fc3_w"].T + raw["fc3_b"]


if __name__ == "__main__":
    raw = init_params()
    params = prepare_params(raw)
    # playground_net's flatten (view(-1, 256)) implies 1x28x28 inputs.
    x = jax.random.normal(jax.random.PRNGKey(0), (2, 1, 28, 28), jnp.float32)

    out = jax.block_until_ready(jax.jit(forward)(x, params))
    ref = jax.block_until_ready(reference_forward(x, raw))

    assert out.shape == (2, 10) and out.dtype == jnp.float32
    assert bool(jnp.all(jnp.isfinite(out)))
    max_err = float(jnp.max(jnp.abs(out - ref)))
    assert max_err < 2e-2, f"Pallas vs reference mismatch: max abs err {max_err}"
    print("KERNEL_OK")
</pallas_src>

<mosaic_0001>
module attributes {stable_mosaic.version = 11 : i64} {
  func.func @_lenet_kernel(%arg0: i32, %arg1: memref<8x28x28xf32, #tpu.memory_space<vmem>>, %arg2: memref<5x28x256xbf16, #tpu.memory_space<vmem>>, %arg3: memref<1x256xf32, #tpu.memory_space<vmem>>, %arg4: memref<5x128x256xbf16, #tpu.memory_space<vmem>>, %arg5: memref<1x256xf32, #tpu.memory_space<vmem>>, %arg6: memref<512x128xbf16, #tpu.memory_space<vmem>>, %arg7: memref<1x128xf32, #tpu.memory_space<vmem>>, %arg8: memref<128x128xbf16, #tpu.memory_space<vmem>>, %arg9: memref<1x128xf32, #tpu.memory_space<vmem>>, %arg10: memref<128x128xbf16, #tpu.memory_space<vmem>>, %arg11: memref<1x128xf32, #tpu.memory_space<vmem>>, %arg12: memref<8x128xf32, #tpu.memory_space<vmem>>) attributes {dimension_semantics = [#tpu.dimension_semantics<parallel>], iteration_bounds = array<i64: 2>, scalar_prefetch = 0 : i64, scratch_operands = 0 : i64, tpu.core_type = #tpu.core_type<tc>, window_params = [{transform_indices = @transform_0, window_bounds = array<i64: 8, 28, 28>}, {pipeline_mode = #tpu.pipeline_mode<synchronous>, transform_indices = @transform_1, window_bounds = array<i64: 5, 28, 256>}, {pipeline_mode = #tpu.pipeline_mode<synchronous>, transform_indices = @transform_2, window_bounds = array<i64: 1, 256>}, {pipeline_mode = #tpu.pipeline_mode<synchronous>, transform_indices = @transform_3, window_bounds = array<i64: 5, 128, 256>}, {pipeline_mode = #tpu.pipeline_mode<synchronous>, transform_indices = @transform_4, window_bounds = array<i64: 1, 256>}, {pipeline_mode = #tpu.pipeline_mode<synchronous>, transform_indices = @transform_5, window_bounds = array<i64: 512, 128>}, {pipeline_mode = #tpu.pipeline_mode<synchronous>, transform_indices = @transform_6, window_bounds = array<i64: 1, 128>}, {pipeline_mode = #tpu.pipeline_mode<synchronous>, transform_indices = @transform_7, window_bounds = array<i64: 128, 128>}, {pipeline_mode = #tpu.pipeline_mode<synchronous>, transform_indices = @transform_8, window_bounds = array<i64: 1, 128>}, {pipeline_mode = #tpu.pipeline_mode<synchronous>, transform_indices = @transform_9, window_bounds = array<i64: 128, 128>}, {pipeline_mode = #tpu.pipeline_mode<synchronous>, transform_indices = @transform_10, window_bounds = array<i64: 1, 128>}, {transform_indices = @transform_11, window_bounds = array<i64: 8, 128>}]} {
    %c0 = arith.constant 0 : index
    %c0_0 = arith.constant 0 : index
    %c0_1 = arith.constant 0 : index
    %0 = vector.load %arg1[%c0, %c0_0, %c0_1] : memref<8x28x28xf32, #tpu.memory_space<vmem>>, vector<8x28x28xf32>
    %1 = vector.extract_strided_slice %0 {offsets = [0, 0, 0], sizes = [8, 24, 28], strides = [1, 1, 1]} : vector<8x28x28xf32> to vector<8x24x28xf32>
    %2 = vector.shape_cast %1 : vector<8x24x28xf32> to vector<192x28xf32>
    %3 = arith.truncf %2 : vector<192x28xf32> to vector<192x28xbf16>
    %c0_2 = arith.constant 0 : index
    %c0_3 = arith.constant 0 : index
    %c0_4 = arith.constant 0 : index
    %4 = vector.load %arg2[%c0_2, %c0_3, %c0_4] : memref<5x28x256xbf16, #tpu.memory_space<vmem>>, vector<1x28x256xbf16>
    %5 = vector.shape_cast %4 : vector<1x28x256xbf16> to vector<28x256xbf16>
    %cst = arith.constant dense<0.000000e+00> : vector<192x256xf32>
    %6 = tpu.matmul %3, %5, %cst {dimension_numbers = #tpu.dot_dimension_numbers<[1], [0], [0], [1], [0, 0, 1, 1], [], []>} : vector<192x28xbf16>, vector<28x256xbf16>, vector<192x256xf32> -> vector<192x256xf32>
    %7 = vector.extract_strided_slice %0 {offsets = [0, 1, 0], sizes = [8, 24, 28], strides = [1, 1, 1]} : vector<8x28x28xf32> to vector<8x24x28xf32>
    %8 = vector.shape_cast %7 : vector<8x24x28xf32> to vector<192x28xf32>
    %9 = arith.truncf %8 : vector<192x28xf32> to vector<192x28xbf16>
    %c1 = arith.constant 1 : index
    %c0_5 = arith.constant 0 : index
    %c0_6 = arith.constant 0 : index
    %10 = vector.load %arg2[%c1, %c0_5, %c0_6] : memref<5x28x256xbf16, #tpu.memory_space<vmem>>, vector<1x28x256xbf16>
    %11 = vector.shape_cast %10 : vector<1x28x256xbf16> to vector<28x256xbf16>
    %cst_7 = arith.constant dense<0.000000e+00> : vector<192x256xf32>
    %12 = tpu.matmul %9, %11, %cst_7 {dimension_numbers = #tpu.dot_dimension_numbers<[1], [0], [0], [1], [0, 0, 1, 1], [], []>} : vector<192x28xbf16>, vector<28x256xbf16>, vector<192x256xf32> -> vector<192x256xf32>
    %13 = arith.addf %6, %12 : vector<192x256xf32>
    %14 = vector.extract_strided_slice %0 {offsets = [0, 2, 0], sizes = [8, 24, 28], strides = [1, 1, 1]} : vector<8x28x28xf32> to vector<8x24x28xf32>
    %15 = vector.shape_cast %14 : vector<8x24x28xf32> to vector<192x28xf32>
    %16 = arith.truncf %15 : vector<192x28xf32> to vector<192x28xbf16>
    %c2 = arith.constant 2 : index
    %c0_8 = arith.constant 0 : index
    %c0_9 = arith.constant 0 : index
    %17 = vector.load %arg2[%c2, %c0_8, %c0_9] : memref<5x28x256xbf16, #tpu.memory_space<vmem>>, vector<1x28x256xbf16>
    %18 = vector.shape_cast %17 : vector<1x28x256xbf16> to vector<28x256xbf16>
    %cst_10 = arith.constant dense<0.000000e+00> : vector<192x256xf32>
    %19 = tpu.matmul %16, %18, %cst_10 {dimension_numbers = #tpu.dot_dimension_numbers<[1], [0], [0], [1], [0, 0, 1, 1], [], []>} : vector<192x28xbf16>, vector<28x256xbf16>, vector<192x256xf32> -> vector<192x256xf32>
    %20 = arith.addf %13, %19 : vector<192x256xf32>
    %21 = vector.extract_strided_slice %0 {offsets = [0, 3, 0], sizes = [8, 24, 28], strides = [1, 1, 1]} : vector<8x28x28xf32> to vector<8x24x28xf32>
    %22 = vector.shape_cast %21 : vector<8x24x28xf32> to vector<192x28xf32>
    %23 = arith.truncf %22 : vector<192x28xf32> to vector<192x28xbf16>
    %c3 = arith.constant 3 : index
    %c0_11 = arith.constant 0 : index
    %c0_12 = arith.constant 0 : index
    %24 = vector.load %arg2[%c3, %c0_11, %c0_12] : memref<5x28x256xbf16, #tpu.memory_space<vmem>>, vector<1x28x256xbf16>
    %25 = vector.shape_cast %24 : vector<1x28x256xbf16> to vector<28x256xbf16>
    %cst_13 = arith.constant dense<0.000000e+00> : vector<192x256xf32>
    %26 = tpu.matmul %23, %25, %cst_13 {dimension_numbers = #tpu.dot_dimension_numbers<[1], [0], [0], [1], [0, 0, 1, 1], [], []>} : vector<192x28xbf16>, vector<28x256xbf16>, vector<192x256xf32> -> vector<192x256xf32>
    %27 = arith.addf %20, %26 : vector<192x256xf32>
    %28 = vector.extract_strided_slice %0 {offsets = [0, 4, 0], sizes = [8, 24, 28], strides = [1, 1, 1]} : vector<8x28x28xf32> to vector<8x24x28xf32>
    %29 = vector.shape_cast %28 : vector<8x24x28xf32> to vector<192x28xf32>
    %30 = arith.truncf %29 : vector<192x28xf32> to vector<192x28xbf16>
    %c4 = arith.constant 4 : index
    %c0_14 = arith.constant 0 : index
    %c0_15 = arith.constant 0 : index
    %31 = vector.load %arg2[%c4, %c0_14, %c0_15] : memref<5x28x256xbf16, #tpu.memory_space<vmem>>, vector<1x28x256xbf16>
    %32 = vector.shape_cast %31 : vector<1x28x256xbf16> to vector<28x256xbf16>
    %cst_16 = arith.constant dense<0.000000e+00> : vector<192x256xf32>
    %33 = tpu.matmul %30, %32, %cst_16 {dimension_numbers = #tpu.dot_dimension_numbers<[1], [0], [0], [1], [0, 0, 1, 1], [], []>} : vector<192x28xbf16>, vector<28x256xbf16>, vector<192x256xf32> -> vector<192x256xf32>
    %34 = arith.addf %27, %33 : vector<192x256xf32>
    %c0_17 = arith.constant 0 : index
    %c0_18 = arith.constant 0 : index
    %35 = vector.load %arg3[%c0_17, %c0_18] : memref<1x256xf32, #tpu.memory_space<vmem>>, vector<1x256xf32>
    %36 = vector.broadcast %35 : vector<1x256xf32> to vector<192x256xf32>
    %37 = arith.addf %34, %36 : vector<192x256xf32>
    %cst_19 = arith.constant 0.000000e+00 : f32
    %38 = vector.broadcast %cst_19 : f32 to vector<192x256xf32>
    %39 = arith.maximumf %37, %38 : vector<192x256xf32>
    %40 = vector.extract_strided_slice %39 {offsets = [0, 0], sizes = [192, 128], strides = [1, 1]} : vector<192x256xf32> to vector<192x128xf32>
    %41 = vector.extract_strided_slice %39 {offsets = [0, 128], sizes = [192, 128], strides = [1, 1]} : vector<192x256xf32> to vector<192x128xf32>
    %42 = arith.maximumf %40, %41 : vector<192x128xf32>
    %43 = vector.shape_cast %42 : vector<192x128xf32> to vector<96x256xf32>
    %44 = vector.extract_strided_slice %43 {offsets = [0, 0], sizes = [96, 128], strides = [1, 1]} : vector<96x256xf32> to vector<96x128xf32>
    %45 = vector.extract_strided_slice %43 {offsets = [0, 128], sizes = [96, 128], strides = [1, 1]} : vector<96x256xf32> to vector<96x128xf32>
    %46 = arith.maximumf %44, %45 : vector<96x128xf32>
    %47 = vector.shape_cast %46 : vector<96x128xf32> to vector<8x12x128xf32>
    %48 = vector.extract_strided_slice %47 {offsets = [0, 0, 0], sizes = [8, 8, 128], strides = [1, 1, 1]} : vector<8x12x128xf32> to vector<8x8x128xf32>
    %49 = vector.shape_cast %48 : vector<8x8x128xf32> to vector<64x128xf32>
    %50 = arith.truncf %49 : vector<64x128xf32> to vector<64x128xbf16>
    %c0_20 = arith.constant 0 : index
    %c0_21 = arith.constant 0 : index
    %c0_22 = arith.constant 0 : index
    %51 = vector.load %arg4[%c0_20, %c0_21, %c0_22] : memref<5x128x256xbf16, #tpu.memory_space<vmem>>, vector<1x128x256xbf16>
    %52 = vector.shape_cast %51 : vector<1x128x256xbf16> to vector<128x256xbf16>
    %cst_23 = arith.constant dense<0.000000e+00> : vector<64x256xf32>
    %53 = tpu.matmul %50, %52, %cst_23 {dimension_numbers = #tpu.dot_dimension_numbers<[1], [0], [0], [1], [0, 0, 1, 1], [], []>} : vector<64x128xbf16>, vector<128x256xbf16>, vector<64x256xf32> -> vector<64x256xf32>
    %54 = vector.extract_strided_slice %47 {offsets = [0, 1, 0], sizes = [8, 8, 128], strides = [1, 1, 1]} : vector<8x12x128xf32> to vector<8x8x128xf32>
    %55 = vector.shape_cast %54 : vector<8x8x128xf32> to vector<64x128xf32>
    %56 = arith.truncf %55 : vector<64x128xf32> to vector<64x128xbf16>
    %c1_24 = arith.constant 1 : index
    %c0_25 = arith.constant 0 : index
    %c0_26 = arith.constant 0 : index
    %57 = vector.load %arg4[%c1_24, %c0_25, %c0_26] : memref<5x128x256xbf16, #tpu.memory_space<vmem>>, vector<1x128x256xbf16>
    %58 = vector.shape_cast %57 : vector<1x128x256xbf16> to vector<128x256xbf16>
    %cst_27 = arith.constant dense<0.000000e+00> : vector<64x256xf32>
    %59 = tpu.matmul %56, %58, %cst_27 {dimension_numbers = #tpu.dot_dimension_numbers<[1], [0], [0], [1], [0, 0, 1, 1], [], []>} : vector<64x128xbf16>, vector<128x256xbf16>, vector<64x256xf32> -> vector<64x256xf32>
    %60 = arith.addf %53, %59 : vector<64x256xf32>
    %61 = vector.extract_strided_slice %47 {offsets = [0, 2, 0], sizes = [8, 8, 128], strides = [1, 1, 1]} : vector<8x12x128xf32> to vector<8x8x128xf32>
    %62 = vector.shape_cast %61 : vector<8x8x128xf32> to vector<64x128xf32>
    %63 = arith.truncf %62 : vector<64x128xf32> to vector<64x128xbf16>
    %c2_28 = arith.constant 2 : index
    %c0_29 = arith.constant 0 : index
    %c0_30 = arith.constant 0 : index
    %64 = vector.load %arg4[%c2_28, %c0_29, %c0_30] : memref<5x128x256xbf16, #tpu.memory_space<vmem>>, vector<1x128x256xbf16>
    %65 = vector.shape_cast %64 : vector<1x128x256xbf16> to vector<128x256xbf16>
    %cst_31 = arith.constant dense<0.000000e+00> : vector<64x256xf32>
    %66 = tpu.matmul %63, %65, %cst_31 {dimension_numbers = #tpu.dot_dimension_numbers<[1], [0], [0], [1], [0, 0, 1, 1], [], []>} : vector<64x128xbf16>, vector<128x256xbf16>, vector<64x256xf32> -> vector<64x256xf32>
    %67 = arith.addf %60, %66 : vector<64x256xf32>
    %68 = vector.extract_strided_slice %47 {offsets = [0, 3, 0], sizes = [8, 8, 128], strides = [1, 1, 1]} : vector<8x12x128xf32> to vector<8x8x128xf32>
    %69 = vector.shape_cast %68 : vector<8x8x128xf32> to vector<64x128xf32>
    %70 = arith.truncf %69 : vector<64x128xf32> to vector<64x128xbf16>
    %c3_32 = arith.constant 3 : index
    %c0_33 = arith.constant 0 : index
    %c0_34 = arith.constant 0 : index
    %71 = vector.load %arg4[%c3_32, %c0_33, %c0_34] : memref<5x128x256xbf16, #tpu.memory_space<vmem>>, vector<1x128x256xbf16>
    %72 = vector.shape_cast %71 : vector<1x128x256xbf16> to vector<128x256xbf16>
    %cst_35 = arith.constant dense<0.000000e+00> : vector<64x256xf32>
    %73 = tpu.matmul %70, %72, %cst_35 {dimension_numbers = #tpu.dot_dimension_numbers<[1], [0], [0], [1], [0, 0, 1, 1], [], []>} : vector<64x128xbf16>, vector<128x256xbf16>, vector<64x256xf32> -> vector<64x256xf32>
    %74 = arith.addf %67, %73 : vector<64x256xf32>
    %75 = vector.extract_strided_slice %47 {offsets = [0, 4, 0], sizes = [8, 8, 128], strides = [1, 1, 1]} : vector<8x12x128xf32> to vector<8x8x128xf32>
    %76 = vector.shape_cast %75 : vector<8x8x128xf32> to vector<64x128xf32>
    %77 = arith.truncf %76 : vector<64x128xf32> to vector<64x128xbf16>
    %c4_36 = arith.constant 4 : index
    %c0_37 = arith.constant 0 : index
    %c0_38 = arith.constant 0 : index
    %78 = vector.load %arg4[%c4_36, %c0_37, %c0_38] : memref<5x128x256xbf16, #tpu.memory_space<vmem>>, vector<1x128x256xbf16>
    %79 = vector.shape_cast %78 : vector<1x128x256xbf16> to vector<128x256xbf16>
    %cst_39 = arith.constant dense<0.000000e+00> : vector<64x256xf32>
    %80 = tpu.matmul %77, %79, %cst_39 {dimension_numbers = #tpu.dot_dimension_numbers<[1], [0], [0], [1], [0, 0, 1, 1], [], []>} : vector<64x128xbf16>, vector<128x256xbf16>, vector<64x256xf32> -> vector<64x256xf32>
    %81 = arith.addf %74, %80 : vector<64x256xf32>
    %c0_40 = arith.constant 0 : index
    %c0_41 = arith.constant 0 : index
    %82 = vector.load %arg5[%c0_40, %c0_41] : memref<1x256xf32, #tpu.memory_space<vmem>>, vector<1x256xf32>
    %83 = vector.broadcast %82 : vector<1x256xf32> to vector<64x256xf32>
    %84 = arith.addf %81, %83 : vector<64x256xf32>
    %cst_42 = arith.constant 0.000000e+00 : f32
    %85 = vector.broadcast %cst_42 : f32 to vector<64x256xf32>
    %86 = arith.maximumf %84, %85 : vector<64x256xf32>
    %87 = vector.extract_strided_slice %86 {offsets = [0, 0], sizes = [64, 128], strides = [1, 1]} : vector<64x256xf32> to vector<64x128xf32>
    %88 = vector.extract_strided_slice %86 {offsets = [0, 128], sizes = [64, 128], strides = [1, 1]} : vector<64x256xf32> to vector<64x128xf32>
    %89 = arith.maximumf %87, %88 : vector<64x128xf32>
    %90 = vector.shape_cast %89 : vector<64x128xf32> to vector<32x256xf32>
    %91 = vector.extract_strided_slice %90 {offsets = [0, 0], sizes = [32, 128], strides = [1, 1]} : vector<32x256xf32> to vector<32x128xf32>
    %92 = vector.extract_strided_slice %90 {offsets = [0, 128], sizes = [32, 128], strides = [1, 1]} : vector<32x256xf32> to vector<32x128xf32>
    %93 = arith.maximumf %91, %92 : vector<32x128xf32>
    %94 = vector.shape_cast %93 : vector<32x128xf32> to vector<8x512xf32>
    %95 = arith.truncf %94 : vector<8x512xf32> to vector<8x512xbf16>
    %c0_43 = arith.constant 0 : index
    %c0_44 = arith.constant 0 : index
    %96 = vector.load %arg6[%c0_43, %c0_44] : memref<512x128xbf16, #tpu.memory_space<vmem>>, vector<512x128xbf16>
    %cst_45 = arith.constant dense<0.000000e+00> : vector<8x128xf32>
    %97 = tpu.matmul %95, %96, %cst_45 {dimension_numbers = #tpu.dot_dimension_numbers<[1], [0], [0], [1], [0, 0, 1, 1], [], []>} : vector<8x512xbf16>, vector<512x128xbf16>, vector<8x128xf32> -> vector<8x128xf32>
    %c0_46 = arith.constant 0 : index
    %c0_47 = arith.constant 0 : index
    %98 = vector.load %arg7[%c0_46, %c0_47] : memref<1x128xf32, #tpu.memory_space<vmem>>, vector<1x128xf32>
    %99 = vector.broadcast %98 : vector<1x128xf32> to vector<8x128xf32>
    %100 = arith.addf %97, %99 : vector<8x128xf32>
    %cst_48 = arith.constant 0.000000e+00 : f32
    %101 = vector.broadcast %cst_48 : f32 to vector<8x128xf32>
    %102 = arith.maximumf %100, %101 : vector<8x128xf32>
    %103 = arith.truncf %102 : vector<8x128xf32> to vector<8x128xbf16>
    %c0_49 = arith.constant 0 : index
    %c0_50 = arith.constant 0 : index
    %104 = vector.load %arg8[%c0_49, %c0_50] : memref<128x128xbf16, #tpu.memory_space<vmem>>, vector<128x128xbf16>
    %cst_51 = arith.constant dense<0.000000e+00> : vector<8x128xf32>
    %105 = tpu.matmul %103, %104, %cst_51 {dimension_numbers = #tpu.dot_dimension_numbers<[1], [0], [0], [1], [0, 0, 1, 1], [], []>} : vector<8x128xbf16>, vector<128x128xbf16>, vector<8x128xf32> -> vector<8x128xf32>
    %c0_52 = arith.constant 0 : index
    %c0_53 = arith.constant 0 : index
    %106 = vector.load %arg9[%c0_52, %c0_53] : memref<1x128xf32, #tpu.memory_space<vmem>>, vector<1x128xf32>
    %107 = vector.broadcast %106 : vector<1x128xf32> to vector<8x128xf32>
    %108 = arith.addf %105, %107 : vector<8x128xf32>
    %cst_54 = arith.constant 0.000000e+00 : f32
    %109 = vector.broadcast %cst_54 : f32 to vector<8x128xf32>
    %110 = arith.maximumf %108, %109 : vector<8x128xf32>
    %111 = arith.truncf %110 : vector<8x128xf32> to vector<8x128xbf16>
    %c0_55 = arith.constant 0 : index
    %c0_56 = arith.constant 0 : index
    %112 = vector.load %arg10[%c0_55, %c0_56] : memref<128x128xbf16, #tpu.memory_space<vmem>>, vector<128x128xbf16>
    %cst_57 = arith.constant dense<0.000000e+00> : vector<8x128xf32>
    %113 = tpu.matmul %111, %112, %cst_57 {dimension_numbers = #tpu.dot_dimension_numbers<[1], [0], [0], [1], [0, 0, 1, 1], [], []>} : vector<8x128xbf16>, vector<128x128xbf16>, vector<8x128xf32> -> vector<8x128xf32>
    %c0_58 = arith.constant 0 : index
    %c0_59 = arith.constant 0 : index
    %114 = vector.load %arg11[%c0_58, %c0_59] : memref<1x128xf32, #tpu.memory_space<vmem>>, vector<1x128xf32>
    %115 = vector.broadcast %114 : vector<1x128xf32> to vector<8x128xf32>
    %116 = arith.addf %113, %115 : vector<8x128xf32>
    %c0_60 = arith.constant 0 : index
    %c0_61 = arith.constant 0 : index
    %117 = vector.load %arg12[%c0_60, %c0_61] : memref<8x128xf32, #tpu.memory_space<vmem>>, vector<8x128xf32>
    tpu.vector_store %arg12[%c0_60, %c0_61], %116 {strides = array<i32>} : memref<8x128xf32, #tpu.memory_space<vmem>>, vector<8x128xf32>,
    return
  }
  func.func @transform_0(%arg0: i32) -> (i32, i32, i32) {
    %c0_i32 = arith.constant 0 : i32
    %c0_i32_0 = arith.constant 0 : i32
    %c0_i32_1 = arith.constant 0 : i32
    return %arg0, %c0_i32, %c0_i32_0 : i32, i32, i32
  }
  func.func @transform_1(%arg0: i32) -> (i32, i32, i32) {
    %c0_i32 = arith.constant 0 : i32
    %c0_i32_0 = arith.constant 0 : i32
    %c0_i32_1 = arith.constant 0 : i32
    %c0_i32_2 = arith.constant 0 : i32
    return %c0_i32, %c0_i32_0, %c0_i32_1 : i32, i32, i32
  }
  func.func @transform_2(%arg0: i32) -> (i32, i32) {
    %c0_i32 = arith.constant 0 : i32
    %c0_i32_0 = arith.constant 0 : i32
    %c0_i32_1 = arith.constant 0 : i32
    return %c0_i32, %c0_i32_0 : i32, i32
  }
  func.func @transform_3(%arg0: i32) -> (i32, i32, i32) {
    %c0_i32 = arith.constant 0 : i32
    %c0_i32_0 = arith.constant 0 : i32
    %c0_i32_1 = arith.constant 0 : i32
    %c0_i32_2 = arith.constant 0 : i32
    return %c0_i32, %c0_i32_0, %c0_i32_1 : i32, i32, i32
  }
  func.func @transform_4(%arg0: i32) -> (i32, i32) {
    %c0_i32 = arith.constant 0 : i32
    %c0_i32_0 = arith.constant 0 : i32
    %c0_i32_1 = arith.constant 0 : i32
    return %c0_i32, %c0_i32_0 : i32, i32
  }
  func.func @transform_5(%arg0: i32) -> (i32, i32) {
    %c0_i32 = arith.constant 0 : i32
    %c0_i32_0 = arith.constant 0 : i32
    %c0_i32_1 = arith.constant 0 : i32
    return %c0_i32, %c0_i32_0 : i32, i32
  }
  func.func @transform_6(%arg0: i32) -> (i32, i32) {
    %c0_i32 = arith.constant 0 : i32
    %c0_i32_0 = arith.constant 0 : i32
    %c0_i32_1 = arith.constant 0 : i32
    return %c0_i32, %c0_i32_0 : i32, i32
  }
  func.func @transform_7(%arg0: i32) -> (i32, i32) {
    %c0_i32 = arith.constant 0 : i32
    %c0_i32_0 = arith.constant 0 : i32
    %c0_i32_1 = arith.constant 0 : i32
    return %c0_i32, %c0_i32_0 : i32, i32
  }
  func.func @transform_8(%arg0: i32) -> (i32, i32) {
    %c0_i32 = arith.constant 0 : i32
    %c0_i32_0 = arith.constant 0 : i32
    %c0_i32_1 = arith.constant 0 : i32
    return %c0_i32, %c0_i32_0 : i32, i32
  }
  func.func @transform_9(%arg0: i32) -> (i32, i32) {
    %c0_i32 = arith.constant 0 : i32
    %c0_i32_0 = arith.constant 0 : i32
    %c0_i32_1 = arith.constant 0 : i32
    return %c0_i32, %c0_i32_0 : i32, i32
  }
  func.func @transform_10(%arg0: i32) -> (i32, i32) {
    %c0_i32 = arith.constant 0 : i32
    %c0_i32_0 = arith.constant 0 : i32
    %c0_i32_1 = arith.constant 0 : i32
    return %c0_i32, %c0_i32_0 : i32, i32
  }
  func.func @transform_11(%arg0: i32) -> (i32, i32) {
    %c0_i32 = arith.constant 0 : i32
    %c0_i32_0 = arith.constant 0 : i32
    return %arg0, %c0_i32 : i32, i32
  }
}

</mosaic_0001>

<bundles_post_ra>
// kernel: forward.1
= control target key start
LH: loop header
LB: loop body
LE: loop exit
PB: predicated region body
PF: predicated region fallthrough
CT: control target
= control target key end

     0   :  { %16 = vsyncpa [#allocation3], 0  ;;  %s7605_s0 = inlined_call_operand.vmem [shape: f32[16,28,28], index: 0, kind: input, shape index: {}]   ;;  %s7606_s1 = inlined_call_operand.vmem [shape: bf16[5,28,256], index: 1, kind: input, shape index: {}]   ;;  %s7607_s2 = inlined_call_operand.vmem [shape: f32[1,256], index: 2, kind: input, shape index: {}]   ;;  %s7608_s3 = inlined_call_operand.vmem [shape: bf16[5,128,256], index: 3, kind: input, shape index: {}]   ;;  %s7609_s4 = inlined_call_operand.vmem [shape: f32[1,256], index: 4, kind: input, shape index: {}]   ;;  %s7610_s5 = inlined_call_operand.hbm [shape: bf16[512,128], index: 5, kind: input, shape index: {}]   ;;  %s7611_s6 = inlined_call_operand.vmem [shape: f32[1,128], index: 6, kind: input, shape index: {}]   ;;  %s7612_s7 = inlined_call_operand.hbm [shape: bf16[128,128], index: 7, kind: input, shape index: {}]   ;;  %s7613_s8 = inlined_call_operand.vmem [shape: f32[1,128], index: 8, kind: input, shape index: {}]   ;;  %s7614_s9 = inlined_call_operand.hbm [shape: bf16[128,128], index: 9, kind: input, shape index: {}]   ;;  %s7615_s10 = inlined_call_operand.vmem [shape: f32[1,128], index: 10, kind: input, shape index: {}]   ;;  %s7616_s11 = inlined_call_operand.vmem [shape: f32[16,128], index: 11, kind: output, shape index: {}]  }
   0x1   :  { %17 = vsyncpa [#allocation5], 0  ;;  %s5458_s17 = smov 0  }
   0x2 LB: > { %s5464_s18 = sadd.s32 4294967295, %s5385_s17   ;;  %p4599_p0 = scmp.ge.s32.totalorder %s5385_s17, 1  ;;  %s5385_s17 = sphi %s5458_s17, %s23_s17  }
   0x3   : > { %p290_p1 = scmp.lt.s32.totalorder %s5385_s17, 3  ;;  %p5059_p2 = scmp.eq.s32.totalorder %s5464_s18, 0 }
   0x4   : > { %s5387_s20 = smov [#allocation4]   ;;  %s5388_s22 = smov [#allocation2]  }
   0x5   : > { %p5469_p3 = pnand %p4599_p0, %p290_p1  ;;  %s330_s21 = sshll.u32 %s5387_s20, 4  ;;  %s331_s21 = int_to_ptr.vmem [resolvable:$true] %s330_s21 }
   0x6   : > { %s314_s23 = sshll.u32 %s5388_s22, 4  ;;  %s5389_s25 = smov [#allocation6]   ;;  %s315_s23 = int_to_ptr.vmem [resolvable:$true] %s314_s23 }
   0x7   : > { %p5049_p4 = pneg %p5469_p3  ;;  %s346_s26 = sshll.u32 %s5389_s25, 4  ;;  %s5481_s26 = int_to_ptr.vmem [resolvable:$true] %s346_s26 }
   0x8   : > { %s5304_s27 = scalar_lea.vmem %s331_s21, 1024  ;;  %p5312_p10 = scmp.lt.s32.totalorder %s331_s21, %s331_s21 }
   0x9   : > { %p5477_p5 = pnand %p5059_p2, %p5049_p4  ;;  %p5305_p7 = scmp.ne.s32.totalorder %s331_s21, %s5304_s27 }
   0xa   : > { %p5313_p11 = scmp.lt.s32.totalorder %s5304_s27, %s5304_s27 }
   0xb   : > { %p5295_p6 = pneg %p5477_p5 }
   0xc   : > { %p5314_p12 = por %p5313_p11, %p5312_p10 }
   0xd   : > { %p5307_p8 = pnand %p5305_p7, %p5295_p6 }
   0xf   : > { %p5308_p9 = pneg %p5307_p8 }
  0x11   : > { %p5315_p13 = pnand %p5314_p12, %p5308_p9 }
  0x13   : > { %5318 = shalt.err (!%p5315_p13)
}
  0x14   : > { %s5390_s28 = smov 64   ;;  %s5391_s29 = smov 4  }
  0x15   : > { %5055 = dma.hbm_to_vmem [thread:$0]  (!%p5477_p5), %s7612_s7, 1024, %s331_s21, [#allocation5], %s5390_s28, %s5390_s28, %s5391_s29  }
  0x16   : > { %s5330_s13 = scalar_lea.vmem %s315_s23, 4096  ;;  %p5338_p7 = scmp.lt.s32.totalorder %s315_s23, %s315_s23 }
  0x17   : > { %p5331_p0 = scmp.ne.s32.totalorder %s315_s23, %s5330_s13  ;;  %p5339_p8 = scmp.lt.s32.totalorder %s5330_s13, %s5330_s13 }
  0x19   : > { %p5333_p1 = pnand %p5331_p0, %p5295_p6  ;;  %p5340_p10 = por %p5339_p8, %p5338_p7 }
  0x1b   : > { %p5334_p4 = pneg %p5333_p1 }
  0x1d   : > { %p5341_p9 = pnand %p5340_p10, %p5334_p4 }
  0x1f   : > { %5344 = shalt.err (!%p5341_p9)
}
  0x20   : > { %5052 = dma.hbm_to_vmem [thread:$0]  (!%p5477_p5), %s7610_s5, 4096, %s315_s23, [#allocation3], %s5390_s28, %s5390_s28, %s5391_s29  }
  0x21   : > { %s5356_s16 = scalar_lea.vmem %s5481_s26, 1024  ;;  %p5364_p0 = scmp.lt.s32.totalorder %s5481_s26, %s5481_s26 }
  0x22   : > { %p5357_p11 = scmp.ne.s32.totalorder %s5481_s26, %s5356_s16  ;;  %p5365_p1 = scmp.lt.s32.totalorder %s5356_s16, %s5356_s16 }
  0x24   : > { %p5359_p12 = pnand %p5357_p11, %p5295_p6  ;;  %p5366_p4 = por %p5365_p1, %p5364_p0 }
  0x26   : > { %p5360_p13 = pneg %p5359_p12 }
  0x28   : > { %p5367_p7 = pnand %p5366_p4, %p5360_p13 }
  0x2a   : > { %5370 = shalt.err (!%p5367_p7)
}
  0x2b   : > { %5058 = dma.hbm_to_vmem [thread:$0]  (!%p5477_p5), %s7614_s9, 1024, %s5481_s26, [#allocation5], %s5390_s28, %s5390_s28, %s5391_s29  }
  0x2c   : > { %375 = sbr.rel (%p5469_p3) target bundleno = 1490 (0x5d2), region = 64 }
  0x31   : > { %5376 = dma.done.wait (%p5059_p2), [#allocation3], 4096  }
  0x32   : > { %5378 = vsyncadd (%p5059_p2), [#allocation3], 4294963200 }
  0x33   : > { %5380 = dma.done.wait (%p5059_p2), [#allocation5], 2048  }
  0x34   : > { %5382 = vsyncadd (%p5059_p2), [#allocation5], 4294965248  ;;  %s4608_s22 = sshll.u32 %s5464_s18, 3  ;;  %v7617_v0 = vmov 0   ;;  %vm668_vm0 = vcmask 1045504   ;;  %vm515_vm1 = vcmask 1046528  }
  0x35   : > { %707 = vmatprep.mubr.bf16.mxu0 %v7617_v0  ;;  %920 = vmatprep.mubr.bf16.mxu1 %v7617_v0  ;;  %p424_p3 = scmp.lt.s32.totalorder %s4608_s22, 15  ;;  %v5084_v1 = vld [vmem:[%s7606_s1 + $0x34] ss:$8 sps:$4 sm:$0x3f]   ;;  %v5090_v5 = vld [vmem:[%s7606_s1 + $0x24] ss:$8 sps:$4 sm:$0xff]  }
  0x36   : > { %v5086_v2 = vld [vmem:[%s7606_s1 + $0x14] ss:$8 sps:$4 sm:$0x3f]   ;;  %4620 = vmatprep.subr.msk.bf16.mxu0 %vm668_vm0, %v5084_v1  ;;  %v5088_v3 = vld [vmem:[%s7606_s1 + $0x30] ss:$8 sps:$4 sm:$0x3f]  }
  0x37   : > { %s7780_s22 = smov (!%p424_p3, %s4608_s22), 15  ;;  %v5089_v4 = vld [vmem:[%s7606_s1 + $0x10] ss:$8 sps:$4 sm:$0x3f]   ;;  %4637 = vmatprep.subr.msk.bf16.mxu1 %vm668_vm0, %v5086_v2  ;;  %v670_v6 = vsel %vm668_vm0, %v5088_v3, 0  ;;  %vm631_vm2 = vcmask 228352  }
  0x38   : > { %s4934_s19 = sshll.u32 %s7780_s22, 5  ;;  %v883_v7 = vsel %vm668_vm0, %v5089_v4, 0  ;;  %v5092_v8 = vld [vmem:[%s7606_s1 + $0x4] ss:$8 sps:$4 sm:$0xff]   ;;  %688 = vmatpush1.bf16.msra.mxu0 %v670_v6  ;;  %v5094_v9 = vld [vmem:[%s7606_s1 + $0x20] ss:$8 sps:$4 sm:$0xff]  }
  0x39   : > { %s5543_s14 = scalar_lea.vmem %s7605_s0, %s4934_s19  ;;  %901 = vmatpush1.bf16.msra.mxu1 %v883_v7  ;;  %v5095_v10 = vld [vmem:[%s7606_s1] ss:$8 sps:$4 sm:$0xff]   ;;  %689 = vmatprep.subr.bf16.mxu0 %v5090_v5  ;;  %v5096_v19 = vld [vmem:[%s7606_s1 + $0x54] ss:$8 sps:$4 sm:$0x3f]   ;;  %vm1399_vm3 = vcmask 1044480  }
  0x3a   : > { %v5561_v11 = vld [vmem:[%s5543_s14] sm:$0xff]  ;;  %902 = vmatprep.subr.bf16.mxu1 %v5092_v8  ;;  %v5564_v12 = vld [vmem:[%s5543_s14 + $0x8] sm:$0xff]  ;;  %v5567_v13 = vld [vmem:[%s5543_s14 + $0x10] sm:$0xff]  ;;  %vm1758_vm4 = vcmask 1043456   ;;  %vm2573_vm5 = vcmask 1042432   ;;  %vm2574_vm6 = vcmask 1046532  }
  0x3b   : > { %v516_v14 = vrot.slane %v5561_v11, 1  ;;  %v517_v15 = vrot.slane %v5564_v12, 1  ;;  %v519_v16 = vrot.slane %v5567_v13, 1  ;;  %v5573_v17 = vld [vmem:[%s5543_s14 + $0x18] sm:$0xf]  ;;  %v467_v18 = vpack.c.bf16 %v5564_v12, %v5561_v11  ;;  %v5586_v23 = vld [vmem:[%s5543_s14 + $0x20] sm:$0xff]  ;;  %vm6809_vm9 = vmor %vm2573_vm5, %vm2574_vm6 }
  0x3c   : > { %v5098_v20 = vld [vmem:[%s7606_s1 + $0x50] ss:$8 sps:$4 sm:$0x3f]   ;;  %690 = vmatpush1.bf16.msra.mxu0 %v5094_v9  ;;  %v5589_v24 = vld [vmem:[%s5543_s14 + $0x28] sm:$0xff]  ;;  %v521_v25 = vrot.slane %v5573_v17, 1  ;;  %v523_v28 = vrot.slane %v5586_v23, 1  ;;  %v468_v37 = vpack.c.bf16 %v5586_v23, %v5567_v13 }
  0x3d   : > { %903 = vmatpush1.bf16.msra.mxu1 %v5095_v10  ;;  %v518_v21 = vsel %vm515_vm1, %v516_v14, %v517_v15  ;;  %v520_v22 = vsel %vm515_vm1, %v517_v15, %v519_v16  ;;  %4658 = vmatprep.subr.msk.bf16.mxu0 %vm668_vm0, %v5096_v19  ;;  %v1193_v27 = vsel %vm668_vm0, %v5098_v20, 0  ;;  %v524_v29 = vrot.slane %v5589_v24, 1  ;;  %v5602_v32 = vld [vmem:[%s5543_s14 + $0x30] sm:$0xff]  ;;  %v5606_v33 = vld [vmem:[%s5543_s14 + $0x38] sm:$0xf]  ;;  %v5619_v40 = vld [vmem:[%s5543_s14 + $0x40] sm:$0xff] }
  0x3e   : > { %v596_v26 = vpack.c.bf16 %v520_v22, %v518_v21  ;;  %v522_v30 = vsel %vm515_vm1, %v519_v16, %v521_v25  ;;  %v5099_v34 = vld [vmem:[%s7606_s1 + $0x40] ss:$8 sps:$4 sm:$0xff]   ;;  %v5101_v35 = vld [vmem:[%s7606_s1 + $0x44] ss:$8 sps:$4 sm:$0xff]   ;;  %v526_v38 = vrot.slane %v5602_v32, 1  ;;  %v528_v39 = vrot.slane %v5606_v33, 1 }
  0x3f   : > { %v525_v31 = vsel %vm515_vm1, %v523_v28, %v524_v29  ;;  %v5624_v41 = vld [vmem:[%s5543_s14 + $0x48] sm:$0xff]  ;;  %v5631_v44 = vld [vmem:[%s5543_s14 + $0x50] sm:$0xff]  ;;  %v1041_v47 = vrot.slane %v5561_v11, 2  ;;  %v1042_v48 = vrot.slane %v5564_v12, 2  ;;  %v469_v50 = vpack.c.bf16 %v5602_v32, %v5589_v24  ;;  %v5662_v59 = vld [vmem:[%s5543_s14 + $0x58] sm:$0xf] }
  0x40   : > { %4621 = vmatmul.mubr.msk.bf16.vlgmr.msra.gmra.mxu0 %vm631_vm2, %v596_v26  ;;  %4638 = vmatmul.mubr.msk.bf16.vlgmr.msra.gmra.mxu1 %vm631_vm2, %v467_v18  ;;  %v597_v36 = vpack.c.bf16 %v525_v31, %v522_v30  ;;  %v527_v42 = vsel %vm515_vm1, %v524_v29, %v526_v38  ;;  %v529_v43 = vsel %vm515_vm1, %v526_v38, %v528_v39  ;;  %v5102_v45 = vld [vmem:[%s7606_s1 + $0x74] ss:$8 sps:$4 sm:$0x3f]   ;;  %v5104_v46 = vld [vmem:[%s7606_s1 + $0x70] ss:$8 sps:$4 sm:$0x3f]  }
  0x41   : > { %1211 = vmatpush1.bf16.msra.mxu0 %v1193_v27  ;;  %717 = vmatprep.mubr.bf16.mxu0 %v7617_v0  ;;  %v598_v49 = vpack.c.bf16 %v529_v43, %v527_v42  ;;  %v530_v51 = vrot.slane %v5619_v40, 1  ;;  %v531_v52 = vrot.slane %v5624_v41, 1  ;;  %v533_v53 = vrot.slane %v5631_v44, 1  ;;  %v5108_v54 = vld [vmem:[%s7606_s1 + $0x94] ss:$8 sps:$4 sm:$0x3f]  }
  0x42   : > { %930 = vmatprep.mubr.bf16.mxu1 %v7617_v0  ;;  %1212 = vmatprep.subr.bf16.mxu0 %v5101_v35  ;;  %v5107_v55 = vld [vmem:[%s7606_s1 + $0x64] ss:$8 sps:$4 sm:$0xff]   ;;  %v1552_v56 = vsel %vm668_vm0, %v5104_v46, 0  ;;  %v5655_v57 = vsel %vm668_vm0, %v1041_v47, %v1042_v48  ;;  %v1400_v58 = vrot.slane %v5561_v11, 3  ;;  %v5105_v62 = vld [vmem:[%s7606_s1 + $0x60] ss:$8 sps:$4 sm:$0xff]   ;;  %v470_v9 = vpack.c.bf16 %v5624_v41, %v5619_v40 }
  0x43   : > { %4679 = vmatprep.subr.msk.bf16.mxu1 %vm668_vm0, %v5102_v45  ;;  %v5665_v60 = vld [vmem:[%s5543_s14 + $0x60] sm:$0xff]  ;;  %v5668_v61 = vld [vmem:[%s5543_s14 + $0x68] sm:$0xff]  ;;  %v1044_v63 = vrot.slane %v5567_v13, 2  ;;  %v532_v1 = vsel %vm515_vm1, %v530_v51, %v531_v52  ;;  %v534_v2 = vsel %vm515_vm1, %v531_v52, %v533_v53  ;;  %v1401_v3 = vrot.slane %v5564_v12, 3  ;;  %v5716_v27 = vld [vmem:[%s5543_s14 + $0x70] sm:$0xff]  ;;  %p430_p2 = scmp.lt.s32.totalorder %s5464_s18, 1 }
  0x44   : > { %v1403_v4 = vrot.slane %v5567_v13, 3  ;;  %1570 = vmatpush1.bf16.msra.mxu1 %v1552_v56  ;;  %v1046_v6 = vrot.slane %v5573_v17, 2  ;;  %v1048_v7 = vrot.slane %v5586_v23, 2  ;;  %v1049_v8 = vrot.slane %v5589_v24, 2  ;;  %v5719_v28 = vld [vmem:[%s5543_s14 + $0x78] sm:$0xf] }
  0x45   : > { %1213 = vmatpush1.bf16.msra.mxu0 %v5099_v34  ;;  %v5681_v5 = vsel %vm668_vm0, %v1042_v48, %v1044_v63  ;;  %1571 = vmatprep.subr.bf16.mxu1 %v5107_v55  ;;  %v5691_v14 = vsel %vm1399_vm3, %v1400_v58, %v1401_v3  ;;  %v599_v16 = vpack.c.bf16 %v534_v2, %v532_v1  ;;  %v535_v21 = vrot.slane %v5662_v59, 1  ;;  %v5735_v38 = vld [vmem:[%s5543_s14 + $0x88] sm:$0xff]  ;;  %v5738_v39 = vld [vmem:[%s5543_s14 + $0x90] sm:$0xff]  ;;  %v5755_v51 = vld [vmem:[%s5543_s14 + $0xa0] sm:$0xff]  ;;  %s7782_s18 = smov (!%p430_p2, %s5464_s18), 1 }
  0x46   : > { %4700 = vmatprep.subr.msk.bf16.mxu0 %vm668_vm0, %v5108_v54  ;;  %v1121_v10 = vpack.c.bf16 %v5681_v5, %v5655_v57  ;;  %v5696_v15 = vsel %vm1399_vm3, %v1401_v3, %v1403_v4  ;;  %v5701_v19 = vsel %vm668_vm0, %v1044_v63, %v1046_v6  ;;  %v5706_v20 = vsel %vm668_vm0, %v1048_v7, %v1049_v8  ;;  %v5758_v52 = vld [vmem:[%s5543_s14 + $0xa8] sm:$0xff]  ;;  %v5770_v1 = vld [vmem:[%s5543_s14 + $0xb0] sm:$0xff]  ;;  %v5775_v2 = vld [vmem:[%s5543_s14 + $0xb8] sm:$0xf]  ;;  %s4611_s12 = sshll.u32 %s7782_s18, 3 }
  0x47   : > { %v1480_v18 = vpack.c.bf16 %v5696_v15, %v5691_v14  ;;  %v537_v22 = vrot.slane %v5665_v60, 1  ;;  %v538_v25 = vrot.slane %v5668_v61, 1  ;;  %v1122_v26 = vpack.c.bf16 %v5706_v20, %v5701_v19  ;;  %v5111_v57 = vld [vmem:[%s7606_s1 + $0x80] ss:$8 sps:$4 sm:$0xff]   ;;  %s433_s20 = scalar_lea.vmem %s7616_s11, %s4611_s12 }
  0x48   : > { %4622 = vmatmul.mubr.msk.bf16.gmra.mxu0 %vm631_vm2, %v597_v36  ;;  %4639 = vmatmul.mubr.msk.bf16.gmra.mxu1 %vm631_vm2, %v468_v37  ;;  %v536_v29 = vsel %vm515_vm1, %v533_v53, %v535_v21  ;;  %v471_v34 = vpack.c.bf16 %v5665_v60, %v5631_v44  ;;  %v540_v35 = vrot.slane %v5716_v27, 1  ;;  %v542_v36 = vrot.slane %v5719_v28, 1  ;;  %v5732_v37 = vld [vmem:[%s5543_s14 + $0x80] sm:$0xff] }
  0x49   : > { %727 = vmatprep.mubr.bf16.mxu0 %v7617_v0  ;;  %940 = vmatprep.mubr.bf16.mxu1 %v7617_v0  ;;  %v539_v30 = vsel %vm515_vm1, %v537_v22, %v538_v25  ;;  %v472_v46 = vpack.c.bf16 %v5716_v27, %v5668_v61  ;;  %v544_v47 = vrot.slane %v5732_v37, 1  ;;  %v545_v48 = vrot.slane %v5735_v38, 1 }
  0x4a   : > { %1572 = vmatpush1.bf16.msra.mxu1 %v5105_v62  ;;  %v600_v31 = vpack.c.bf16 %v539_v30, %v536_v29  ;;  %v541_v42 = vsel %vm515_vm1, %v538_v25, %v540_v35  ;;  %v543_v43 = vsel %vm515_vm1, %v540_v35, %v542_v36  ;;  %v473_v56 = vpack.c.bf16 %v5735_v38, %v5732_v37  ;;  %v5790_v29 = vld [vmem:[%s5543_s14 + $0xc8] sm:$0xff]  ;;  %v5793_v30 = vld [vmem:[%s5543_s14 + $0xd0] sm:$0xff] }
  0x4b   : > { %v601_v45 = vpack.c.bf16 %v543_v43, %v541_v42  ;;  %v546_v53 = vsel %vm515_vm1, %v544_v47, %v545_v48  ;;  %v551_v62 = vrot.slane %v5755_v51, 1  ;;  %v552_v63 = vrot.slane %v5758_v52, 1 }
  0x4c   : > { %v554_v7 = vrot.slane %v5770_v1, 1  ;;  %v474_v21 = vpack.c.bf16 %v5755_v51, %v5738_v39  ;;  %v556_v22 = vrot.slane %v5775_v2, 1  ;;  %v559_v35 = vrot.slane %v5790_v29, 1 }
  0x4d   : > { %v553_v6 = vsel %vm515_vm1, %v551_v62, %v552_v63  ;;  %v1759_v36 = vrot.slane %v5561_v11, 4  ;;  %v1760_v42 = vrot.slane %v5564_v12, 4  ;;  %v1762_v43 = vrot.slane %v5567_v13, 4  ;;  %v5817_v11 = vld [vmem:[%s5543_s14 + $0xd8] sm:$0xf]  ;;  %v5820_v12 = vld [vmem:[%s5543_s14 + $0xe0] sm:$0xff] }
  0x4e   : > { %v561_v47 = vrot.slane %v5793_v30, 1  ;;  %v565_v62 = vrot.slane %v5820_v12, 1  ;;  %v1053_v14 = vrot.slane %v5606_v33, 2  ;;  %v1410_v15 = vrot.slane %v5602_v32, 3 }
  0x4f   : > { %v1055_v20 = vrot.slane %v5619_v40, 2  ;;  %vm3240_vm7 = vcmask 1040384   ;;  %vm3241_vm8 = vcmask 1044484   ;;  %vm2975_vm11 = vcmask 1041408  }
  0x50   : > { %4623 = vmatmul.mubr.msk.bf16.gmra.mxu0 %vm631_vm2, %v598_v49  ;;  %4640 = vmatmul.mubr.msk.bf16.gmra.mxu1 %vm631_vm2, %v469_v50  ;;  %v547_v49 = vrot.slane %v5738_v39, 1  ;;  %v5750_v50 = vld [vmem:[%s5543_s14 + $0x98] sm:$0xf]  ;;  %vm6830_vm10 = vmor %vm3240_vm7, %vm3241_vm8  ;;  %vm2976_vm12 = vcmask 1045508   ;;  %vm5397_vm14 = vmmov 0  }
  0x51   : > { %737 = vmatprep.mubr.bf16.mxu0 %v7617_v0  ;;  %950 = vmatprep.mubr.bf16.mxu1 %v7617_v0  ;;  %v549_v58 = vrot.slane %v5750_v50, 1  ;;  %vm7177_vm13 = vmor %vm2975_vm11, %vm2976_vm12 }
  0x52   : > { %v548_v54 = vsel %vm515_vm1, %v545_v48, %v547_v49  ;;  %v5809_v48 = vsel %vm1758_vm4, %v1759_v36, %v1760_v42 }
  0x53   : > { %v602_v55 = vpack.c.bf16 %v548_v54, %v546_v53  ;;  %v550_v3 = vsel %vm515_vm1, %v547_v49, %v549_v58  ;;  %v5814_v49 = vsel %vm1758_vm4, %v1760_v42, %v1762_v43  ;;  %v5823_v53 = vld [vmem:[%s5543_s14 + $0xe8] sm:$0xff]  ;;  %v563_v58 = vrot.slane %v5817_v11, 1 }
  0x54   : > { %v1839_v54 = vpack.c.bf16 %v5814_v49, %v5809_v48  ;;  %v5285_v49 = vld [vmem:[%s5543_s14 + $0x30] sm:$0xff] }
  0x58   : > { %4624 = vmatmul.mubr.msk.bf16.gmra.mxu0 %vm631_vm2, %v599_v16  ;;  %4641 = vmatmul.mubr.msk.bf16.gmra.mxu1 %vm631_vm2, %v470_v9  ;;  %v5783_v9 = vld [vmem:[%s5543_s14 + $0xc0] sm:$0xff]  ;;  %v603_v16 = vpack.c.bf16 %v553_v6, %v550_v3 }
  0x59   : > { %747 = vmatprep.mubr.bf16.mxu0 %v7617_v0  ;;  %960 = vmatprep.mubr.bf16.mxu1 %v7617_v0  ;;  %v558_v25 = vrot.slane %v5783_v9, 1  ;;  %v476_v6 = vpack.c.bf16 %v5790_v29, %v5783_v9 }
  0x60   : > { %4625 = vmatmul.mubr.msk.bf16.gmra.mxu0 %vm631_vm2, %v600_v31  ;;  %4642 = vmatmul.mubr.msk.bf16.gmra.mxu1 %vm631_vm2, %v471_v34  ;;  %v555_v31 = vsel %vm515_vm1, %v552_v63, %v554_v7  ;;  %v557_v34 = vsel %vm515_vm1, %v554_v7, %v556_v22  ;;  %v566_v63 = vrot.slane %v5823_v53, 1  ;;  %v5839_v7 = vld [vmem:[%s5543_s14 + $0xf0] sm:$0xff] }
  0x61   : > { %757 = vmatprep.mubr.bf16.mxu0 %v7617_v0  ;;  %970 = vmatprep.mubr.bf16.mxu1 %v7617_v0 }
  0x62   : > { %v567_v22 = vsel %vm515_vm1, %v565_v62, %v566_v63 }
  0x68   : > { %4626 = vmatmul.mubr.msk.bf16.gmra.mxu0 %vm631_vm2, %v601_v45  ;;  %4643 = vmatmul.mubr.msk.bf16.gmra.mxu1 %vm631_vm2, %v472_v46  ;;  %v604_v45 = vpack.c.bf16 %v557_v34, %v555_v31  ;;  %v475_v46 = vpack.c.bf16 %v5770_v1, %v5758_v52 }
  0x69   : > { %767 = vmatprep.mubr.bf16.mxu0 %v7617_v0  ;;  %980 = vmatprep.mubr.bf16.mxu1 %v7617_v0 }
  0x70   : > { %4627 = vmatmul.mubr.msk.bf16.gmra.mxu0 %vm631_vm2, %v602_v55  ;;  %4644 = vmatmul.mubr.msk.bf16.gmra.mxu1 %vm631_vm2, %v473_v56  ;;  %v560_v55 = vsel %vm515_vm1, %v558_v25, %v559_v35  ;;  %v562_v56 = vsel %vm515_vm1, %v559_v35, %v561_v47  ;;  %v568_v25 = vrot.slane %v5839_v7, 1  ;;  %v477_v35 = vpack.c.bf16 %v5820_v12, %v5793_v30 }
  0x71   : > { %777 = vmatprep.mubr.bf16.mxu0 %v7617_v0  ;;  %990 = vmatprep.mubr.bf16.mxu1 %v7617_v0  ;;  %v605_v3 = vpack.c.bf16 %v562_v56, %v560_v55  ;;  %v1405_v55 = vrot.slane %v5573_v17, 3  ;;  %v1407_v56 = vrot.slane %v5586_v23, 3 }
  0x72   : > { %v569_v36 = vsel %vm515_vm1, %v566_v63, %v568_v25  ;;  %v5113_v63 = vld [vmem:[%s7606_s1 + $0x84] ss:$8 sps:$4 sm:$0xff]  }
  0x73   : > { %v1406_v17 = vsel %vm1399_vm3, %v1403_v4, %v1405_v55 }
  0x78   : > { %4628 = vmatmul.mubr.msk.bf16.gmra.mxu0 %vm631_vm2, %v603_v16  ;;  %4645 = vmatmul.mubr.msk.bf16.gmra.mxu1 %vm631_vm2, %v474_v21  ;;  %v5842_v16 = vld [vmem:[%s5543_s14 + $0xf8] sm:$0xf]  ;;  %v564_v21 = vsel %vm515_vm1, %v561_v47, %v563_v58  ;;  %v1408_v58 = vrot.slane %v5589_v24, 3  ;;  %v1058_v24 = vrot.slane %v5631_v44, 2 }
  0x79   : > { %787 = vmatprep.mubr.bf16.mxu0 %v7617_v0  ;;  %1000 = vmatprep.mubr.bf16.mxu1 %v7617_v0  ;;  %v570_v31 = vrot.slane %v5842_v16, 1  ;;  %v606_v34 = vpack.c.bf16 %v567_v22, %v564_v21  ;;  %v5110_v47 = vld [vmem:[%s7606_s1 + $0x90] ss:$8 sps:$4 sm:$0x3f]   ;;  %v1415_v21 = vrot.slane %v5624_v41, 3  ;;  %v1417_v22 = vrot.slane %v5631_v44, 3 }
  0x7a   : > { %v1911_v62 = vsel %vm668_vm0, %v5110_v47, 0  ;;  %v1409_v23 = vsel %vm1399_vm3, %v1407_v56, %v1408_v58  ;;  %v1060_v44 = vrot.slane %v5662_v59, 2  ;;  %v1422_v47 = vrot.slane %v5668_v61, 3 }
  0x7b   : > { %v571_v42 = vsel %vm515_vm1, %v568_v25, %v570_v31  ;;  %v1481_v5 = vpack.c.bf16 %v1409_v23, %v1406_v17  ;;  %v1424_v17 = vrot.slane %v5716_v27, 3  ;;  %v1426_v23 = vrot.slane %v5719_v28, 3 }
  0x7c   : > { %v1061_v55 = vsel %vm668_vm0, %v1058_v24, %v1060_v44 }
  0x80   : > { %4629 = vmatmul.mubr.msk.bf16.gmra.mxu0 %vm631_vm2, %v604_v45  ;;  %4646 = vmatmul.mubr.msk.bf16.gmra.mxu1 %vm631_vm2, %v475_v46  ;;  %v607_v45 = vpack.c.bf16 %v571_v42, %v569_v36  ;;  %v478_v46 = vpack.c.bf16 %v5839_v7, %v5823_v53  ;;  %v1062_v36 = vrot.slane %v5665_v60, 2  ;;  %v1063_v42 = vrot.slane %v5668_v61, 2 }
  0x81   : > { %797 = vmatprep.mubr.bf16.mxu0 %v7617_v0  ;;  %1010 = vmatprep.mubr.bf16.mxu1 %v7617_v0  ;;  %v1065_v61 = vrot.slane %v5716_v27, 2 }
  0x82   : > { %v1064_v56 = vsel %vm668_vm0, %v1062_v36, %v1063_v42 }
  0x88   : > { %4630 = vmatmul.mubr.msk.bf16.gmra.mxu0 %vm631_vm2, %v605_v3  ;;  %4647 = vmatmul.mubr.msk.bf16.gmra.mxu1 %vm631_vm2, %v476_v6 }
  0x89   : > { %807 = vmatprep.mubr.bf16.mxu0 %v7617_v0  ;;  %1020 = vmatprep.mubr.bf16.mxu1 %v7617_v0 }
  0x90   : > { %4631 = vmatmul.mubr.msk.bf16.gmra.mxu0 %vm631_vm2, %v606_v34  ;;  %4648 = vmatmul.mubr.msk.bf16.gmra.mxu1 %vm631_vm2, %v477_v35 }
  0x91   : > { %817 = vmatprep.mubr.bf16.mxu0 %v7617_v0  ;;  %1030 = vmatprep.mubr.bf16.mxu1 %v7617_v0 }
  0x98   : > { %4632 = vmatmul.mubr.msk.bf16.gmra.mxu0 %vm631_vm2, %v607_v45  ;;  %4649 = vmatmul.mubr.msk.bf16.gmra.mxu1 %vm631_vm2, %v478_v46  ;;  %v1419_v45 = vrot.slane %v5662_v59, 3  ;;  %v1421_v46 = vrot.slane %v5665_v60, 3 }
  0x99   : > { %1230 = vmatprep.mubr.bf16.mxu0 %v7617_v0  ;;  %1589 = vmatprep.mubr.bf16.mxu1 %v7617_v0 }
  0x9a   : > { %v1423_v59 = vsel %vm1399_vm3, %v1421_v46, %v1422_v47 }
  0xa0   : > { %4659 = vmatmul.mubr.msk.bf16.vlgmr.msra.gmra.mxu0 %vm631_vm2, %v1121_v10  ;;  %4680 = vmatmul.mubr.msk.bf16.vlgmr.msra.gmra.mxu1 %vm631_vm2, %v1480_v18  ;;  %v1051_v10 = vrot.slane %v5602_v32, 2  ;;  %v1412_v18 = vrot.slane %v5606_v33, 3  ;;  %v1411_v32 = vsel %vm1399_vm3, %v1408_v58, %v1410_v15  ;;  %v1420_v58 = vsel %vm1399_vm3, %v1417_v22, %v1419_v45 }
  0xa1   : > { %1929 = vmatpush1.bf16.msra.mxu0 %v1911_v62  ;;  %1240 = vmatprep.mubr.bf16.mxu0 %v7617_v0  ;;  %v1125_v62 = vpack.c.bf16 %v1064_v56, %v1061_v55  ;;  %v1484_v60 = vpack.c.bf16 %v1423_v59, %v1420_v58  ;;  %v1079_v55 = vrot.slane %v5770_v1, 2  ;;  %v1081_v56 = vrot.slane %v5775_v2, 2 }
  0xa2   : > { %1599 = vmatprep.mubr.bf16.mxu1 %v7617_v0  ;;  %1930 = vmatprep.subr.bf16.mxu0 %v5113_v63  ;;  %v1052_v4 = vsel %vm668_vm0, %v1049_v8, %v1051_v10  ;;  %v1054_v3 = vsel %vm668_vm0, %v1051_v10, %v1053_v14  ;;  %v1413_v33 = vsel %vm1399_vm3, %v1410_v15, %v1412_v18  ;;  %v1414_v8 = vrot.slane %v5619_v40, 3 }
  0xa3   : > { %v1123_v6 = vpack.c.bf16 %v1054_v3, %v1052_v4  ;;  %v1482_v19 = vpack.c.bf16 %v1413_v33, %v1411_v32  ;;  %v1418_v40 = vsel %vm1399_vm3, %v1415_v21, %v1417_v22  ;;  %v1067_v63 = vrot.slane %v5719_v28, 2 }
  0xa4   : > { %v1416_v34 = vsel %vm1399_vm3, %v1414_v8, %v1415_v21  ;;  %v1425_v10 = vsel %vm1399_vm3, %v1422_v47, %v1424_v17  ;;  %v1427_v14 = vsel %vm1399_vm3, %v1424_v17, %v1426_v23  ;;  %v1069_v4 = vrot.slane %v5732_v37, 2 }
  0xa5   : > { %1931 = vmatpush1.bf16.msra.mxu0 %v5111_v57  ;;  %v1066_v57 = vsel %vm668_vm0, %v1063_v42, %v1065_v61  ;;  %v1485_v18 = vpack.c.bf16 %v1427_v14, %v1425_v10  ;;  %v1070_v3 = vrot.slane %v5735_v38, 2  ;;  %v1072_v32 = vrot.slane %v5738_v39, 2 }
  0xa6   : > { %v1428_v33 = vrot.slane %v5732_v37, 3  ;;  %v1438_v58 = vrot.slane %v5770_v1, 3  ;;  %v1440_v59 = vrot.slane %v5775_v2, 3  ;;  %v1086_v10 = vrot.slane %v5793_v30, 2 }
  0xa7   : > { %v1442_v14 = vrot.slane %v5783_v9, 3 }
  0xa8   : > { %4660 = vmatmul.mubr.msk.bf16.gmra.mxu0 %vm631_vm2, %v1122_v26  ;;  %4681 = vmatmul.mubr.msk.bf16.gmra.mxu1 %vm631_vm2, %v1481_v5  ;;  %v1056_v26 = vrot.slane %v5624_v41, 2  ;;  %v1483_v41 = vpack.c.bf16 %v1418_v40, %v1416_v34  ;;  %v1068_v5 = vsel %vm668_vm0, %v1065_v61, %v1067_v63  ;;  %v1077_v34 = vrot.slane %v5758_v52, 2 }
  0xa9   : > { %1250 = vmatprep.mubr.bf16.mxu0 %v7617_v0  ;;  %1609 = vmatprep.mubr.bf16.mxu1 %v7617_v0  ;;  %v1126_v15 = vpack.c.bf16 %v1068_v5, %v1066_v57  ;;  %v1433_v40 = vrot.slane %v5750_v50, 3  ;;  %v1441_v63 = vsel %vm1399_vm3, %v1438_v58, %v1440_v59  ;;  %v1083_v57 = vrot.slane %v5783_v9, 2 }
  0xaa   : > { %v1057_v25 = vsel %vm668_vm0, %v1055_v20, %v1056_v26  ;;  %v1059_v31 = vsel %vm668_vm0, %v1056_v26, %v1058_v24  ;;  %v1071_v20 = vsel %vm668_vm0, %v1069_v4, %v1070_v3  ;;  %v1073_v26 = vsel %vm668_vm0, %v1070_v3, %v1072_v32 }
  0xab   : > { %v1124_v35 = vpack.c.bf16 %v1059_v31, %v1057_v25  ;;  %v1127_v21 = vpack.c.bf16 %v1073_v26, %v1071_v20  ;;  %v1074_v25 = vrot.slane %v5750_v50, 2  ;;  %v1076_v31 = vrot.slane %v5755_v51, 2 }
  0xac   : > { %v1084_v5 = vrot.slane %v5790_v29, 2  ;;  %v1088_v20 = vrot.slane %v5817_v11, 2  ;;  %v1090_v26 = vrot.slane %v5820_v12, 2 }
  0xad   : > { %v1075_v44 = vsel %vm668_vm0, %v1072_v32, %v1074_v25  ;;  %v1078_v36 = vsel %vm668_vm0, %v1076_v31, %v1077_v34 }
  0xae   : > { %v1128_v46 = vpack.c.bf16 %v1078_v36, %v1075_v44  ;;  %v1085_v4 = vsel %vm668_vm0, %v1083_v57, %v1084_v5  ;;  %v1087_v3 = vsel %vm668_vm0, %v1084_v5, %v1086_v10  ;;  %v1089_v25 = vsel %vm668_vm0, %v1086_v10, %v1088_v20 }
  0xaf   : > { %v1093_v44 = vrot.slane %v5839_v7, 2  ;;  %v1095_v36 = vrot.slane %v5842_v16, 2 }
  0xb0   : > { %4661 = vmatmul.mubr.msk.bf16.gmra.mxu0 %vm631_vm2, %v1123_v6  ;;  %4682 = vmatmul.mubr.msk.bf16.gmra.mxu1 %vm631_vm2, %v1482_v19  ;;  %v1429_v6 = vrot.slane %v5735_v38, 3  ;;  %v1431_v19 = vrot.slane %v5738_v39, 3 }
  0xb1   : > { %1260 = vmatprep.mubr.bf16.mxu0 %v7617_v0  ;;  %1619 = vmatprep.mubr.bf16.mxu1 %v7617_v0 }
  0xb2   : > { %v1430_v24 = vsel %vm1399_vm3, %v1428_v33, %v1429_v6  ;;  %v1432_v8 = vsel %vm1399_vm3, %v1429_v6, %v1431_v19  ;;  %v1434_v42 = vsel %vm1399_vm3, %v1431_v19, %v1433_v40  ;;  %v1130_v6 = vpack.c.bf16 %v1087_v3, %v1085_v4 }
  0xb3   : > { %v1486_v22 = vpack.c.bf16 %v1432_v8, %v1430_v24  ;;  %v1091_v24 = vrot.slane %v5823_v53, 2  ;;  %v1447_v8 = vrot.slane %v5817_v11, 3 }
  0xb5   : > { %v1092_v31 = vsel %vm668_vm0, %v1090_v26, %v1091_v24 }
  0xb8   : > { %4662 = vmatmul.mubr.msk.bf16.gmra.mxu0 %vm631_vm2, %v1124_v35  ;;  %4683 = vmatmul.mubr.msk.bf16.gmra.mxu1 %vm631_vm2, %v1483_v41  ;;  %v1435_v35 = vrot.slane %v5755_v51, 3  ;;  %v1436_v41 = vrot.slane %v5758_v52, 3 }
  0xb9   : > { %1270 = vmatprep.mubr.bf16.mxu0 %v7617_v0  ;;  %1629 = vmatprep.mubr.bf16.mxu1 %v7617_v0 }
  0xba   : > { %v1437_v45 = vsel %vm1399_vm3, %v1435_v35, %v1436_v41  ;;  %v1439_v61 = vsel %vm1399_vm3, %v1436_v41, %v1438_v58  ;;  %v1131_v35 = vpack.c.bf16 %v1092_v31, %v1089_v25 }
  0xbb   : > { %v1487_v47 = vpack.c.bf16 %v1437_v45, %v1434_v42  ;;  %v1488_v23 = vpack.c.bf16 %v1441_v63, %v1439_v61  ;;  %v1452_v42 = vrot.slane %v5839_v7, 3  ;;  %v1454_v45 = vrot.slane %v5842_v16, 3  ;;  %v5283_v61 = vld [vmem:[%s5543_s14 + $0x20] sm:$0xff] }
  0xbc   : > { %v1766_v63 = vrot.slane %v5283_v61, 4 }
  0xc0   : > { %4663 = vmatmul.mubr.msk.bf16.gmra.mxu0 %vm631_vm2, %v1125_v62  ;;  %4684 = vmatmul.mubr.msk.bf16.gmra.mxu1 %vm631_vm2, %v1484_v60  ;;  %v1080_v62 = vsel %vm668_vm0, %v1077_v34, %v1079_v55  ;;  %v1082_v60 = vsel %vm668_vm0, %v1079_v55, %v1081_v56  ;;  %v1455_v56 = vsel %vm1399_vm3, %v1452_v42, %v1454_v45  ;;  %v5288_v45 = vld [vmem:[%s5543_s14 + $0x48] sm:$0xff] }
  0xc1   : > { %1280 = vmatprep.mubr.bf16.mxu0 %v7617_v0  ;;  %1639 = vmatprep.mubr.bf16.mxu1 %v7617_v0  ;;  %v1129_v17 = vpack.c.bf16 %v1082_v60, %v1080_v62  ;;  %v5282_v62 = vld [vmem:[%s5543_s14 + $0x18] sm:$0xf] }
  0xc2   : > { %v1764_v60 = vrot.slane %v5282_v62, 4 }
  0xc8   : > { %4664 = vmatmul.mubr.msk.bf16.gmra.mxu0 %vm631_vm2, %v1126_v15  ;;  %4685 = vmatmul.mubr.msk.bf16.gmra.mxu1 %vm631_vm2, %v1485_v18  ;;  %v1443_v15 = vrot.slane %v5790_v29, 3  ;;  %v1445_v18 = vrot.slane %v5793_v30, 3 }
  0xc9   : > { %1290 = vmatprep.mubr.bf16.mxu0 %v7617_v0  ;;  %1649 = vmatprep.mubr.bf16.mxu1 %v7617_v0 }
  0xca   : > { %v1444_v32 = vsel %vm1399_vm3, %v1442_v14, %v1443_v15  ;;  %v1446_v33 = vsel %vm1399_vm3, %v1443_v15, %v1445_v18  ;;  %v1448_v34 = vsel %vm1399_vm3, %v1445_v18, %v1447_v8  ;;  %v1765_v14 = vsel %vm1758_vm4, %v1762_v43, %v1764_v60 }
  0xcb   : > { %v1489_v19 = vpack.c.bf16 %v1446_v33, %v1444_v32 }
  0xd0   : > { %4665 = vmatmul.mubr.msk.bf16.gmra.mxu0 %vm631_vm2, %v1127_v21  ;;  %4686 = vmatmul.mubr.msk.bf16.gmra.mxu1 %vm631_vm2, %v1486_v22  ;;  %v1449_v21 = vrot.slane %v5820_v12, 3  ;;  %v1450_v22 = vrot.slane %v5823_v53, 3 }
  0xd1   : > { %1300 = vmatprep.mubr.bf16.mxu0 %v7617_v0  ;;  %1659 = vmatprep.mubr.bf16.mxu1 %v7617_v0 }
  0xd2   : > { %v1451_v40 = vsel %vm1399_vm3, %v1449_v21, %v1450_v22  ;;  %v1453_v55 = vsel %vm1399_vm3, %v1450_v22, %v1452_v42 }
  0xd3   : > { %v1490_v41 = vpack.c.bf16 %v1451_v40, %v1448_v34  ;;  %v1491_v59 = vpack.c.bf16 %v1455_v56, %v1453_v55 }
  0xd8   : > { %4666 = vmatmul.mubr.msk.bf16.gmra.mxu0 %vm631_vm2, %v1128_v46  ;;  %4687 = vmatmul.mubr.msk.bf16.gmra.mxu1 %vm631_vm2, %v1487_v47  ;;  %v1094_v46 = vsel %vm668_vm0, %v1091_v24, %v1093_v44  ;;  %v1096_v47 = vsel %vm668_vm0, %v1093_v44, %v1095_v36  ;;  %v5287_v36 = vld [vmem:[%s5543_s14 + $0x40] sm:$0xff] }
  0xd9   : > { %1310 = vmatprep.mubr.bf16.mxu0 %v7617_v0  ;;  %1669 = vmatprep.mubr.bf16.mxu1 %v7617_v0  ;;  %v1132_v58 = vpack.c.bf16 %v1096_v47, %v1094_v46  ;;  %v1773_v42 = vrot.slane %v5287_v36, 4  ;;  %v1774_v46 = vrot.slane %v5288_v45, 4  ;;  %v5289_v47 = vld [vmem:[%s5543_s14 + $0x50] sm:$0xff] }
  0xda   : > { %v1776_v55 = vrot.slane %v5289_v47, 4  ;;  %v1785_v47 = vrot.slane %v5719_v28, 4 }
  0xdb   : > { %v1775_v61 = vsel %vm1758_vm4, %v1773_v42, %v1774_v46 }
  0xe0   : > { %4667 = vmatmul.mubr.msk.bf16.gmra.mxu0 %vm631_vm2, %v1129_v17  ;;  %4688 = vmatmul.mubr.msk.bf16.gmra.mxu1 %vm631_vm2, %v1488_v23  ;;  %v5284_v17 = vld [vmem:[%s5543_s14 + $0x28] sm:$0xff] }
  0xe1   : > { %1320 = vmatprep.mubr.bf16.mxu0 %v7617_v0  ;;  %1679 = vmatprep.mubr.bf16.mxu1 %v7617_v0  ;;  %v1767_v23 = vrot.slane %v5284_v17, 4 }
  0xe3   : > { %v1768_v15 = vsel %vm1758_vm4, %v1766_v63, %v1767_v23  ;;  %v1777_v63 = vsel %vm1758_vm4, %v1774_v46, %v1776_v55  ;;  %v1783_v46 = vrot.slane %v5716_v27, 4 }
  0xe8   : > { %4668 = vmatmul.mubr.msk.bf16.gmra.mxu0 %vm631_vm2, %v1130_v6  ;;  %4689 = vmatmul.mubr.msk.bf16.gmra.mxu1 %vm631_vm2, %v1489_v19  ;;  %v1840_v6 = vpack.c.bf16 %v1768_v15, %v1765_v14  ;;  %v5286_v19 = vld [vmem:[%s5543_s14 + $0x38] sm:$0xf]  ;;  %v1842_v15 = vpack.c.bf16 %v1777_v63, %v1775_v61 }
  0xe9   : > { %1330 = vmatprep.mubr.bf16.mxu0 %v7617_v0  ;;  %1689 = vmatprep.mubr.bf16.mxu1 %v7617_v0  ;;  %v1771_v20 = vrot.slane %v5286_v19, 4 }
  0xf0   : > { %4669 = vmatmul.mubr.msk.bf16.gmra.mxu0 %vm631_vm2, %v1131_v35  ;;  %4690 = vmatmul.mubr.msk.bf16.gmra.mxu1 %vm631_vm2, %v1490_v41 }
  0xf1   : > { %1340 = vmatprep.mubr.bf16.mxu0 %v7617_v0  ;;  %1699 = vmatprep.mubr.bf16.mxu1 %v7617_v0 }
  0xf8   : > { %4670 = vmatmul.mubr.msk.bf16.gmra.mxu0 %vm631_vm2, %v1132_v58  ;;  %4691 = vmatmul.mubr.msk.bf16.gmra.mxu1 %vm631_vm2, %v1491_v59 }
  0xf9   : > { %1948 = vmatprep.mubr.bf16.mxu0 %v7617_v0  ;;  %2781 = vmatprep.mubr.bf16.mxu1 %v7617_v0 }
 0x100   : > { %v709_v57 = vpop.f32.mrf.mxu0  ;;  %v922_v5 = vpop.f32.mrf.mxu1  ;;  %4701 = vmatmul.mubr.msk.bf16.vlgmr.msra.gmra.mxu0 %vm631_vm2, %v1839_v54  ;;  %v1769_v54 = vrot.slane %v5285_v49, 4  ;;  %v5292_v49 = vld [vmem:[%s5543_s14 + $0x68] sm:$0xff] }
 0x101   : > { %v6041_v10 = vadd.f32 %v922_v5, %v709_v57  ;;  %1958 = vmatprep.mubr.bf16.mxu0 %v7617_v0 }
 0x102   : > { %v711_v18 = vpop.f32.mrf.mxu0  ;;  %v924_v4 = vpop.f32.mrf.mxu1  ;;  %v1770_v21 = vsel %vm1758_vm4, %v1767_v23, %v1769_v54  ;;  %v1772_v22 = vsel %vm1758_vm4, %v1769_v54, %v1771_v20  ;;  %v1781_v54 = vrot.slane %v5292_v49, 4  ;;  %v1790_v49 = vrot.slane %v5738_v39, 4 }
 0x103   : > { %v6048_v3 = vadd.f32 %v924_v4, %v711_v18  ;;  %v1841_v41 = vpack.c.bf16 %v1772_v22, %v1770_v21  ;;  %v5290_v4 = vld [vmem:[%s5543_s14 + $0x58] sm:$0xf] }
 0x104   : > { %v713_v32 = vpop.f32.mrf.mxu0  ;;  %v926_v33 = vpop.f32.mrf.mxu1 }
 0x105   : > { %v6050_v48 = vadd.f32 %v926_v33, %v713_v32  ;;  %v1778_v32 = vrot.slane %v5290_v4, 4  ;;  %v5291_v33 = vld [vmem:[%s5543_s14 + $0x60] sm:$0xff] }
 0x106   : > { %v6054_v26 = vpop.f32.mrf.mxu0  ;;  %v6056_v13 = vpop.f32.mrf.mxu1 }
 0x107   : > { %v1779_v22 = vsel %vm1758_vm4, %v1776_v55, %v1778_v32 }
 0x108   : > { %v719_v43 = vpop.f32.mrf.mxu0  ;;  %v932_v24 = vpop.f32.mrf.mxu1  ;;  %4702 = vmatmul.mubr.msk.bf16.gmra.mxu0 %vm631_vm2, %v1840_v6  ;;  %v1780_v6 = vrot.slane %v5291_v33, 4  ;;  %v1787_v33 = vrot.slane %v5732_v37, 4 }
 0x109   : > { %v6059_v8 = vadd.f32 %v932_v24, %v719_v43  ;;  %1968 = vmatprep.mubr.bf16.mxu0 %v7617_v0 }
 0x10a   : > { %v721_v25 = vpop.f32.mrf.mxu0  ;;  %v934_v31 = vpop.f32.mrf.mxu1 }
 0x10b   : > { %v6064_v34 = vadd.f32 %v934_v31, %v721_v25  ;;  %v1782_v25 = vsel %vm1758_vm4, %v1780_v6, %v1781_v54  ;;  %v1788_v6 = vrot.slane %v5735_v38, 4 }
 0x10c   : > { %v723_v40 = vpop.f32.mrf.mxu0  ;;  %v936_v35 = vpop.f32.mrf.mxu1  ;;  %v1843_v42 = vpack.c.bf16 %v1782_v25, %v1779_v22 }
 0x10d   : > { %v6066_v44 = vadd.f32 %v936_v35, %v723_v40  ;;  %v1791_v37 = vsel %vm1758_vm4, %v1788_v6, %v1790_v49 }
 0x10e   : > { %v6071_v56 = vpop.f32.mrf.mxu0  ;;  %v6073_v58 = vpop.f32.mrf.mxu1 }
 0x110   : > { %v729_v59 = vpop.f32.mrf.mxu0  ;;  %v942_v62 = vpop.f32.mrf.mxu1  ;;  %4703 = vmatmul.mubr.msk.bf16.gmra.mxu0 %vm631_vm2, %v1841_v41 }
 0x111   : > { %v6076_v60 = vadd.f32 %v942_v62, %v729_v59  ;;  %1978 = vmatprep.mubr.bf16.mxu0 %v7617_v0 }
 0x112   : > { %v731_v17 = vpop.f32.mrf.mxu0  ;;  %v944_v23 = vpop.f32.mrf.mxu1 }
 0x113   : > { %v6081_v57 = vadd.f32 %v944_v23, %v731_v17  ;;  %v1784_v17 = vsel %vm1758_vm4, %v1781_v54, %v1783_v46  ;;  %v1786_v23 = vsel %vm1758_vm4, %v1783_v46, %v1785_v47  ;;  %v1792_v47 = vrot.slane %v5750_v50, 4 }
 0x114   : > { %v733_v5 = vpop.f32.mrf.mxu0  ;;  %v946_v14 = vpop.f32.mrf.mxu1  ;;  %v1844_v4 = vpack.c.bf16 %v1786_v23, %v1784_v17 }
 0x115   : > { %v6083_v18 = vadd.f32 %v946_v14, %v733_v5 }
 0x116   : > { %v6088_v19 = vpop.f32.mrf.mxu0  ;;  %v6090_v20 = vpop.f32.mrf.mxu1 }
 0x118   : > { %v739_v43 = vpop.f32.mrf.mxu0  ;;  %v952_v24 = vpop.f32.mrf.mxu1  ;;  %4704 = vmatmul.mubr.msk.bf16.gmra.mxu0 %vm631_vm2, %v1842_v15 }
 0x119   : > { %v6093_v21 = vadd.f32 %v952_v24, %v739_v43  ;;  %1988 = vmatprep.mubr.bf16.mxu0 %v7617_v0 }
 0x11a   : > { %v741_v31 = vpop.f32.mrf.mxu0  ;;  %v954_v40 = vpop.f32.mrf.mxu1 }
 0x11b   : > { %v6098_v35 = vadd.f32 %v954_v40, %v741_v31  ;;  %v1789_v31 = vsel %vm1758_vm4, %v1787_v33, %v1788_v6 }
 0x11c   : > { %v743_v41 = vpop.f32.mrf.mxu0  ;;  %v956_v36 = vpop.f32.mrf.mxu1 }
 0x11d   : > { %v6100_v45 = vadd.f32 %v956_v36, %v743_v41 }
 0x11e   : > { %v6104_v59 = vpop.f32.mrf.mxu0  ;;  %v6106_v62 = vpop.f32.mrf.mxu1 }
 0x120   : > { %v749_v55 = vpop.f32.mrf.mxu0  ;;  %v962_v61 = vpop.f32.mrf.mxu1  ;;  %4705 = vmatmul.mubr.msk.bf16.gmra.mxu0 %vm631_vm2, %v1843_v42  ;;  %v1845_v42 = vpack.c.bf16 %v1791_v37, %v1789_v31  ;;  %v1797_v31 = vrot.slane %v5770_v1, 4  ;;  %v1799_v37 = vrot.slane %v5775_v2, 4 }
 0x121   : > { %v6109_v63 = vadd.f32 %v962_v61, %v749_v55  ;;  %1998 = vmatprep.mubr.bf16.mxu0 %v7617_v0  ;;  %v1794_v55 = vrot.slane %v5755_v51, 4  ;;  %v1795_v61 = vrot.slane %v5758_v52, 4 }
 0x122   : > { %v751_v5 = vpop.f32.mrf.mxu0  ;;  %v964_v27 = vpop.f32.mrf.mxu1 }
 0x123   : > { %v6114_v14 = vadd.f32 %v964_v27, %v751_v5  ;;  %v1796_v50 = vsel %vm1758_vm4, %v1794_v55, %v1795_v61 }
 0x124   : > { %v753_v28 = vpop.f32.mrf.mxu0  ;;  %v966_v15 = vpop.f32.mrf.mxu1 }
 0x125   : > { %v6116_v32 = vadd.f32 %v966_v15, %v753_v28  ;;  %v1793_v15 = vsel %vm1758_vm4, %v1790_v49, %v1792_v47  ;;  %v1800_v47 = vsel %vm1758_vm4, %v1797_v31, %v1799_v37 }
 0x126   : > { %v6121_v43 = vpop.f32.mrf.mxu0  ;;  %v6123_v54 = vpop.f32.mrf.mxu1 }
 0x128   : > { %v759_v24 = vpop.f32.mrf.mxu0  ;;  %v972_v22 = vpop.f32.mrf.mxu1  ;;  %4706 = vmatmul.mubr.msk.bf16.gmra.mxu0 %vm631_vm2, %v1844_v4 }
 0x129   : > { %v6126_v25 = vadd.f32 %v972_v22, %v759_v24  ;;  %2008 = vmatprep.mubr.bf16.mxu0 %v7617_v0  ;;  %v1846_v24 = vpack.c.bf16 %v1796_v50, %v1793_v15  ;;  %v1801_v50 = vrot.slane %v5783_v9, 4 }
 0x12a   : > { %v761_v40 = vpop.f32.mrf.mxu0  ;;  %v974_v38 = vpop.f32.mrf.mxu1 }
 0x12b   : > { %v6131_v41 = vadd.f32 %v974_v38, %v761_v40 }
 0x12c   : > { %v763_v39 = vpop.f32.mrf.mxu0  ;;  %v976_v36 = vpop.f32.mrf.mxu1 }
 0x12d   : > { %v6133_v46 = vadd.f32 %v976_v36, %v763_v39 }
 0x12e   : > { %v6138_v17 = vpop.f32.mrf.mxu0  ;;  %v6140_v23 = vpop.f32.mrf.mxu1 }
 0x130   : > { %v769_v5 = vpop.f32.mrf.mxu0  ;;  %v982_v27 = vpop.f32.mrf.mxu1  ;;  %4707 = vmatmul.mubr.msk.bf16.gmra.mxu0 %vm631_vm2, %v1845_v42  ;;  %v1798_v42 = vsel %vm1758_vm4, %v1795_v61, %v1797_v31  ;;  %v5114_v61 = vld [vmem:[%s7608_s3 + $0xf0] ss:$8 sps:$4 sm:$0xff]  }
 0x131   : > { %v6143_v28 = vadd.f32 %v982_v27, %v769_v5  ;;  %2018 = vmatprep.mubr.bf16.mxu0 %v7617_v0  ;;  %v1847_v15 = vpack.c.bf16 %v1800_v47, %v1798_v42 }
 0x132   : > { %v771_v4 = vpop.f32.mrf.mxu0  ;;  %v984_v51 = vpop.f32.mrf.mxu1 }
 0x133   : > { %v6148_v33 = vadd.f32 %v984_v51, %v771_v4  ;;  %v1802_v51 = vrot.slane %v5790_v29, 4 }
 0x134   : > { %v773_v52 = vpop.f32.mrf.mxu0  ;;  %v986_v6 = vpop.f32.mrf.mxu1 }
 0x135   : > { %v6150_v22 = vadd.f32 %v986_v6, %v773_v52  ;;  %v1804_v52 = vrot.slane %v5793_v30, 4  ;;  %v5116_v6 = vld [vmem:[%s7608_s3 + $0xf4] ss:$8 sps:$4 sm:$0xff]   ;;  %v1803_v30 = vsel %vm1758_vm4, %v1801_v50, %v1802_v51 }
 0x136   : > { %v6154_v40 = vpop.f32.mrf.mxu0  ;;  %v6156_v38 = vpop.f32.mrf.mxu1  ;;  %2749 = vmatprep.subr.bf16.mxu1 %v5116_v6  ;;  %v1809_v6 = vrot.slane %v5823_v53, 4  ;;  %v5122_v53 = vld [vmem:[%s7608_s3 + $0x1f4] ss:$8 sps:$4 sm:$0xff]  }
 0x137   : > { %2750 = vmatpush1.bf16.msra.mxu1 %v5114_v61  ;;  %v1808_v61 = vrot.slane %v5820_v12, 4  ;;  %3416 = vmatprep.subr.bf16.mxu0 %v5122_v53 }
 0x138   : > { %v779_v49 = vpop.f32.mrf.mxu0  ;;  %v992_v39 = vpop.f32.mrf.mxu1  ;;  %4708 = vmatmul.mubr.msk.bf16.gmra.mxu0 %vm631_vm2, %v1846_v24 }
 0x139   : > { %v6159_v36 = vadd.f32 %v992_v39, %v779_v49  ;;  %2028 = vmatprep.mubr.bf16.mxu0 %v7617_v0  ;;  %v1805_v49 = vsel %vm1758_vm4, %v1802_v51, %v1804_v52 }
 0x13a   : > { %v781_v55 = vpop.f32.mrf.mxu0  ;;  %v994_v1 = vpop.f32.mrf.mxu1 }
 0x13b   : > { %v6164_v5 = vadd.f32 %v994_v1, %v781_v55 }
 0x13c   : > { %v783_v2 = vpop.f32.mrf.mxu0  ;;  %v996_v27 = vpop.f32.mrf.mxu1 }
 0x13d   : > { %v6167_v4 = vadd.f32 %v996_v27, %v783_v2  ;;  %v1848_v2 = vpack.c.bf16 %v1805_v49, %v1803_v30 }
 0x13e   : > { %v6177_v24 = vpop.f32.mrf.mxu0  ;;  %v6179_v31 = vpop.f32.mrf.mxu1 }
 0x140   : > { %v789_v9 = vpop.f32.mrf.mxu0  ;;  %v1002_v37 = vpop.f32.mrf.mxu1  ;;  %4709 = vmatmul.mubr.msk.bf16.gmra.mxu0 %vm631_vm2, %v1847_v15  ;;  %v1806_v15 = vrot.slane %v5817_v11, 4  ;;  %v1810_v11 = vsel %vm1758_vm4, %v1808_v61, %v1809_v6 }
 0x141   : > { %v6182_v29 = vadd.f32 %v1002_v37, %v789_v9  ;;  %2038 = vmatprep.mubr.bf16.mxu0 %v7617_v0 }
 0x142   : > { %v791_v39 = vpop.f32.mrf.mxu0  ;;  %v1004_v42 = vpop.f32.mrf.mxu1  ;;  %v1807_v30 = vsel %vm1758_vm4, %v1804_v52, %v1806_v15  ;;  %v1811_v52 = vrot.slane %v5839_v7, 4  ;;  %v1813_v15 = vrot.slane %v5842_v16, 4  ;;  %v5125_v7 = vld [vmem:[%s7608_s3 + $0x1e4] ss:$8 sps:$4 sm:$0xff]  }
 0x143   : > { %v6187_v47 = vadd.f32 %v1004_v42, %v791_v39 }
 0x144   : > { %v793_v55 = vpop.f32.mrf.mxu0  ;;  %v1006_v1 = vpop.f32.mrf.mxu1  ;;  %v1812_v53 = vsel %vm1758_vm4, %v1809_v6, %v1811_v52  ;;  %v5128_v6 = vld [vmem:[%s7608_s3 + $0xd4] ss:$8 sps:$4 sm:$0xff]  }
 0x145   : > { %v6189_v27 = vadd.f32 %v1006_v1, %v793_v55 }
 0x146   : > { %v6194_v9 = vpop.f32.mrf.mxu0  ;;  %v6196_v50 = vpop.f32.mrf.mxu1 }
 0x147   : > { %7628 = vst [vmem:[#allocation9_spill] sm:$0xff] %v6196_v50  ;;  %v1849_v50 = vpack.c.bf16 %v1810_v11, %v1807_v30  ;;  %v5117_v30 = vld [vmem:[%s7608_s3 + $0xe0] ss:$8 sps:$4 sm:$0xff]  }
 0x148   : > { %v799_v51 = vpop.f32.mrf.mxu0  ;;  %v1012_v37 = vpop.f32.mrf.mxu1  ;;  %4710 = vmatmul.mubr.msk.bf16.gmra.mxu0 %vm631_vm2, %v1848_v2  ;;  %v5120_v2 = vld [vmem:[%s7608_s3 + $0x1f0] ss:$8 sps:$4 sm:$0xff]  }
 0x149   : > { %v6199_v39 = vadd.f32 %v1012_v37, %v799_v51  ;;  %2048 = vmatprep.mubr.bf16.mxu0 %v7617_v0  ;;  %3417 = vmatpush1.bf16.msra.mxu0 %v5120_v2 }
 0x14a   : > { %v801_v49 = vpop.f32.mrf.mxu0  ;;  %v1014_v12 = vpop.f32.mrf.mxu1  ;;  %3418 = vmatprep.subr.bf16.mxu0 %v5125_v7  ;;  %v5129_v7 = vld [vmem:[%s7608_s3 + $0x1d0] ss:$8 sps:$4 sm:$0xff]  }
 0x14b   : > { %v6204_v42 = vadd.f32 %v1014_v12, %v801_v49  ;;  %v5119_v49 = vld [vmem:[%s7608_s3 + $0xe4] ss:$8 sps:$4 sm:$0xff]  }
 0x14c   : > { %v803_v55 = vpop.f32.mrf.mxu0  ;;  %v1016_v1 = vpop.f32.mrf.mxu1  ;;  %2751 = vmatprep.subr.bf16.mxu1 %v5119_v49 }
 0x14d   : > { %v6212_v51 = vadd.f32 %v1016_v1, %v803_v55  ;;  %v1814_v55 = vsel %vm1758_vm4, %v1811_v52, %v1813_v15  ;;  %2752 = vmatpush1.bf16.msra.mxu1 %v5117_v30  ;;  %v5123_v1 = vld [vmem:[%s7608_s3 + $0x1e0] ss:$8 sps:$4 sm:$0xff]   ;;  %v5131_v52 = vld [vmem:[%s7608_s3 + $0x1d4] ss:$8 sps:$4 sm:$0xff]   ;;  %v5126_v30 = vld [vmem:[%s7608_s3 + $0xd0] ss:$8 sps:$4 sm:$0xff]  }
 0x14e   : > { %v6216_v61 = vpop.f32.mrf.mxu0  ;;  %v6218_v37 = vpop.f32.mrf.mxu1  ;;  %3419 = vmatpush1.bf16.msra.mxu0 %v5123_v1  ;;  %2753 = vmatprep.subr.bf16.mxu1 %v5128_v6 }
 0x14f   : > { %7629 = vst [vmem:[#allocation10_spill] sm:$0xff] %v6216_v61  ;;  %7630 = vst [vmem:[#allocation11_spill] sm:$0xff] %v6218_v37  ;;  %3420 = vmatprep.subr.bf16.mxu0 %v5131_v52 }
 0x150   : > { %v809_v11 = vpop.f32.mrf.mxu0  ;;  %v1022_v12 = vpop.f32.mrf.mxu1  ;;  %4711 = vmatmul.mubr.msk.bf16.gmra.mxu0 %vm631_vm2, %v1849_v50 }
 0x151   : > { %v6230_v16 = vadd.f32 %v1022_v12, %v809_v11  ;;  %2058 = vmatprep.mubr.bf16.mxu0 %v7617_v0  ;;  %v1850_v12 = vpack.c.bf16 %v1814_v55, %v1812_v53  ;;  %2754 = vmatpush1.bf16.msra.mxu1 %v5126_v30  ;;  %v5132_v30 = vld [vmem:[%s7608_s3 + $0xc0] ss:$8 sps:$4 sm:$0xff]  }
 0x152   : > { %v811_v2 = vpop.f32.mrf.mxu0  ;;  %v1024_v50 = vpop.f32.mrf.mxu1  ;;  %3421 = vmatpush1.bf16.msra.mxu0 %v5129_v7 }
 0x153   : > { %v6238_v49 = vadd.f32 %v1024_v50, %v811_v2  ;;  %v5134_v50 = vld [vmem:[%s7608_s3 + $0xc4] ss:$8 sps:$4 sm:$0xff]  }
 0x154   : > { %v813_v37 = vpop.f32.mrf.mxu0  ;;  %v1026_v11 = vpop.f32.mrf.mxu1  ;;  %2755 = vmatprep.subr.bf16.mxu1 %v5134_v50  ;;  %v5138_v50 = vld [vmem:[%s7608_s3 + $0xb0] ss:$8 sps:$4 sm:$0xff]  }
 0x155   : > { %v6246_v15 = vadd.f32 %v1026_v11, %v813_v37  ;;  %v5137_v11 = vld [vmem:[%s7608_s3 + $0x1c4] ss:$8 sps:$4 sm:$0xff]   ;;  %2756 = vmatpush1.bf16.msra.mxu1 %v5132_v30 }
 0x156   : > { %v6254_v1 = vpop.f32.mrf.mxu0  ;;  %v6256_v53 = vpop.f32.mrf.mxu1  ;;  %3422 = vmatprep.subr.bf16.mxu0 %v5137_v11  ;;  %v5141_v11 = vld [vmem:[%s7608_s3 + $0x1b0] ss:$8 sps:$4 sm:$0xff]  }
 0x157   : > { %7631 = vst [vmem:[#allocation12_spill] sm:$0xff] %v6254_v1  ;;  %7632 = vst [vmem:[#allocation13_spill] sm:$0xff] %v6256_v53  ;;  %v5143_v1 = vld [vmem:[%s7608_s3 + $0x1b4] ss:$8 sps:$4 sm:$0xff]  }
 0x158   : > { %v819_v55 = vpop.f32.mrf.mxu0  ;;  %v1032_v2 = vpop.f32.mrf.mxu1  ;;  %4712 = vmatmul.mubr.msk.bf16.gmra.mxu0 %vm631_vm2, %v1850_v12  ;;  %v5135_v12 = vld [vmem:[%s7608_s3 + $0x1c0] ss:$8 sps:$4 sm:$0xff]  }
 0x159   : > { %v6259_v37 = vadd.f32 %v1032_v2, %v819_v55  ;;  %3448 = vmatprep.mubr.bf16.mxu0 %v7617_v0  ;;  %3423 = vmatpush1.bf16.msra.mxu0 %v5135_v12  ;;  %v5140_v0 = vld [vmem:[%s7608_s3 + $0xb4] ss:$8 sps:$4 sm:$0xff]  }
 0x15a   : > { %v821_v6 = vpop.f32.mrf.mxu0  ;;  %v1034_v52 = vpop.f32.mrf.mxu1  ;;  %2757 = vmatprep.subr.bf16.mxu1 %v5140_v0  ;;  %3424 = vmatprep.subr.bf16.mxu0 %v5143_v1  ;;  %v5144_v0 = vld [vmem:[%s7608_s3 + $0xa0] ss:$8 sps:$4 sm:$0xff]  }
 0x15b   : > { %v6274_v7 = vadd.f32 %v1034_v52, %v821_v6  ;;  %2758 = vmatpush1.bf16.msra.mxu1 %v5138_v50 }
 0x15c   : > { %v823_v55 = vpop.f32.mrf.mxu0  ;;  %v1036_v2 = vpop.f32.mrf.mxu1 }
 0x15d   : > { %v6276_v53 = vadd.f32 %v1036_v2, %v823_v55  ;;  %3425 = vmatpush1.bf16.msra.mxu0 %v5141_v11  ;;  %v5146_v55 = vld [vmem:[%s7608_s3 + $0xa4] ss:$8 sps:$4 sm:$0xff]  }
 0x15e   : > { %v6284_v61 = vpop.f32.mrf.mxu0  ;;  %v6286_v6 = vpop.f32.mrf.mxu1  ;;  %v5149_v2 = vld [vmem:[%s7608_s3 + $0x1a4] ss:$8 sps:$4 sm:$0xff]   ;;  %2759 = vmatprep.subr.bf16.mxu1 %v5146_v55  ;;  %v5150_v55 = vld [vmem:[%s7608_s3 + $0x90] ss:$8 sps:$4 sm:$0xff]  }
 0x15f   : > { %7633 = vst [vmem:[#allocation14_spill] sm:$0xff] %v6276_v53  ;;  %7634 = vst [vmem:[#allocation15_spill] sm:$0xff] %v6286_v6  ;;  %3426 = vmatprep.subr.bf16.mxu0 %v5149_v2  ;;  %2760 = vmatpush1.bf16.msra.mxu1 %v5144_v0 }
 0x160   : > { %v1232_v52 = vpop.f32.mrf.mxu0  ;;  %v6294_v30 = vpop.f32.mrf.mxu1 }
 0x161   : > { %7635 = vst [vmem:[#allocation16_spill] sm:$0xff] %v6294_v30  ;;  %v6297_v12 = vadd.f32 %v1232_v52, %v6041_v10  ;;  %v5147_v10 = vld [vmem:[%s7608_s3 + $0x1a0] ss:$8 sps:$4 sm:$0xff]   ;;  %v5155_v30 = vld [vmem:[%s7608_s3 + $0x194] ss:$8 sps:$4 sm:$0xff]  }
 0x162   : > { %v1234_v53 = vpop.f32.mrf.mxu0  ;;  %v6305_v6 = vpop.f32.mrf.mxu1  ;;  %3427 = vmatpush1.bf16.msra.mxu0 %v5147_v10 }
 0x163   : > { %7636 = vst [vmem:[#allocation17_spill] sm:$0xff] %v6305_v6  ;;  %v6314_v1 = vadd.f32 %v1234_v53, %v6048_v3  ;;  %v5152_v6 = vld [vmem:[%s7608_s3 + $0x94] ss:$8 sps:$4 sm:$0xff]   ;;  %3428 = vmatprep.subr.bf16.mxu0 %v5155_v30 }
 0x164   : > { %v1236_v50 = vpop.f32.mrf.mxu0  ;;  %v6316_v11 = vpop.f32.mrf.mxu1  ;;  %2761 = vmatprep.subr.bf16.mxu1 %v5152_v6  ;;  %v5156_v6 = vld [vmem:[%s7608_s3 + $0x80] ss:$8 sps:$4 sm:$0xff]  }
 0x165   : > { %7637 = vst [vmem:[#allocation18_spill] sm:$0xff] %v6314_v1  ;;  %7638 = vst [vmem:[#allocation19_spill] sm:$0xff] %v6316_v11  ;;  %v6319_v52 = vadd.f32 %v1236_v50, %v6050_v48  ;;  %v5153_v48 = vld [vmem:[%s7608_s3 + $0x190] ss:$8 sps:$4 sm:$0xff]   ;;  %2762 = vmatpush1.bf16.msra.mxu1 %v5150_v55  ;;  %v5158_v50 = vld [vmem:[%s7608_s3 + $0x84] ss:$8 sps:$4 sm:$0xff]  }
 0x166   : > { %v6327_v3 = vpop.f32.mrf.mxu0  ;;  %v6329_v53 = vpop.f32.mrf.mxu1  ;;  %3429 = vmatpush1.bf16.msra.mxu0 %v5153_v48  ;;  %2763 = vmatprep.subr.bf16.mxu1 %v5158_v50 }
 0x167   : > { %7639 = vst [vmem:[#allocation20_spill] sm:$0xff] %v6319_v52  ;;  %7640 = vst [vmem:[#allocation21_spill] sm:$0xff] %v6329_v53  ;;  %v5161_v53 = vld [vmem:[%s7608_s3 + $0x184] ss:$8 sps:$4 sm:$0xff]  }
 0x168   : > { %v1242_v2 = vpop.f32.mrf.mxu0  ;;  %v6337_v0 = vpop.f32.mrf.mxu1  ;;  %3430 = vmatprep.subr.bf16.mxu0 %v5161_v53 }
 0x169   : > { %7641 = vst [vmem:[#allocation22_spill] sm:$0xff] %v6337_v0  ;;  %v6340_v10 = vadd.f32 %v1242_v2, %v6059_v8  ;;  %v5159_v8 = vld [vmem:[%s7608_s3 + $0x180] ss:$8 sps:$4 sm:$0xff]   ;;  %2764 = vmatpush1.bf16.msra.mxu1 %v5156_v6 }
 0x16a   : > { %v1244_v11 = vpop.f32.mrf.mxu0  ;;  %v6348_v52 = vpop.f32.mrf.mxu1  ;;  %3431 = vmatpush1.bf16.msra.mxu0 %v5159_v8 }
 0x16b   : > { %7642 = vst [vmem:[#allocation23_spill] sm:$0xff] %v6340_v10  ;;  %7643 = vst [vmem:[#allocation24_spill] sm:$0xff] %v6348_v52  ;;  %v6357_v30 = vadd.f32 %v1244_v11, %v6064_v34 }
 0x16c   : > { %v1246_v55 = vpop.f32.mrf.mxu0  ;;  %v6359_v48 = vpop.f32.mrf.mxu1 }
 0x16d   : > { %v6362_v2 = vadd.f32 %v1246_v55, %v6066_v44  ;;  %v949_v44 = vadd.f32 %v6090_v20, %v6088_v19  ;;  %v959_v20 = vadd.f32 %v6106_v62, %v6104_v59  ;;  %v969_v62 = vadd.f32 %v6123_v54, %v6121_v43 }
 0x16e   : > { %v6364_v52 = vpop.f32.mrf.mxu0  ;;  %v6366_v0 = vpop.f32.mrf.mxu1  ;;  %v979_v54 = vadd.f32 %v6140_v23, %v6138_v17  ;;  %v989_v23 = vadd.f32 %v6156_v38, %v6154_v40  ;;  %v999_v38 = vadd.f32 %v6179_v31, %v6177_v24 }
 0x16f   : > { %7644 = vst [vmem:[#allocation25_spill] sm:$0xff] %v6366_v0 }
 0x170   : > { %v1252_v10 = vpop.f32.mrf.mxu0  ;;  %v6368_v1 = vpop.f32.mrf.mxu1 }
 0x171   : > { %7645 = vst [vmem:[#allocation26_spill] sm:$0xff] %v6368_v1  ;;  %v6371_v34 = vadd.f32 %v1252_v10, %v6076_v60 }
 0x172   : > { %v1254_v11 = vpop.f32.mrf.mxu0  ;;  %v6373_v53 = vpop.f32.mrf.mxu1 }
 0x173   : > { %7646 = vst [vmem:[#allocation27_spill] sm:$0xff] %v6371_v34  ;;  %7647 = vst [vmem:[#allocation28_spill] sm:$0xff] %v6373_v53  ;;  %v6376_v50 = vadd.f32 %v1254_v11, %v6081_v57 }
 0x174   : > { %v1256_v6 = vpop.f32.mrf.mxu0  ;;  %v6378_v8 = vpop.f32.mrf.mxu1 }
 0x175   : > { %7648 = vst [vmem:[#allocation29_spill] sm:$0xff] %v6378_v8  ;;  %v6383_v55 = vadd.f32 %v1256_v6, %v6083_v18 }
 0x176   : > { %v1258_v0 = vpop.f32.mrf.mxu0  ;;  %v6385_v1 = vpop.f32.mrf.mxu1 }
 0x177   : > { %v6387_v60 = vadd.f32 %v1258_v0, %v949_v44 }
 0x178   : > { %v1262_v10 = vpop.f32.mrf.mxu0  ;;  %v6389_v34 = vpop.f32.mrf.mxu1 }
 0x179   : > { %7649 = vst [vmem:[#allocation30_spill] sm:$0xff] %v6389_v34  ;;  %v6392_v57 = vadd.f32 %v1262_v10, %v6093_v21 }
 0x17a   : > { %v1264_v11 = vpop.f32.mrf.mxu0  ;;  %v6394_v53 = vpop.f32.mrf.mxu1 }
 0x17b   : > { %7650 = vst [vmem:[#allocation31_spill] sm:$0xff] %v6394_v53  ;;  %v6397_v8 = vadd.f32 %v1264_v11, %v6098_v35 }
 0x17c   : > { %v1266_v19 = vpop.f32.mrf.mxu0  ;;  %v6399_v18 = vpop.f32.mrf.mxu1 }
 0x17d   : > { %7651 = vst [vmem:[#allocation32_spill] sm:$0xff] %v6399_v18  ;;  %v6404_v0 = vadd.f32 %v1266_v19, %v6100_v45 }
 0x17e   : > { %v1268_v6 = vpop.f32.mrf.mxu0  ;;  %v6406_v44 = vpop.f32.mrf.mxu1 }
 0x17f   : > { %v6408_v21 = vadd.f32 %v1268_v6, %v959_v20 }
 0x180   : > { %v1272_v10 = vpop.f32.mrf.mxu0  ;;  %v6410_v34 = vpop.f32.mrf.mxu1 }
 0x181   : > { %7652 = vst [vmem:[#allocation33_spill] sm:$0xff] %v6410_v34  ;;  %v6413_v35 = vadd.f32 %v1272_v10, %v6109_v63 }
 0x182   : > { %v1274_v11 = vpop.f32.mrf.mxu0  ;;  %v6415_v53 = vpop.f32.mrf.mxu1 }
 0x183   : > { %7653 = vst [vmem:[#allocation34_spill] sm:$0xff] %v6415_v53  ;;  %v6418_v18 = vadd.f32 %v1274_v11, %v6114_v14 }
 0x184   : > { %v1276_v59 = vpop.f32.mrf.mxu0  ;;  %v6420_v45 = vpop.f32.mrf.mxu1 }
 0x185   : > { %7654 = vst [vmem:[#allocation35_spill] sm:$0xff] %v6420_v45  ;;  %v6425_v19 = vadd.f32 %v1276_v59, %v6116_v32 }
 0x186   : > { %v1278_v20 = vpop.f32.mrf.mxu0  ;;  %v6427_v6 = vpop.f32.mrf.mxu1 }
 0x187   : > { %v6429_v63 = vadd.f32 %v1278_v20, %v969_v62 }
 0x188   : > { %v1282_v10 = vpop.f32.mrf.mxu0  ;;  %v6431_v34 = vpop.f32.mrf.mxu1 }
 0x189   : > { %7655 = vst [vmem:[#allocation36_spill] sm:$0xff] %v6431_v34  ;;  %v6434_v14 = vadd.f32 %v1282_v10, %v6126_v25 }
 0x18a   : > { %v1284_v11 = vpop.f32.mrf.mxu0  ;;  %v6436_v53 = vpop.f32.mrf.mxu1 }
 0x18b   : > { %7656 = vst [vmem:[#allocation37_spill] sm:$0xff] %v6436_v53  ;;  %v6439_v45 = vadd.f32 %v1284_v11, %v6131_v41 }
 0x18c   : > { %v1286_v43 = vpop.f32.mrf.mxu0  ;;  %v6441_v32 = vpop.f32.mrf.mxu1 }
 0x18d   : > { %7657 = vst [vmem:[#allocation38_spill] sm:$0xff] %v6441_v32  ;;  %v6446_v59 = vadd.f32 %v1286_v43, %v6133_v46 }
 0x18e   : > { %v1288_v62 = vpop.f32.mrf.mxu0  ;;  %v6448_v20 = vpop.f32.mrf.mxu1 }
 0x18f   : > { %v6450_v25 = vadd.f32 %v1288_v62, %v979_v54 }
 0x190   : > { %v1292_v10 = vpop.f32.mrf.mxu0  ;;  %v6452_v34 = vpop.f32.mrf.mxu1 }
 0x191   : > { %7658 = vst [vmem:[#allocation39_spill] sm:$0xff] %v6452_v34  ;;  %v6455_v41 = vadd.f32 %v1292_v10, %v6143_v28 }
 0x192   : > { %v1294_v11 = vpop.f32.mrf.mxu0  ;;  %v6457_v53 = vpop.f32.mrf.mxu1 }
 0x193   : > { %7659 = vst [vmem:[#allocation40_spill] sm:$0xff] %v6457_v53  ;;  %v6460_v32 = vadd.f32 %v1294_v11, %v6148_v33 }
 0x194   : > { %v1296_v17 = vpop.f32.mrf.mxu0  ;;  %v6462_v46 = vpop.f32.mrf.mxu1 }
 0x195   : > { %7660 = vst [vmem:[#allocation41_spill] sm:$0xff] %v6462_v46  ;;  %v6467_v43 = vadd.f32 %v1296_v17, %v6150_v22 }
 0x196   : > { %v1298_v54 = vpop.f32.mrf.mxu0  ;;  %v6469_v62 = vpop.f32.mrf.mxu1 }
 0x197   : > { %v6471_v28 = vadd.f32 %v1298_v54, %v989_v23 }
 0x198   : > { %v1302_v10 = vpop.f32.mrf.mxu0  ;;  %v6473_v34 = vpop.f32.mrf.mxu1 }
 0x199   : > { %7661 = vst [vmem:[#allocation42_spill] sm:$0xff] %v6473_v34  ;;  %v6476_v33 = vadd.f32 %v1302_v10, %v6159_v36 }
 0x19a   : > { %v1304_v11 = vpop.f32.mrf.mxu0  ;;  %v6478_v53 = vpop.f32.mrf.mxu1 }
 0x19b   : > { %v6481_v46 = vadd.f32 %v1304_v11, %v6164_v5  ;;  %v5164_v11 = vld [vmem:[%s7608_s3 + $0x74] ss:$8 sps:$4 sm:$0xff]  }
 0x19c   : > { %v1306_v40 = vpop.f32.mrf.mxu0  ;;  %v6483_v22 = vpop.f32.mrf.mxu1  ;;  %2902 = vmatprep.subr.bf16.mxu1 %v5164_v11 }
 0x19d   : > { %7662 = vst [vmem:[#allocation43_spill] sm:$0xff] %v6483_v22  ;;  %v6488_v17 = vadd.f32 %v1306_v40, %v6167_v4 }
 0x19e   : > { %v1308_v23 = vpop.f32.mrf.mxu0  ;;  %v6490_v54 = vpop.f32.mrf.mxu1 }
 0x19f   : > { %v6492_v36 = vadd.f32 %v1308_v23, %v999_v38 }
 0x1a0   : > { %v1312_v10 = vpop.f32.mrf.mxu0  ;;  %v6494_v34 = vpop.f32.mrf.mxu1 }
 0x1a1   : > { %7663 = vst [vmem:[#allocation44_spill] sm:$0xff] %v6494_v34  ;;  %v6497_v5 = vadd.f32 %v1312_v10, %v6182_v29 }
 0x1a2   : > { %v1314_v22 = vpop.f32.mrf.mxu0  ;;  %v6502_v24 = vpop.f32.mrf.mxu1 }
 0x1a3   : > { %7664 = vst [vmem:[#allocation45_spill] sm:$0xff] %v6497_v5  ;;  %7665 = vst [vmem:[#allocation46_spill] sm:$0xff] %v6502_v24  ;;  %v6505_v4 = vadd.f32 %v1314_v22, %v6187_v47 }
 0x1a4   : > { %v1316_v31 = vpop.f32.mrf.mxu0  ;;  %v6507_v40 = vpop.f32.mrf.mxu1 }
 0x1a5   : > { %7666 = vst [vmem:[#allocation47_spill] sm:$0xff] %v6507_v40  ;;  %v6510_v38 = vadd.f32 %v1316_v31, %v6189_v27 }
 0x1a6   : > { %v6512_v23 = vpop.f32.mrf.mxu0  ;;  %v6514_v29 = vpop.f32.mrf.mxu1 }
 0x1a7   : > { %7667 = vst [vmem:[#allocation48_spill] sm:$0xff] %v6510_v38  ;;  %7668 = vst [vmem:[#allocation49_spill] sm:$0xff] %v6514_v29  ;;  %v2119_v38 = vlaneseq }
 0x1a8   : > { %v1322_v10 = vpop.f32.mrf.mxu0  ;;  %v6516_v34 = vpop.f32.mrf.mxu1 }
 0x1a9   : > { %7669 = vst [vmem:[#allocation50_spill] sm:$0xff] %v6516_v34  ;;  %v6519_v5 = vadd.f32 %v1322_v10, %v6199_v39 }
 0x1aa   : > { %v1324_v24 = vpop.f32.mrf.mxu0  ;;  %v6521_v47 = vpop.f32.mrf.mxu1 }
 0x1ab   : > { %7670 = vst [vmem:[#allocation51_spill] sm:$0xff] %v6521_v47  ;;  %v6524_v22 = vadd.f32 %v1324_v24, %v6204_v42 }
 0x1ac   : > { %v1326_v11 = vpop.f32.mrf.mxu0  ;;  %v6526_v40 = vpop.f32.mrf.mxu1 }
 0x1ad   : > { %7671 = vst [vmem:[#allocation52_spill] sm:$0xff] %v6524_v22  ;;  %7672 = vst [vmem:[#allocation53_spill] sm:$0xff] %v6526_v40  ;;  %v6529_v27 = vadd.f32 %v1326_v11, %v6212_v51  ;;  %v6543_v40 = vshrl.u32 %v2119_v38, 7  ;;  %v5393_v51 = vmov 1966171168   ;;  %v939_v38 = vadd.f32 %v6073_v58, %v6071_v56 }
 0x1ae   : > { %v6531_v31 = vpop.f32.mrf.mxu0  ;;  %v6533_v29 = vpop.f32.mrf.mxu1  ;;  %v2250_v11 = vunpack.c.l.s4 %v5393_v51 }
 0x1af   : > { %7673 = vst [vmem:[#allocation54_spill] sm:$0xff] %v6529_v27  ;;  %7674 = vst [vmem:[#allocation55_spill] sm:$0xff] %v6533_v29 }
 0x1b0   : > { %v1332_v34 = vpop.f32.mrf.mxu0  ;;  %v6538_v47 = vpop.f32.mrf.mxu1  ;;  %7678 = vst [vmem:[#allocation59_spill] sm:$0xff] %v6543_v40 }
 0x1b1   : > { %v6536_v39 = vadd.f32 %v1332_v34, %v6230_v16  ;;  %7676 = vst [vmem:[#allocation57_spill] sm:$0xff] %v6538_v47  ;;  %v929_v16 = vadd.f32 %v6056_v13, %v6054_v26  ;;  %v7619_v47 = vsub.s32 0, %v6543_v40  ;;  %v1358_v13 = vadd.f32 %v6364_v52, %v939_v38  ;;  %v7688_v52 = vld [vmem:[#allocation11_spill] sm:$0xff] }
 0x1b2   : > { %v1334_v10 = vpop.f32.mrf.mxu0  ;;  %v6548_v29 = vpop.f32.mrf.mxu1 }
 0x1b3   : > { %7675 = vst [vmem:[#allocation56_spill] sm:$0xff] %v6536_v39  ;;  %v6541_v42 = vadd.f32 %v1334_v10, %v6238_v49  ;;  %7680 = vst [vmem:[#allocation61_spill] sm:$0xff] %v6548_v29  ;;  %v2251_v10 = vunpack.c.0.s8 %v2250_v11  ;;  %v7685_v11 = vld [vmem:[#allocation9_spill] sm:$0xff]  ;;  %v7695_v29 = vld [vmem:[#allocation18_spill] sm:$0xff] }
 0x1b4   : > { %v1336_v24 = vpop.f32.mrf.mxu0  ;;  %v1009_v56 = vadd.f32 %v7685_v11, %v6194_v9  ;;  %v7691_v9 = vld [vmem:[#allocation15_spill] sm:$0xff] }
 0x1b5   : > { %7677 = vst [vmem:[#allocation58_spill] sm:$0xff] %v6541_v42  ;;  %v6546_v27 = vadd.f32 %v1336_v24, %v6246_v15  ;;  %v2117_v15 = vld [vmem:[%s7607_s2] sm:$0x3]  ;;  %v1354_v24 = vadd.f32 %v6327_v3, %v929_v16  ;;  %v6582_v3 = vsub.s32 %v2251_v10, %v6543_v40  ;;  %v7687_v16 = vld [vmem:[#allocation10_spill] sm:$0xff]  ;;  %v6592_v11 = vadd.f32 %v7691_v9, %v6284_v61  ;;  %v7697_v42 = vld [vmem:[#allocation20_spill] sm:$0xff] }
 0x1b6   : > { %v6550_v22 = vpop.f32.mrf.mxu0  ;;  %v1019_v38 = vadd.f32 %v7688_v52, %v7687_v16  ;;  %v7696_v10 = vld [vmem:[#allocation17_spill] sm:$0xff]  ;;  %v7698_v39 = vld [vmem:[#allocation19_spill] sm:$0xff]  ;;  %v7701_v9 = vld [vmem:[#allocation22_spill] sm:$0xff] }
 0x1b7   : > { %7679 = vst [vmem:[#allocation60_spill] sm:$0xff] %v6546_v27  ;;  %7681 = vst [vmem:[#allocation62_spill] sm:$0xff] %v6550_v22  ;;  %v6565_v27 = vpop.f32.mrf.mxu1  ;;  %v1712_v16 = vadd.f32 %v7698_v39, %v7697_v42  ;;  %v7699_v52 = vld [vmem:[#allocation21_spill] sm:$0xff]  ;;  %v7700_v61 = vld [vmem:[#allocation23_spill] sm:$0xff] }
 0x1b8   : > { %v1342_v34 = vpop.f32.mrf.mxu0  ;;  %7683 = vst [vmem:[#allocation64_spill] sm:$0xff] %v6565_v27  ;;  %7692 = vst [vmem:[#allocation9_spill] sm:$0xff] %v6592_v11  ;;  %v1713_v22 = vadd.f32 %v7699_v52, %v1354_v24  ;;  %v1714_v11 = vadd.f32 %v7701_v9, %v7700_v61  ;;  %v7704_v39 = vld [vmem:[#allocation27_spill] sm:$0xff]  ;;  %v7705_v42 = vld [vmem:[#allocation26_spill] sm:$0xff] }
 0x1b9   : > { %v6559_v51 = vadd.f32 %v1342_v34, %v6259_v37  ;;  %v6575_v37 = vrot.slane %v2117_v15, %v7619_v47  ;;  %v7686_v34 = vsub.s32 1, %v6543_v40  ;;  %v7693_v47 = vld [vmem:[#allocation14_spill] sm:$0xff]  ;;  %v1711_v40 = vadd.f32 %v7696_v10, %v7695_v29  ;;  %v7703_v29 = vld [vmem:[#allocation25_spill] sm:$0xff]  ;;  %v7706_v10 = vld [vmem:[#allocation28_spill] sm:$0xff] }
 0x1ba   : > { %v1344_v26 = vpop.f32.mrf.mxu0  ;;  %v6621_v24 = vadd.f32 %v7705_v42, %v7704_v39  ;;  %v6625_v52 = vadd.f32 %v7706_v10, %v6376_v50  ;;  %v7707_v61 = vld [vmem:[#allocation29_spill] sm:$0xff]  ;;  %v7710_v50 = vld [vmem:[#allocation32_spill] sm:$0xff] }
 0x1bb   : > { %7682 = vst [vmem:[#allocation63_spill] sm:$0xff] %v6559_v51  ;;  %v6569_v49 = vadd.f32 %v1344_v26, %v6274_v7  ;;  %v6579_v51 = vrot.slane %v2117_v15, %v7686_v34  ;;  %v7689_v7 = vld [vmem:[#allocation12_spill] sm:$0xff]  ;;  %v7690_v26 = vld [vmem:[#allocation13_spill] sm:$0xff]  ;;  %v6629_v9 = vadd.f32 %v7707_v61, %v6383_v55  ;;  %v6645_v39 = vadd.f32 %v7710_v50, %v6404_v0 }
 0x1bc   : > { %v1346_v58 = vpop.f32.mrf.mxu0  ;;  %v7694_v15 = vld [vmem:[#allocation16_spill] sm:$0xff]  ;;  %v6649_v55 = vadd.f32 %v6406_v44, %v6408_v21 }
 0x1bd   : > { %7684 = vst [vmem:[#allocation65_spill] sm:$0xff] %v6569_v49  ;;  %v6588_v49 = vadd.f32 %v7690_v26, %v7689_v7  ;;  %v6595_v27 = vadd.f32 %v1346_v58, %v7693_v47  ;;  %v1710_v34 = vadd.f32 %v7694_v15, %v6297_v12  ;;  %v6604_v7 = vpop.f32.mrf.mxu1  ;;  %v7702_v47 = vld [vmem:[#allocation24_spill] sm:$0xff]  ;;  %v6614_v12 = vadd.f32 %v6359_v48, %v6362_v2  ;;  %v7708_v2 = vld [vmem:[#allocation30_spill] sm:$0xff] }
 0x1be   : > { %v6606_v26 = vpop.f32.mrf.mxu0  ;;  %v1715_v58 = vadd.f32 %v7702_v47, %v6357_v30  ;;  %v6617_v15 = vadd.f32 %v7703_v29, %v1358_v13  ;;  %v6633_v30 = vadd.f32 %v6385_v1, %v6387_v60  ;;  %v6637_v13 = vadd.f32 %v7708_v2, %v6392_v57  ;;  %v7709_v47 = vld [vmem:[#allocation31_spill] sm:$0xff]  ;;  %v7711_v1 = vld [vmem:[#allocation33_spill] sm:$0xff]  ;;  %v7712_v57 = vld [vmem:[#allocation34_spill] sm:$0xff] }
 0x1bf   : > { %v6641_v29 = vadd.f32 %v7709_v47, %v6397_v8  ;;  %v6653_v60 = vadd.f32 %v7711_v1, %v6413_v35  ;;  %v6657_v10 = vadd.f32 %v7712_v57, %v6418_v18  ;;  %v7713_v8 = vld [vmem:[#allocation35_spill] sm:$0xff]  ;;  %v6663_v2 = vpop.f32.mrf.mxu1  ;;  %v7714_v44 = vld [vmem:[#allocation36_spill] sm:$0xff]  ;;  %v7715_v18 = vld [vmem:[#allocation37_spill] sm:$0xff]  ;;  %v6684_v1 = vadd.f32 %v6448_v20, %v6450_v25 }
 0x1c0   : > { %v1950_v48 = vpop.f32.mrf.mxu0  ;;  %v6661_v61 = vadd.f32 %v7713_v8, %v6425_v19  ;;  %v6671_v21 = vadd.f32 %v7714_v44, %v6434_v14  ;;  %v6676_v47 = vadd.f32 %v7715_v18, %v6439_v45  ;;  %v7716_v19 = vld [vmem:[#allocation38_spill] sm:$0xff]  ;;  %v7719_v45 = vld [vmem:[#allocation41_spill] sm:$0xff]  ;;  %v6701_v20 = vadd.f32 %v6469_v62, %v6471_v28  ;;  %v7721_v62 = vld [vmem:[#allocation43_spill] sm:$0xff] }
 0x1c1   : > { %v2069_v42 = vadd.f32 %v1950_v48, %v1710_v34  ;;  %v6667_v34 = vadd.f32 %v6427_v6, %v6429_v63  ;;  %v6680_v50 = vadd.f32 %v7716_v19, %v6446_v59  ;;  %v7717_v6 = vld [vmem:[#allocation39_spill] sm:$0xff]  ;;  %v6696_v57 = vadd.f32 %v7719_v45, %v6467_v43  ;;  %v7720_v25 = vld [vmem:[#allocation42_spill] sm:$0xff]  ;;  %v1703_v44 = vpop.f32.mrf.mxu1  ;;  %v7725_v45 = vld [vmem:[#allocation48_spill] sm:$0xff] }
 0x1c2   : > { %v1952_v0 = vpop.f32.mrf.mxu0  ;;  %v6688_v63 = vadd.f32 %v7717_v6, %v6455_v41  ;;  %v6705_v41 = vadd.f32 %v7720_v25, %v6476_v33  ;;  %v6715_v28 = vadd.f32 %v7721_v62, %v6488_v17  ;;  %v6719_v33 = vadd.f32 %v6490_v54, %v6492_v36  ;;  %v7722_v6 = vld [vmem:[#allocation45_spill] sm:$0xff]  ;;  %v7728_v25 = vld [vmem:[#allocation50_spill] sm:$0xff] }
 0x1c3   : > { %v2129_v35 = vadd.f32 %v6575_v37, %v2069_v42  ;;  %v2070_v48 = vadd.f32 %v1952_v0, %v1711_v40  ;;  %v7718_v42 = vld [vmem:[#allocation40_spill] sm:$0xff]  ;;  %v6709_v0 = vadd.f32 %v6478_v53, %v6481_v46  ;;  %v7727_v54 = vld [vmem:[#allocation49_spill] sm:$0xff] }
 0x1c4   : > { %v1954_v14 = vpop.f32.mrf.mxu0  ;;  %v6692_v40 = vadd.f32 %v7718_v42, %v6460_v32  ;;  %v1386_v32 = vadd.f32 %v6512_v23, %v1009_v56  ;;  %v7723_v53 = vld [vmem:[#allocation44_spill] sm:$0xff]  ;;  %v1390_v23 = vadd.f32 %v6531_v31, %v1019_v38  ;;  %v7730_v38 = vld [vmem:[#allocation51_spill] sm:$0xff] }
 0x1c5   : > { %v2130_v59 = vadd.f32 %v6579_v51, %v2070_v48  ;;  %v2071_v8 = vadd.f32 %v1954_v14, %v1712_v16  ;;  %v2177_v18 = vmax.f32 %v2129_v35, 0.0  ;;  %v6723_v46 = vadd.f32 %v7723_v53, %v7722_v6  ;;  %v7724_v35 = vld [vmem:[#allocation46_spill] sm:$0xff]  ;;  %v7729_v31 = vld [vmem:[#allocation52_spill] sm:$0xff] }
 0x1c6   : > { %v1956_v43 = vpop.f32.mrf.mxu0  ;;  %v6728_v14 = vadd.f32 %v7724_v35, %v6505_v4  ;;  %v6736_v36 = vadd.f32 %v7727_v54, %v1386_v32  ;;  %v6744_v62 = vadd.f32 %v7730_v38, %v7729_v31  ;;  %v1705_v4 = vpop.f32.mrf.mxu1  ;;  %v7731_v53 = vld [vmem:[#allocation54_spill] sm:$0xff]  ;;  %v7732_v32 = vld [vmem:[#allocation53_spill] sm:$0xff]  ;;  %v7734_v35 = vld [vmem:[#allocation55_spill] sm:$0xff] }
 0x1c7   : > { %v2178_v19 = vmax.f32 %v2130_v59, 0.0  ;;  %v2131_v16 = vadd.f32 %v6575_v37, %v2071_v8  ;;  %v2072_v48 = vadd.f32 %v1956_v43, %v1713_v22  ;;  %v7726_v59 = vld [vmem:[#allocation47_spill] sm:$0xff]  ;;  %v6740_v43 = vadd.f32 %v7728_v25, %v6519_v5  ;;  %v7737_v31 = vld [vmem:[#allocation9_spill] sm:$0xff] }
 0x1c8   : > { %v1960_v56 = vpop.f32.mrf.mxu0  ;;  %v6733_v8 = vadd.f32 %v7726_v59, %v7725_v45  ;;  %v6752_v5 = vadd.f32 %v7734_v35, %v1390_v23  ;;  %v7736_v45 = vld [vmem:[#allocation62_spill] sm:$0xff]  ;;  %v1398_v38 = vadd.f32 %v6606_v26, %v7737_v31  ;;  %v7741_v23 = vld [vmem:[#allocation61_spill] sm:$0xff] }
 0x1c9   : > { %v2225_v22 = vmax.f32 %v2177_v18, %v2178_v19  ;;  %v2132_v42 = vadd.f32 %v6579_v51, %v2072_v48  ;;  %v2073_v17 = vadd.f32 %v1960_v56, %v1714_v11  ;;  %v2179_v19 = vmax.f32 %v2131_v16, 0.0 }
 0x1ca   : > { %v1962_v18 = vpop.f32.mrf.mxu0  ;;  %v6749_v56 = vadd.f32 %v7732_v32, %v7731_v53  ;;  %7735 = vst [vmem:[#allocation11_spill] sm:$0xff] %v6752_v5  ;;  %v1394_v59 = vadd.f32 %v7736_v45, %v6588_v49  ;;  %v7740_v32 = vld [vmem:[#allocation58_spill] sm:$0xff]  ;;  %v7742_v5 = vld [vmem:[#allocation60_spill] sm:$0xff] }
 0x1cb   : > { %v2255_v11 = vrot.slane %v2225_v22, %v6582_v3  ;;  %v2180_v48 = vmax.f32 %v2132_v42, 0.0  ;;  %v2074_v6 = vadd.f32 %v1962_v18, %v1715_v58  ;;  %v2133_v54 = vadd.f32 %v6575_v37, %v2073_v17  ;;  %v7738_v42 = vld [vmem:[#allocation56_spill] sm:$0xff]  ;;  %v7739_v18 = vld [vmem:[#allocation57_spill] sm:$0xff]  ;;  %v1707_v17 = vpop.f32.mrf.mxu1 }
 0x1cc   : > { %7733 = vst [vmem:[#allocation10_spill] sm:$0xff] %v6749_v56  ;;  %v1964_v25 = vpop.f32.mrf.mxu0  ;;  %v6762_v53 = vadd.f32 %v7739_v18, %v7738_v42  ;;  %v6766_v35 = vadd.f32 %v7741_v23, %v7740_v32  ;;  %v7743_v49 = vld [vmem:[#allocation64_spill] sm:$0xff]  ;;  %v6778_v42 = vadd.f32 %v6604_v7, %v1394_v59  ;;  %v7744_v18 = vld [vmem:[#allocation63_spill] sm:$0xff]  ;;  %v7745_v23 = vld [vmem:[#allocation65_spill] sm:$0xff] }
 0x1cd   : > { %v2441_v22 = vrot.slane %v2255_v11, 4  ;;  %v2226_v16 = vmax.f32 %v2179_v19, %v2180_v48  ;;  %v2134_v58 = vadd.f32 %v6579_v51, %v2074_v6  ;;  %v6770_v45 = vadd.f32 %v7743_v49, %v7742_v5 }
 0x1ce   : > { %v2075_v56 = vadd.f32 %v1964_v25, %v6614_v12  ;;  %v1966_v26 = vpop.f32.mrf.mxu0  ;;  %v6782_v5 = vadd.f32 %v6663_v2, %v7744_v18  ;;  %v2181_v32 = vmax.f32 %v2133_v54, 0.0  ;;  %v6786_v49 = vadd.f32 %v1703_v44, %v7745_v23 }
 0x1cf   : > { %v6773_v19 = vmax.f32 %v2255_v11, %v2441_v22  ;;  %v2262_v48 = vrot.slane %v2226_v16, %v6582_v3  ;;  %v2182_v6 = vmax.f32 %v2134_v58, 0.0  ;;  %v2076_v31 = vadd.f32 %v1966_v26, %v6617_v15 }
 0x1d0   : > { %v2135_v12 = vadd.f32 %v6575_v37, %v2075_v56  ;;  %v1970_v25 = vpop.f32.mrf.mxu0  ;;  %7746 = vst [vmem:[#allocation12_spill] sm:$0xff] %v6786_v49  ;;  %v6789_v11 = vadd.f32 %v1705_v4, %v6595_v27  ;;  %v6791_v22 = vadd.f32 %v1707_v17, %v1398_v38 }
 0x1d1   : > { %v2442_v15 = vrot.slane %v2262_v48, 4  ;;  %v4713_v7 = vrot.slane %v6773_v19, 9  ;;  %v2227_v59 = vmax.f32 %v2181_v32, %v2182_v6  ;;  %v2136_v16 = vadd.f32 %v6579_v51, %v2076_v31 }
 0x1d2   : > { %7747 = vst [vmem:[#allocation13_spill] sm:$0xff] %v6789_v11  ;;  %7748 = vst [vmem:[#allocation15_spill] sm:$0xff] %v6791_v22  ;;  %v2077_v2 = vadd.f32 %v1970_v25, %v6621_v24  ;;  %v1972_v54 = vpop.f32.mrf.mxu0  ;;  %v4809_v58 = vrot.slane %v6773_v19, 11  ;;  %v2183_v38 = vmax.f32 %v2135_v12, 0.0 }
 0x1d3   : > { %v6798_v44 = vmax.f32 %v2262_v48, %v2442_v15  ;;  %v2078_v27 = vadd.f32 %v1972_v54, %v6625_v52  ;;  %v2269_v4 = vrot.slane %v2227_v59, %v6582_v3  ;;  %v2184_v17 = vmax.f32 %v2136_v16, 0.0 }
 0x1d4   : > { %v2137_v26 = vadd.f32 %v6575_v37, %v2077_v2  ;;  %v1974_v6 = vpop.f32.mrf.mxu0 }
 0x1d5   : > { %v7622_v31 = vrot.slane %v6798_v44, 6  ;;  %v3245_v24 = vrot.slane %v6798_v44, 7  ;;  %v2138_v18 = vadd.f32 %v6579_v51, %v2078_v27  ;;  %v2079_v32 = vadd.f32 %v1974_v6, %v6629_v9 }
 0x1d6   : > { %v2443_v52 = vrot.slane %v2269_v4, 4  ;;  %v2228_v12 = vmax.f32 %v2183_v38, %v2184_v17  ;;  %v2185_v25 = vmax.f32 %v2137_v26, 0.0  ;;  %v1976_v23 = vpop.f32.mrf.mxu0  ;;  %v2578_v15 = vrot.slane %v6798_v44, 5 }
 0x1d7   : > { %v6816_v59 = vrot.slane %v7622_v31, 4  ;;  %v3247_v16 = vrot.slane %v3245_v24, 4  ;;  %v2186_v2 = vmax.f32 %v2138_v18, 0.0  ;;  %v2139_v9 = vadd.f32 %v6575_v37, %v2079_v32 }
 0x1d8   : > { %v6819_v54 = vmax.f32 %v2269_v4, %v2443_v52  ;;  %v2276_v27 = vrot.slane %v2228_v12, %v6582_v3  ;;  %v2080_v6 = vadd.f32 %v1976_v23, %v6633_v30  ;;  %v1980_v56 = vpop.f32.mrf.mxu0  ;;  %v6825_v38 = vsel %vm6809_vm9, %v4713_v7, %v2578_v15 }
 0x1d9   : > { %7751 = vst [vmem:[#allocation14_spill] sm:$0xff] %v6816_v59  ;;  %v2229_v17 = vmax.f32 %v2185_v25, %v2186_v2  ;;  %v2187_v26 = vmax.f32 %v2139_v9, 0.0  ;;  %v2081_v31 = vadd.f32 %v1980_v56, %v6637_v13  ;;  %v2580_v59 = vrot.slane %v2578_v15, 4 }
 0x1da   : > { %7752 = vst [vmem:[#allocation16_spill] sm:$0xff] %v6819_v54  ;;  %v2581_v4 = vrot.slane %v6819_v54, 5  ;;  %v3248_v32 = vrot.slane %v6819_v54, 7  ;;  %v1982_v52 = vpop.f32.mrf.mxu0  ;;  %v2444_v12 = vrot.slane %v2276_v27, 4  ;;  %v2140_v56 = vadd.f32 %v6579_v51, %v2080_v6 }
 0x1db   : > { %v2283_v13 = vrot.slane %v2229_v17, %v6582_v3  ;;  %v2141_v25 = vadd.f32 %v6575_v37, %v2081_v31  ;;  %v2082_v23 = vadd.f32 %v1982_v52, %v6641_v29  ;;  %v6849_v9 = vsel %vm6830_vm10, %v4809_v58, %v3245_v24 }
 0x1dc   : > { %v1984_v15 = vpop.f32.mrf.mxu0  ;;  %v6845_v2 = vsel %vm6809_vm9, %v2580_v59, %v2581_v4  ;;  %v6853_v7 = vsel %vm6830_vm10, %v3247_v16, %v3248_v32  ;;  %v6855_v17 = vmax.f32 %v2276_v27, %v2444_v12  ;;  %v2188_v30 = vmax.f32 %v2140_v56, 0.0 }
 0x1dd   : > { %v2445_v6 = vrot.slane %v2283_v13, 4  ;;  %v2189_v31 = vmax.f32 %v2141_v25, 0.0  ;;  %v2142_v29 = vadd.f32 %v6579_v51, %v2082_v23  ;;  %v2083_v52 = vadd.f32 %v1984_v15, %v6645_v39 }
 0x1de   : > { %v1986_v54 = vpop.f32.mrf.mxu0  ;;  %v4714_v24 = vrot.slane %v6855_v17, 9  ;;  %v4810_v27 = vrot.slane %v6855_v17, 11  ;;  %v2230_v32 = vmax.f32 %v2187_v26, %v2188_v30 }
 0x1df   : > { %v6866_v4 = vmax.f32 %v2283_v13, %v2445_v6  ;;  %v2190_v12 = vmax.f32 %v2142_v29, 0.0  ;;  %v2143_v56 = vadd.f32 %v6575_v37, %v2083_v52  ;;  %v2084_v39 = vadd.f32 %v1986_v54, %v6649_v55 }
 0x1e0   : > { %v1990_v25 = vpop.f32.mrf.mxu0  ;;  %v2290_v16 = vrot.slane %v2230_v32, %v6582_v3 }
 0x1e1   : > { %v7625_v23 = vrot.slane %v6866_v4, 6  ;;  %v3252_v15 = vrot.slane %v6866_v4, 7  ;;  %v2085_v58 = vadd.f32 %v1990_v25, %v6653_v60  ;;  %v2585_v59 = vrot.slane %v6866_v4, 5 }
 0x1e2   : > { %v2231_v22 = vmax.f32 %v2189_v31, %v2190_v12  ;;  %v2191_v13 = vmax.f32 %v2143_v56, 0.0  ;;  %v2144_v26 = vadd.f32 %v6579_v51, %v2084_v39  ;;  %v1992_v30 = vpop.f32.mrf.mxu0  ;;  %v2446_v52 = vrot.slane %v2290_v16, 4 }
 0x1e3   : > { %v6878_v6 = vrot.slane %v7625_v23, 4  ;;  %v3254_v55 = vrot.slane %v3252_v15, 4  ;;  %v2145_v54 = vadd.f32 %v6575_v37, %v2085_v58  ;;  %v2086_v29 = vadd.f32 %v1992_v30, %v6657_v10 }
 0x1e4   : > { %v2297_v60 = vrot.slane %v2231_v22, %v6582_v3  ;;  %v2192_v25 = vmax.f32 %v2144_v26, 0.0  ;;  %v1994_v11 = vpop.f32.mrf.mxu0  ;;  %v2586_v31 = vsel %vm6809_vm9, %v4714_v24, %v2585_v59  ;;  %v2587_v39 = vrot.slane %v2585_v59, 4 }
 0x1e5   : > { %7755 = vst [vmem:[#allocation18_spill] sm:$0xff] %v6878_v6  ;;  %v2193_v32 = vmax.f32 %v2145_v54, 0.0  ;;  %v2146_v12 = vadd.f32 %v6579_v51, %v2086_v29  ;;  %v2087_v56 = vadd.f32 %v1994_v11, %v6661_v61  ;;  %v6887_v23 = vmax.f32 %v2290_v16, %v2446_v52 }
 0x1e6   : > { %v2447_v6 = vrot.slane %v2297_v60, 4  ;;  %v2232_v58 = vmax.f32 %v2191_v13, %v2192_v25  ;;  %v1996_v49 = vpop.f32.mrf.mxu0  ;;  %v3253_v10 = vsel %vm6830_vm10, %v4810_v27, %v3252_v15  ;;  %v2529_v24 = vcombine.low %v6773_v19, %v6798_v44 }
 0x1e7   : > { %v2194_v22 = vmax.f32 %v2146_v12, 0.0  ;;  %v2147_v26 = vadd.f32 %v6575_v37, %v2087_v56  ;;  %v2088_v30 = vadd.f32 %v1996_v49, %v6667_v34  ;;  %v2588_v54 = vrot.slane %v6887_v23, 5 }
 0x1e8   : > { %v2990_v61 = vrot.slane %v6887_v23, 6  ;;  %v3255_v11 = vrot.slane %v6887_v23, 7  ;;  %v2000_v16 = vpop.f32.mrf.mxu0  ;;  %v6900_v13 = vmax.f32 %v2297_v60, %v2447_v6  ;;  %v2304_v27 = vrot.slane %v2232_v58, %v6582_v3 }
 0x1e9   : > { %v2233_v15 = vmax.f32 %v2193_v32, %v2194_v22  ;;  %v2195_v29 = vmax.f32 %v2147_v26, 0.0  ;;  %v2148_v34 = vadd.f32 %v6579_v51, %v2088_v30  ;;  %v2089_v49 = vadd.f32 %v2000_v16, %v6671_v21 }
 0x1ea   : > { %v2002_v52 = vpop.f32.mrf.mxu0  ;;  %v2589_v25 = vsel %vm6809_vm9, %v2587_v39, %v2588_v54  ;;  %v3256_v12 = vsel %vm6830_vm10, %v3254_v55, %v3255_v11  ;;  %v2448_v56 = vrot.slane %v2304_v27, 4  ;;  %v4715_v21 = vrot.slane %v6900_v13, 9 }
 0x1eb   : > { %v2311_v59 = vrot.slane %v2233_v15, %v6582_v3  ;;  %v2090_v6 = vadd.f32 %v2002_v52, %v6676_v47  ;;  %v2633_v60 = vcombine.low %v2586_v31, %v2589_v25  ;;  %v2196_v58 = vmax.f32 %v2148_v34, 0.0 }
 0x1ec   : > { %v2149_v32 = vadd.f32 %v6575_v37, %v2089_v49  ;;  %v2004_v22 = vpop.f32.mrf.mxu0  ;;  %v3300_v26 = vcombine.low %v3253_v10, %v3256_v12  ;;  %v6913_v30 = vmax.f32 %v2304_v27, %v2448_v56  ;;  %v7756_v47 = vcombine.low %v6825_v38, %v6845_v2  ;;  %v5162_v27 = vld [vmem:[%s7608_s3 + $0x70] ss:$8 sps:$4 sm:$0xff]   ;;  %v5167_v38 = vld [vmem:[%s7608_s3 + $0x64] ss:$8 sps:$4 sm:$0xff]  }
 0x1ed   : > { %v2449_v16 = vrot.slane %v2311_v59, 4  ;;  %v2150_v39 = vadd.f32 %v6579_v51, %v2090_v6  ;;  %v2091_v55 = vadd.f32 %v2004_v22, %v6680_v50  ;;  %v2234_v54 = vmax.f32 %v2195_v29, %v2196_v58 }
 0x1ee   : > { %v2197_v11 = vmax.f32 %v2149_v32, 0.0  ;;  %v2648_v31 = vpack.c.bf16 %v2633_v60, %v7756_v47  ;;  %v7757_v15 = vcombine.low %v6849_v9, %v6853_v7  ;;  %v2006_v10 = vpop.f32.mrf.mxu0  ;;  %v2592_v9 = vrot.slane %v6913_v30, 5 }
 0x1ef   : > { %v6926_v49 = vmax.f32 %v2311_v59, %v2449_v16  ;;  %v2198_v52 = vmax.f32 %v2150_v39, 0.0  ;;  %v2151_v50 = vadd.f32 %v6575_v37, %v2091_v55  ;;  %v2092_v29 = vadd.f32 %v2006_v10, %v6684_v1  ;;  %v5165_v39 = vld [vmem:[%s7608_s3 + $0x60] ss:$8 sps:$4 sm:$0xff]  }
 0x1f0   : > { %v3315_v34 = vpack.c.bf16 %v3300_v26, %v7757_v15  ;;  %v2318_v2 = vrot.slane %v2234_v54, %v6582_v3  ;;  %2782 = vmatmul.mubr.bf16.vlgmr.msra.gmra.mxu1 %v2648_v31  ;;  %v2010_v7 = vpop.f32.mrf.mxu0  ;;  %v4811_v25 = vrot.slane %v6900_v13, 11  ;;  %v3259_v59 = vrot.slane %v6913_v30, 7 }
 0x1f1   : > { %v2235_v12 = vmax.f32 %v2197_v11, %v2198_v52  ;;  %v2199_v56 = vmax.f32 %v2151_v50, 0.0  ;;  %v2152_v6 = vadd.f32 %v6579_v51, %v2092_v29  ;;  %v2093_v1 = vadd.f32 %v2010_v7, %v6688_v63  ;;  %2903 = vmatpush1.bf16.msra.mxu1 %v5162_v27 }
 0x1f2   : > { %3449 = vmatmul.mubr.bf16.vlgmr.msra.gmra.mxu0 %v3315_v34  ;;  %v7758_v60 = vmov 0   ;;  %v2450_v58 = vrot.slane %v2318_v2, 4  ;;  %v2012_v32 = vpop.f32.mrf.mxu0  ;;  %v6943_v22 = vsel %vm6809_vm9, %v4715_v21, %v2592_v9  ;;  %v2594_v26 = vrot.slane %v2592_v9, 4  ;;  %2904 = vmatprep.subr.bf16.mxu1 %v5167_v38  ;;  %v5170_v21 = vld [vmem:[%s7608_s3 + $0x54] ss:$8 sps:$4 sm:$0xff]  }
 0x1f3   : > { %2791 = vmatprep.mubr.bf16.mxu1 %v7758_v60  ;;  %3458 = vmatprep.mubr.bf16.mxu0 %v7758_v60  ;;  %v2595_v16 = vrot.slane %v6926_v49, 5  ;;  %v2325_v63 = vrot.slane %v2235_v12, %v6582_v3  ;;  %v2200_v55 = vmax.f32 %v2152_v6, 0.0  ;;  %v2153_v54 = vadd.f32 %v6575_v37, %v2093_v1  ;;  %v5173_v6 = vld [vmem:[%s7608_s3 + $0x44] ss:$8 sps:$4 sm:$0xff]  }
 0x1f4   : > { %v2094_v11 = vadd.f32 %v2012_v32, %v6692_v40  ;;  %v6955_v47 = vmax.f32 %v2318_v2, %v2450_v58  ;;  %v2014_v31 = vpop.f32.mrf.mxu0  ;;  %v6963_v34 = vsel %vm6830_vm10, %v4811_v25, %v3259_v59  ;;  %v3261_v10 = vrot.slane %v3259_v59, 4  ;;  %v5168_v25 = vld [vmem:[%s7608_s3 + $0x50] ss:$8 sps:$4 sm:$0xff]  }
 0x1f5   : > { %v6959_v15 = vsel %vm6809_vm9, %v2594_v26, %v2595_v16  ;;  %v2451_v27 = vrot.slane %v2325_v63, 4  ;;  %v2236_v52 = vmax.f32 %v2199_v56, %v2200_v55  ;;  %v2201_v40 = vmax.f32 %v2153_v54, 0.0  ;;  %2905 = vmatpush1.bf16.msra.mxu1 %v5165_v39 }
 0x1f6   : > { %v2154_v50 = vadd.f32 %v6579_v51, %v2094_v11  ;;  %v2095_v29 = vadd.f32 %v2014_v31, %v6696_v57  ;;  %v2016_v38 = vpop.f32.mrf.mxu0  ;;  %v4716_v2 = vrot.slane %v6955_v47, 9  ;;  %v2634_v7 = vcombine.low %v6943_v22, %v6959_v15  ;;  %2906 = vmatprep.subr.bf16.mxu1 %v5170_v21 }
 0x1f7   : > { %v3262_v9 = vrot.slane %v6926_v49, 7  ;;  %v6974_v59 = vmax.f32 %v2325_v63, %v2451_v27  ;;  %v2332_v12 = vrot.slane %v2236_v52, %v6582_v3  ;;  %v2096_v57 = vadd.f32 %v2016_v38, %v6701_v20  ;;  %v5171_v27 = vld [vmem:[%s7608_s3 + $0x40] ss:$8 sps:$4 sm:$0xff]  }
 0x1f8   : > { %v2202_v56 = vmax.f32 %v2154_v50, 0.0  ;;  %v2155_v1 = vadd.f32 %v6575_v37, %v2095_v29  ;;  %v2020_v58 = vpop.f32.mrf.mxu0  ;;  %v4812_v26 = vrot.slane %v6955_v47, 11  ;;  %v2530_v16 = vcombine.low %v6855_v17, %v6866_v4  ;;  %v5176_v29 = vld [vmem:[%s7608_s3 + $0x34] ss:$8 sps:$4 sm:$0xff]  }
 0x1f9   : > { %v6984_v32 = vsel %vm6830_vm10, %v3261_v10, %v3262_v9  ;;  %v2452_v39 = vrot.slane %v2332_v12, 4  ;;  %v2156_v20 = vadd.f32 %v6579_v51, %v2096_v57  ;;  %v2097_v55 = vadd.f32 %v2020_v58, %v6705_v41  ;;  %2907 = vmatpush1.bf16.msra.mxu1 %v5168_v25 }
 0x1fa   : > { %v2237_v63 = vmax.f32 %v2201_v40, %v2202_v56  ;;  %v2203_v54 = vmax.f32 %v2155_v1, 0.0  ;;  %v2022_v11 = vpop.f32.mrf.mxu0  ;;  %v2599_v21 = vrot.slane %v6974_v59, 5  ;;  %v3266_v31 = vrot.slane %v6974_v59, 7  ;;  %2908 = vmatprep.subr.bf16.mxu1 %v5173_v6 }
 0x1fb   : > { %v3301_v10 = vcombine.low %v6963_v34, %v6984_v32  ;;  %v6998_v52 = vmax.f32 %v2332_v12, %v2452_v39  ;;  %v2204_v50 = vmax.f32 %v2156_v20, 0.0  ;;  %v2157_v41 = vadd.f32 %v6575_v37, %v2097_v55 }
 0x1fc   : > { %v2339_v40 = vrot.slane %v2237_v63, %v6582_v3  ;;  %v2098_v38 = vadd.f32 %v2022_v11, %v6709_v0  ;;  %v2024_v34 = vpop.f32.mrf.mxu0  ;;  %v2600_v9 = vsel %vm6809_vm9, %v4716_v2, %v2599_v21  ;;  %v2601_v25 = vrot.slane %v2599_v21, 4  ;;  %v5174_v2 = vld [vmem:[%s7608_s3 + $0x30] ss:$8 sps:$4 sm:$0xff]  }
 0x1fd   : > { %v3267_v12 = vsel %vm6830_vm10, %v4812_v26, %v3266_v31  ;;  %v2238_v57 = vmax.f32 %v2203_v54, %v2204_v50  ;;  %v2205_v1 = vmax.f32 %v2157_v41, 0.0  ;;  %v2099_v58 = vadd.f32 %v2024_v34, %v6715_v28  ;;  %2909 = vmatpush1.bf16.msra.mxu1 %v5171_v27  ;;  %v5179_v54 = vld [vmem:[%s7608_s3 + $0x24] ss:$8 sps:$4 sm:$0xff]  }
 0x1fe   : > { %v2453_v56 = vrot.slane %v2339_v40, 4  ;;  %v2158_v6 = vadd.f32 %v6579_v51, %v2098_v38  ;;  %v2026_v32 = vpop.f32.mrf.mxu0  ;;  %v2602_v39 = vrot.slane %v6998_v52, 5  ;;  %v3268_v63 = vrot.slane %v3266_v31, 4  ;;  %2910 = vmatprep.subr.bf16.mxu1 %v5176_v29 }
 0x1ff   : > { %v3269_v0 = vrot.slane %v6998_v52, 7  ;;  %v2346_v26 = vrot.slane %v2238_v57, %v6582_v3  ;;  %v2159_v55 = vadd.f32 %v6575_v37, %v2099_v58  ;;  %v2100_v28 = vadd.f32 %v2026_v32, %v6719_v33 }
 0x200   : > { %v7017_v20 = vmax.f32 %v2339_v40, %v2453_v56  ;;  %v2206_v11 = vmax.f32 %v2158_v6, 0.0  ;;  %v2030_v21 = vpop.f32.mrf.mxu0  ;;  %v2603_v31 = vsel %vm6809_vm9, %v2601_v25, %v2602_v39  ;;  %v7032_v40 = vpack.c.bf16 %v2530_v16, %v2529_v24 }
 0x201   : > { %v3270_v27 = vsel %vm6830_vm10, %v3268_v63, %v3269_v0  ;;  %v2454_v50 = vrot.slane %v2346_v26, 4  ;;  %v2207_v33 = vmax.f32 %v2159_v55, 0.0  ;;  %v2160_v41 = vadd.f32 %v6579_v51, %v2100_v28  ;;  %2911 = vmatpush1.bf16.msra.mxu1 %v5174_v2 }
 0x202   : > { %v2101_v29 = vadd.f32 %v2030_v21, %v6723_v46  ;;  %v2239_v38 = vmax.f32 %v2205_v1, %v2206_v11  ;;  %v2032_v34 = vpop.f32.mrf.mxu0  ;;  %v2635_v56 = vcombine.low %v2600_v9, %v2603_v31  ;;  %v3302_v57 = vcombine.low %v3267_v12, %v3270_v27  ;;  %2912 = vmatprep.subr.bf16.mxu1 %v5179_v54  ;;  %v5177_v1 = vld [vmem:[%s7608_s3 + $0x20] ss:$8 sps:$4 sm:$0xff]  }
 0x203   : > { %v4717_v25 = vrot.slane %v7017_v20, 9  ;;  %v7037_v58 = vmax.f32 %v2346_v26, %v2454_v50  ;;  %v2208_v6 = vmax.f32 %v2160_v41, 0.0  ;;  %v2102_v24 = vadd.f32 %v2032_v34, %v6728_v14  ;;  %v5182_v26 = vld [vmem:[%s7608_s3 + $0x14] ss:$8 sps:$4 sm:$0xff]  }
 0x204   : > { %v2161_v32 = vadd.f32 %v6575_v37, %v2101_v29  ;;  %v2353_v16 = vrot.slane %v2239_v38, %v6582_v3  ;;  %v2034_v39 = vpop.f32.mrf.mxu0  ;;  %v2649_v46 = vpack.c.bf16 %v2635_v56, %v2634_v7  ;;  %v3316_v9 = vpack.c.bf16 %v3302_v57, %v3301_v10  ;;  %v5185_v56 = vld [vmem:[%s7608_s3 + $0x4] ss:$8 sps:$4 sm:$0xff]  }
 0x205   : > { %v4813_v12 = vrot.slane %v7017_v20, 11  ;;  %v2240_v63 = vmax.f32 %v2207_v33, %v2208_v6  ;;  %v2162_v2 = vadd.f32 %v6579_v51, %v2102_v24  ;;  %v2103_v14 = vadd.f32 %v2034_v39, %v6733_v8  ;;  %2913 = vmatpush1.bf16.msra.mxu1 %v5177_v1 }
 0x206   : > { %v2209_v0 = vmax.f32 %v2161_v32, 0.0  ;;  %v2455_v55 = vrot.slane %v2353_v16, 4  ;;  %2792 = vmatmul.mubr.bf16.gmra.mxu1 %v2649_v46  ;;  %3459 = vmatmul.mubr.bf16.gmra.mxu0 %v3316_v9  ;;  %v2036_v22 = vpop.f32.mrf.mxu0  ;;  %v2606_v15 = vrot.slane %v7037_v58, 5  ;;  %v3273_v7 = vrot.slane %v7037_v58, 7 }
 0x207   : > { %v2531_v10 = vcombine.low %v6900_v13, %v6913_v30  ;;  %v2360_v28 = vrot.slane %v2240_v63, %v6582_v3  ;;  %v2210_v54 = vmax.f32 %v2162_v2, 0.0  ;;  %v2163_v8 = vadd.f32 %v6575_v37, %v2103_v14  ;;  %2801 = vmatprep.mubr.bf16.mxu1 %v7758_v60  ;;  %3468 = vmatprep.mubr.bf16.mxu0 %v7758_v60 }
 0x208   : > { %v2104_v11 = vadd.f32 %v2036_v22, %v6736_v36  ;;  %v7063_v21 = vmax.f32 %v2353_v16, %v2455_v55  ;;  %v2040_v31 = vpop.f32.mrf.mxu0  ;;  %v7067_v27 = vsel %vm6809_vm9, %v4717_v25, %v2606_v15  ;;  %v2608_v50 = vrot.slane %v2606_v15, 4  ;;  %v5180_v36 = vld [vmem:[%s7608_s3 + $0x10] ss:$8 sps:$4 sm:$0xff]   ;;  %2914 = vmatprep.subr.bf16.mxu1 %v5182_v26  ;;  %v7759_v55 = vld [vmem:[#allocation10_spill] sm:$0xff]  ;;  %v5188_v15 = vld [vmem:[%s7608_s3 + $0x174] ss:$8 sps:$4 sm:$0xff]  }
 0x209   : > { %v7071_v33 = vsel %vm6830_vm10, %v4813_v12, %v3273_v7  ;;  %v2456_v41 = vrot.slane %v2360_v28, 4  ;;  %v2241_v29 = vmax.f32 %v2209_v0, %v2210_v54  ;;  %v2211_v38 = vmax.f32 %v2163_v8, 0.0  ;;  %2915 = vmatpush1.bf16.msra.mxu1 %v5180_v36  ;;  %v5183_v0 = vld [vmem:[%s7608_s3] ss:$8 sps:$4 sm:$0xff]  }
 0x20a   : > { %v2164_v34 = vadd.f32 %v6579_v51, %v2104_v11  ;;  %v2105_v57 = vadd.f32 %v2040_v31, %v6740_v43  ;;  %v2042_v25 = vpop.f32.mrf.mxu0  ;;  %v2609_v6 = vrot.slane %v7063_v21, 5  ;;  %v3275_v32 = vrot.slane %v3273_v7, 4  ;;  %2916 = vmatprep.subr.bf16.mxu1 %v5185_v56 }
 0x20b   : > { %v3276_v24 = vrot.slane %v7063_v21, 7  ;;  %v7083_v16 = vmax.f32 %v2360_v28, %v2456_v41  ;;  %v2367_v39 = vrot.slane %v2241_v29, %v6582_v3  ;;  %v2106_v9 = vadd.f32 %v2042_v25, %v6744_v62  ;;  %v7760_v29 = vld [vmem:[#allocation11_spill] sm:$0xff] }
 0x20c   : > { %v2212_v46 = vmax.f32 %v2164_v34, 0.0  ;;  %v2165_v12 = vadd.f32 %v6575_v37, %v2105_v57  ;;  %v2044_v1 = vpop.f32.mrf.mxu0  ;;  %v7090_v63 = vsel %vm6809_vm9, %v2608_v50, %v2609_v6  ;;  %v2532_v2 = vcombine.low %v6955_v47, %v6974_v59 }
 0x20d   : > { %v7094_v43 = vsel %vm6830_vm10, %v3275_v32, %v3276_v24  ;;  %v2457_v62 = vrot.slane %v2367_v39, 4  ;;  %v2166_v26 = vadd.f32 %v6579_v51, %v2106_v9  ;;  %v2107_v22 = vadd.f32 %v2044_v1, %v7759_v55  ;;  %2917 = vmatpush1.bf16.msra.mxu1 %v5183_v0 }
 0x20e   : > { %v2242_v14 = vmax.f32 %v2211_v38, %v2212_v46  ;;  %v2213_v7 = vmax.f32 %v2165_v12, 0.0  ;;  %v2046_v28 = vpop.f32.mrf.mxu0  ;;  %v4718_v54 = vrot.slane %v7083_v16, 9  ;;  %v2636_v8 = vcombine.low %v7067_v27, %v7090_v63  ;;  %3151 = vmatprep.subr.bf16.mxu1 %v5188_v15 }
 0x20f   : > { %v4814_v11 = vrot.slane %v7083_v16, 11  ;;  %v7110_v31 = vmax.f32 %v2367_v39, %v2457_v62  ;;  %v2214_v36 = vmax.f32 %v2166_v26, 0.0  ;;  %v2167_v41 = vadd.f32 %v6575_v37, %v2107_v22 }
 0x210   : > { %v2374_v50 = vrot.slane %v2242_v14, %v6582_v3  ;;  %v2108_v38 = vadd.f32 %v2046_v28, %v7760_v29  ;;  %v2050_v34 = vpop.f32.mrf.mxu0  ;;  %v3303_v56 = vcombine.low %v7071_v33, %v7094_v43  ;;  %v7117_v57 = vpack.c.bf16 %v2532_v2, %v2531_v10 }
 0x211   : > { %v2533_v25 = vcombine.low %v7017_v20, %v7037_v58  ;;  %v2243_v32 = vmax.f32 %v2213_v7, %v2214_v36  ;;  %v2215_v24 = vmax.f32 %v2167_v41, 0.0  ;;  %v2109_v39 = vadd.f32 %v2050_v34, %v6762_v53 }
 0x212   : > { %v2458_v6 = vrot.slane %v2374_v50, 4  ;;  %v2168_v46 = vadd.f32 %v6579_v51, %v2108_v38  ;;  %v2052_v9 = vpop.f32.mrf.mxu0  ;;  %v2613_v12 = vrot.slane %v7110_v31, 5  ;;  %v3280_v1 = vrot.slane %v7110_v31, 7 }
 0x213   : > { %v2534_v10 = vcombine.low %v7083_v16, %v7110_v31  ;;  %v2381_v43 = vrot.slane %v2243_v32, %v6582_v3  ;;  %v2169_v0 = vadd.f32 %v6575_v37, %v2109_v39  ;;  %v2110_v2 = vadd.f32 %v2052_v9, %v6766_v35 }
 0x214   : > { %v7127_v33 = vmax.f32 %v2374_v50, %v2458_v6  ;;  %v2216_v53 = vmax.f32 %v2168_v46, 0.0  ;;  %v2054_v62 = vpop.f32.mrf.mxu0  ;;  %v2614_v14 = vsel %vm6809_vm9, %v4718_v54, %v2613_v12  ;;  %v2615_v26 = vrot.slane %v2613_v12, 4 }
 0x215   : > { %v3281_v55 = vsel %vm6830_vm10, %v4814_v11, %v3280_v1  ;;  %v2459_v22 = vrot.slane %v2381_v43, 4  ;;  %v2217_v15 = vmax.f32 %v2169_v0, 0.0  ;;  %v2170_v7 = vadd.f32 %v6579_v51, %v2110_v2 }
 0x216   : > { %v2111_v28 = vadd.f32 %v2054_v62, %v6770_v45  ;;  %v2244_v50 = vmax.f32 %v2215_v24, %v2216_v53  ;;  %v2056_v36 = vpop.f32.mrf.mxu0  ;;  %v2616_v35 = vrot.slane %v7127_v33, 5  ;;  %v3282_v41 = vrot.slane %v3280_v1, 4 }
 0x217   : > { %v3283_v29 = vrot.slane %v7127_v33, 7  ;;  %v7140_v54 = vmax.f32 %v2381_v43, %v2459_v22  ;;  %v2218_v38 = vmax.f32 %v2170_v7, 0.0  ;;  %v2112_v34 = vadd.f32 %v2056_v36, %v6778_v42  ;;  %v7761_v7 = vld [vmem:[#allocation12_spill] sm:$0xff] }
 0x218   : > { %v2171_v11 = vadd.f32 %v6575_v37, %v2111_v28  ;;  %v2388_v6 = vrot.slane %v2244_v50, %v6582_v3  ;;  %v2060_v32 = vpop.f32.mrf.mxu0  ;;  %v2617_v45 = vsel %vm6809_vm9, %v2615_v26, %v2616_v35  ;;  %v7149_v39 = vpack.c.bf16 %v2534_v10, %v2533_v25 }
 0x219   : > { %v3284_v24 = vsel %vm6830_vm10, %v3282_v41, %v3283_v29  ;;  %v2245_v46 = vmax.f32 %v2217_v15, %v2218_v38  ;;  %v2172_v12 = vadd.f32 %v6579_v51, %v2112_v34  ;;  %v2113_v1 = vadd.f32 %v2060_v32, %v6782_v5  ;;  %v7762_v41 = vld [vmem:[#allocation13_spill] sm:$0xff] }
 0x21a   : > { %v2219_v9 = vmax.f32 %v2171_v11, 0.0  ;;  %v2460_v43 = vrot.slane %v2388_v6, 4  ;;  %v2062_v0 = vpop.f32.mrf.mxu0  ;;  %v2637_v42 = vcombine.low %v2614_v14, %v2617_v45  ;;  %v3304_v2 = vcombine.low %v3281_v55, %v3284_v24  ;;  %v5195_v45 = vld [vmem:[%s7608_s3 + $0x140] ss:$8 sps:$4 sm:$0xff]  }
 0x21b   : > { %v4719_v53 = vrot.slane %v7140_v54, 9  ;;  %v2395_v62 = vrot.slane %v2245_v46, %v6582_v3  ;;  %v2220_v26 = vmax.f32 %v2172_v12, 0.0  ;;  %v2173_v22 = vadd.f32 %v6575_v37, %v2113_v1 }
 0x21c   : > { %v2114_v25 = vadd.f32 %v2062_v0, %v7761_v7  ;;  %v7157_v10 = vmax.f32 %v2388_v6, %v2460_v43  ;;  %v2064_v15 = vpop.f32.mrf.mxu0  ;;  %v2650_v5 = vpack.c.bf16 %v2637_v42, %v2636_v8  ;;  %v3317_v28 = vpack.c.bf16 %v3304_v2, %v3303_v56  ;;  %v7763_v6 = vld [vmem:[#allocation15_spill] sm:$0xff] }
 0x21d   : > { %v4815_v14 = vrot.slane %v7140_v54, 11  ;;  %v2461_v55 = vrot.slane %v2395_v62, 4  ;;  %v2246_v50 = vmax.f32 %v2219_v9, %v2220_v26  ;;  %v2221_v36 = vmax.f32 %v2173_v22, 0.0 }
 0x21e   : > { %v2174_v35 = vadd.f32 %v6579_v51, %v2114_v25  ;;  %v2115_v29 = vadd.f32 %v2064_v15, %v7762_v41  ;;  %2802 = vmatmul.mubr.bf16.gmra.mxu1 %v2650_v5  ;;  %3469 = vmatmul.mubr.bf16.gmra.mxu0 %v3317_v28  ;;  %v2066_v38 = vpop.f32.mrf.mxu0  ;;  %v2620_v11 = vrot.slane %v7157_v10, 5  ;;  %v3287_v34 = vrot.slane %v7157_v10, 7 }
 0x21f   : > { %v2535_v27 = vcombine.low %v7140_v54, %v7157_v10  ;;  %v7169_v63 = vmax.f32 %v2395_v62, %v2461_v55  ;;  %v2402_v8 = vrot.slane %v2246_v50, %v6582_v3  ;;  %v2116_v32 = vadd.f32 %v2066_v38, %v7763_v6  ;;  %2811 = vmatprep.mubr.bf16.mxu1 %v7758_v60  ;;  %v7770_v50 = vld [vmem:[#allocation14_spill] sm:$0xff] }
 0x220   : > { %v2222_v56 = vmax.f32 %v2174_v35, 0.0  ;;  %3478 = vmatprep.mubr.bf16.mxu0 %v7758_v60  ;;  %v2175_v24 = vadd.f32 %v6575_v37, %v2115_v29  ;;  %v7184_v46 = vsel %vm6809_vm9, %v4719_v53, %v2620_v11  ;;  %v2622_v9 = vrot.slane %v2620_v11, 4 }
 0x221   : > { %v7188_v12 = vsel %vm6830_vm10, %v4815_v14, %v3287_v34  ;;  %v2462_v1 = vrot.slane %v2402_v8, 4  ;;  %v2176_v0 = vadd.f32 %v6579_v51, %v2116_v32  ;;  %v2623_v42 = vrot.slane %v7169_v63, 5  ;;  %v7768_v14 = vld [vmem:[#allocation16_spill] sm:$0xff] }
 0x222   : > { %v2247_v43 = vmax.f32 %v2221_v36, %v2222_v56  ;;  %v2223_v2 = vmax.f32 %v2175_v24, 0.0  ;;  %v3289_v62 = vrot.slane %v3287_v34, 4  ;;  %v3290_v26 = vrot.slane %v7169_v63, 7  ;;  %v7773_v56 = vld [vmem:[#allocation18_spill] sm:$0xff] }
 0x223   : > { %v7766_v37 = vrot.slane %v6798_v44, 6  ;;  %v7767_v53 = vrot.slane %v6773_v19, 10  ;;  %v7199_v7 = vmax.f32 %v2402_v8, %v2462_v1  ;;  %v2224_v15 = vmax.f32 %v2176_v0, 0.0 }
 0x224   : > { %v2409_v25 = vrot.slane %v2247_v43, %v6582_v3  ;;  %v2624_v51 = vsel %vm6809_vm9, %v2622_v9, %v2623_v42  ;;  %v3291_v28 = vsel %vm6830_vm10, %v3289_v62, %v3290_v26  ;;  %v7769_v55 = vrot.slane %v7768_v14, 6 }
 0x225   : > { %v2981_v22 = vsel %vm7177_vm13, %v7767_v53, %v7766_v37  ;;  %v2638_v5 = vcombine.low %v7184_v46, %v2624_v51  ;;  %v7771_v36 = vrot.slane %v6866_v4, 6  ;;  %v7772_v35 = vrot.slane %v6855_v17, 10 }
 0x226   : > { %v2984_v19 = vsel %vm7177_vm13, %v7770_v50, %v7769_v55  ;;  %v2463_v29 = vrot.slane %v2409_v25, 4  ;;  %v2248_v38 = vmax.f32 %v2223_v2, %v2224_v15  ;;  %v4720_v11 = vrot.slane %v7199_v7, 9 }
 0x227   : > { %v2988_v41 = vsel %vm7177_vm13, %v7772_v35, %v7771_v36  ;;  %v4816_v34 = vrot.slane %v7199_v7, 11  ;;  %v3305_v8 = vcombine.low %v7188_v12, %v3291_v28  ;;  %v2991_v6 = vsel %vm7177_vm13, %v7773_v56, %v2990_v61 }
 0x228   : > { %v3034_v32 = vcombine.low %v2981_v22, %v2984_v19  ;;  %v4771_v17 = vrot.slane %v6900_v13, 10  ;;  %v7227_v24 = vmax.f32 %v2409_v25, %v2463_v29  ;;  %v2416_v46 = vrot.slane %v2248_v38, %v6582_v3 }
 0x229   : > { %v3035_v9 = vcombine.low %v2988_v41, %v2991_v6  ;;  %v2994_v1 = vrot.slane %v6913_v30, 6  ;;  %v2997_v43 = vrot.slane %v6926_v49, 6  ;;  %v4772_v12 = vrot.slane %v6955_v47, 10 }
 0x22a   : > { %v3001_v0 = vrot.slane %v6974_v59, 6  ;;  %v3004_v42 = vrot.slane %v6998_v52, 6  ;;  %v2464_v2 = vrot.slane %v2416_v46, 4  ;;  %v2627_v61 = vrot.slane %v7227_v24, 5 }
 0x22b   : > { %v3294_v13 = vrot.slane %v7227_v24, 7  ;;  %v2536_v62 = vcombine.low %v7199_v7, %v7227_v24  ;;  %v7239_v26 = vpack.c.bf16 %v3035_v9, %v3034_v32  ;;  %v2995_v37 = vsel %vm7177_vm13, %v4771_v17, %v2994_v1 }
 0x22c   : > { %v2996_v53 = vrot.slane %v2994_v1, 4  ;;  %v3002_v47 = vsel %vm7177_vm13, %v4772_v12, %v3001_v0  ;;  %v2512_v22 = vmax.f32 %v2416_v46, %v2464_v2  ;;  %v2628_v25 = vsel %vm6809_vm9, %v4720_v11, %v2627_v61 }
 0x22d   : > { %v2629_v15 = vrot.slane %v2627_v61, 4  ;;  %v3295_v51 = vsel %vm6830_vm10, %v4816_v34, %v3294_v13  ;;  %v3296_v28 = vrot.slane %v3294_v13, 4  ;;  %v7249_v55 = vpack.c.bf16 %v2536_v62, %v2535_v27 }
 0x22e   : > { %v2998_v50 = vsel %vm7177_vm13, %v2996_v53, %v2997_v43  ;;  %v3003_v19 = vrot.slane %v3001_v0, 4  ;;  %v2630_v36 = vrot.slane %v2512_v22, 5  ;;  %v3297_v35 = vrot.slane %v2512_v22, 7 }
 0x22f   : > { %v3036_v41 = vcombine.low %v2995_v37, %v2998_v50  ;;  %v4773_v29 = vrot.slane %v7017_v20, 10  ;;  %v3008_v11 = vrot.slane %v7037_v58, 6  ;;  %v3011_v56 = vrot.slane %v7063_v21, 6 }
 0x230   : > { %v3005_v38 = vsel %vm7177_vm13, %v3003_v19, %v3004_v42  ;;  %v4774_v34 = vrot.slane %v7083_v16, 10  ;;  %v2631_v27 = vsel %vm6809_vm9, %v2629_v15, %v2630_v36  ;;  %v3298_v6 = vsel %vm6830_vm10, %v3296_v28, %v3297_v35 }
 0x231   : > { %v3037_v32 = vcombine.low %v3002_v47, %v3005_v38  ;;  %v3015_v17 = vrot.slane %v7110_v31, 6  ;;  %v2639_v46 = vcombine.low %v2628_v25, %v2631_v27  ;;  %v3306_v20 = vcombine.low %v3295_v51, %v3298_v6  ;;  %v5186_v38 = vld [vmem:[%s7608_s3 + $0x170] ss:$8 sps:$4 sm:$0xff]   ;;  %v5206_v27 = vld [vmem:[%s7608_s3 + $0x114] ss:$8 sps:$4 sm:$0xff]  }
 0x232   : > { %v3009_v9 = vsel %vm7177_vm13, %v4773_v29, %v3008_v11  ;;  %v3010_v1 = vrot.slane %v3008_v11, 4  ;;  %v3018_v48 = vrot.slane %v7127_v33, 6  ;;  %v4775_v2 = vrot.slane %v7140_v54, 10  ;;  %v5204_v6 = vld [vmem:[%s7608_s3 + $0x110] ss:$8 sps:$4 sm:$0xff]  }
 0x233   : > { %v7266_v43 = vpack.c.bf16 %v3037_v32, %v3036_v41  ;;  %v3016_v16 = vsel %vm7177_vm13, %v4774_v34, %v3015_v17  ;;  %v3017_v12 = vrot.slane %v3015_v17, 4  ;;  %v2651_v0 = vpack.c.bf16 %v2639_v46, %v2638_v5  ;;  %v5201_v34 = vld [vmem:[%s7608_s3 + $0x120] ss:$8 sps:$4 sm:$0xff]   ;;  %v5212_v17 = vld [vmem:[%s7608_s3 + $0x274] ss:$8 sps:$4 sm:$0xff]  }
 0x234   : > { %v3318_v18 = vpack.c.bf16 %v3306_v20, %v3305_v8  ;;  %v3012_v42 = vsel %vm7177_vm13, %v3010_v1, %v3011_v56  ;;  %v3022_v62 = vrot.slane %v7157_v10, 6  ;;  %v3025_v37 = vrot.slane %v7169_v63, 6  ;;  %v5207_v32 = vld [vmem:[%s7608_s3 + $0x100] ss:$8 sps:$4 sm:$0xff]   ;;  %v5210_v46 = vld [vmem:[%s7608_s3 + $0x270] ss:$8 sps:$4 sm:$0xff]  }
 0x235   : > { %v3019_v61 = vsel %vm7177_vm13, %v3017_v12, %v3018_v48  ;;  %v3038_v13 = vcombine.low %v3009_v9, %v3012_v42  ;;  %2812 = vmatmul.mubr.bf16.gmra.mxu1 %v2651_v0  ;;  %v4776_v47 = vrot.slane %v7199_v7, 10  ;;  %v3029_v5 = vrot.slane %v7227_v24, 6  ;;  %v5213_v20 = vld [vmem:[%s7608_s3 + $0x260] ss:$8 sps:$4 sm:$0xff]   ;;  %v5218_v9 = vld [vmem:[%s7608_s3 + $0x254] ss:$8 sps:$4 sm:$0xff]  }
 0x236   : > { %3479 = vmatmul.mubr.bf16.gmra.mxu0 %v3318_v18  ;;  %v3039_v53 = vcombine.low %v3016_v16, %v3019_v61  ;;  %v3032_v8 = vrot.slane %v2512_v22, 6  ;;  %2934 = vmatprep.mubr.bf16.mxu1 %v7758_v60  ;;  %v3023_v54 = vsel %vm7177_vm13, %v4775_v2, %v3022_v62  ;;  %v3024_v25 = vrot.slane %v3022_v62, 4  ;;  %v5216_v1 = vld [vmem:[%s7608_s3 + $0x250] ss:$8 sps:$4 sm:$0xff]   ;;  %v5219_v16 = vld [vmem:[%s7608_s3 + $0x240] ss:$8 sps:$4 sm:$0xff]  }
 0x237   : > { %v7774_v15 = vcombine.low %v6798_v44, %v7768_v14  ;;  %v7775_v51 = vcombine.low %v6866_v4, %v6887_v23  ;;  %v3030_v7 = vsel %vm7177_vm13, %v4776_v47, %v3029_v5  ;;  %v3031_v19 = vrot.slane %v3029_v5, 4  ;;  %v5224_v12 = vld [vmem:[%s7608_s3 + $0x234] ss:$8 sps:$4 sm:$0xff]   ;;  %v5222_v48 = vld [vmem:[%s7608_s3 + $0x230] ss:$8 sps:$4 sm:$0xff]  }
 0x238   : > { %v7291_v50 = vpack.c.bf16 %v3039_v53, %v3038_v13  ;;  %v3508_v36 = vcombine.low %v6974_v59, %v6998_v52  ;;  %v3026_v35 = vsel %vm7177_vm13, %v3024_v25, %v3025_v37  ;;  %v3509_v44 = vcombine.low %v7037_v58, %v7063_v21  ;;  %v5191_v58 = vld [vmem:[%s7608_s3 + $0x164] ss:$8 sps:$4 sm:$0xff]   ;;  %v5225_v0 = vld [vmem:[%s7608_s3 + $0x220] ss:$8 sps:$4 sm:$0xff]   ;;  %v5230_v18 = vld [vmem:[%s7608_s3 + $0x214] ss:$8 sps:$4 sm:$0xff]  }
 0x239   : > { %v7289_v28 = vpack.c.bf16 %v7775_v51, %v7774_v15  ;;  %v3510_v4 = vcombine.low %v7110_v31, %v7127_v33  ;;  %v3511_v23 = vcombine.low %v7157_v10, %v7169_v63  ;;  %v3033_v14 = vsel %vm7177_vm13, %v3031_v19, %v3032_v8  ;;  %v5189_v33 = vld [vmem:[%s7608_s3 + $0x160] ss:$8 sps:$4 sm:$0xff]   ;;  %v5194_v10 = vld [vmem:[%s7608_s3 + $0x154] ss:$8 sps:$4 sm:$0xff]   ;;  %v5192_v63 = vld [vmem:[%s7608_s3 + $0x150] ss:$8 sps:$4 sm:$0xff]  }
 0x23a   : > { %v3040_v41 = vcombine.low %v3023_v54, %v3026_v35  ;;  %v3512_v29 = vcombine.low %v7227_v24, %v2512_v22  ;;  %v3041_v11 = vcombine.low %v3030_v7, %v3033_v14  ;;  %v5200_v24 = vld [vmem:[%s7608_s3 + $0x134] ss:$8 sps:$4 sm:$0xff]   ;;  %v5198_v22 = vld [vmem:[%s7608_s3 + $0x130] ss:$8 sps:$4 sm:$0xff]   ;;  %v5233_v2 = vld [vmem:[%s7608_s3 + $0x204] ss:$8 sps:$4 sm:$0xff]   ;;  %v3507_v13 = vcombine.low %v6913_v30, %v6926_v49 }
 0x23b   : > { %v7311_v56 = vpack.c.bf16 %v3510_v4, %v3509_v44  ;;  %v5228_v42 = vld [vmem:[%s7608_s3 + $0x210] ss:$8 sps:$4 sm:$0xff]   ;;  %v5231_v61 = vld [vmem:[%s7608_s3 + $0x200] ss:$8 sps:$4 sm:$0xff]  }
 0x23c   : > { %v7316_v21 = vpack.c.bf16 %v3512_v29, %v3511_v23  ;;  %v7318_v31 = vpack.c.bf16 %v3041_v11, %v3040_v41  ;;  %v3522_v62 = vpack.c.bf16 %v3508_v36, %v3507_v13  ;;  %v5234_v5 = vld [vmem:[#allocation2 + $0x78] sm:$0xff]   ;;  %v5238_v51 = vld [vmem:[#allocation2 + $0x70] sm:$0xff]   ;;  %v5242_v36 = vld [vmem:[#allocation2 + $0x68] sm:$0xff]  }
 0x23d   : > { %2935 = vmatmul.mubr.bf16.vlgmr.msra.gmra.mxu1 %v7032_v40  ;;  %v5197_v40 = vld [vmem:[%s7608_s3 + $0x144] ss:$8 sps:$4 sm:$0xff]   ;;  %v5235_v8 = vld [vmem:[#allocation2 + $0xf8] sm:$0xff]   ;;  %4935 = vmatprep.subr.bf16.mxu0 %v5234_v5  ;;  %v5241_v19 = vld [vmem:[#allocation2 + $0xb0] sm:$0xff]  }
 0x23e   : > { %3152 = vmatpush1.bf16.msra.mxu1 %v5186_v38  ;;  %2944 = vmatprep.mubr.bf16.mxu1 %v7758_v60  ;;  %v5236_v54 = vld [vmem:[#allocation2 + $0x38] sm:$0xff]   ;;  %v5243_v35 = vld [vmem:[#allocation2 + $0xe8] sm:$0xff]   ;;  %v5246_v23 = vld [vmem:[#allocation2 + $0x60] sm:$0xff]  }
 0x23f   : > { %3153 = vmatprep.subr.bf16.mxu1 %v5191_v58  ;;  %v5237_v25 = vld [vmem:[#allocation2 + $0xb8] sm:$0xff]   ;;  %4936 = vmatpush3.bf16.msra.mxu0 %v5236_v54  ;;  %v5244_v44 = vld [vmem:[#allocation2 + $0x28] sm:$0xff]   ;;  %v5247_v14 = vld [vmem:[#allocation2 + $0xe0] sm:$0xff]  }
 0x240   : > { %4937 = vmatprep.subr.bf16.mxu0 %v5238_v51  ;;  %v5245_v4 = vld [vmem:[#allocation2 + $0xa8] sm:$0xff]   ;;  %v5248_v29 = vld [vmem:[#allocation2 + $0x20] sm:$0xff]   ;;  %v5250_v11 = vld [vmem:[#allocation2 + $0x58] sm:$0xff]  }
 0x241   : > { %v5249_v38 = vld [vmem:[#allocation2 + $0xa0] sm:$0xff]  }
 0x242   : > { %3154 = vmatpush1.bf16.msra.mxu1 %v5189_v33  ;;  %v5253_v33 = vld [vmem:[#allocation2 + $0x98] sm:$0xff]  }
 0x243   : > { %3155 = vmatprep.subr.bf16.mxu1 %v5194_v10  ;;  %v5254_v10 = vld [vmem:[#allocation2 + $0x50] sm:$0xff]  }
 0x245   : > { %2945 = vmatmul.mubr.bf16.gmra.mxu1 %v7117_v57  ;;  %v5203_v57 = vld [vmem:[%s7608_s3 + $0x124] ss:$8 sps:$4 sm:$0xff]  }
 0x246   : > { %3156 = vmatpush1.bf16.msra.mxu1 %v5192_v63  ;;  %2954 = vmatprep.mubr.bf16.mxu1 %v7758_v60  ;;  %v5255_v63 = vld [vmem:[#allocation2 + $0xd0] sm:$0xff]  }
 0x247   : > { %3157 = vmatprep.subr.bf16.mxu1 %v5197_v40 }
 0x24a   : > { %3158 = vmatpush1.bf16.msra.mxu1 %v5195_v45 }
 0x24b   : > { %3159 = vmatprep.subr.bf16.mxu1 %v5200_v24  ;;  %v5256_v24 = vld [vmem:[#allocation2 + $0x10] sm:$0xff]  }
 0x24d   : > { %2955 = vmatmul.mubr.bf16.gmra.mxu1 %v7149_v39  ;;  %v5209_v39 = vld [vmem:[%s7608_s3 + $0x104] ss:$8 sps:$4 sm:$0xff]  }
 0x24e   : > { %3160 = vmatpush1.bf16.msra.mxu1 %v5198_v22  ;;  %2964 = vmatprep.mubr.bf16.mxu1 %v7758_v60  ;;  %v5257_v22 = vld [vmem:[#allocation2 + $0x90] sm:$0xff]  }
 0x24f   : > { %3161 = vmatprep.subr.bf16.mxu1 %v5203_v57  ;;  %v5258_v57 = vld [vmem:[#allocation2 + $0x48] sm:$0xff]  }
 0x252   : > { %3162 = vmatpush1.bf16.msra.mxu1 %v5201_v34  ;;  %v5259_v34 = vld [vmem:[#allocation2 + $0xc8] sm:$0xff]  }
 0x253   : > { %3163 = vmatprep.subr.bf16.mxu1 %v5206_v27 }
 0x255   : > { %2965 = vmatmul.mubr.bf16.gmra.mxu1 %v7249_v55  ;;  %v5215_v55 = vld [vmem:[%s7608_s3 + $0x264] ss:$8 sps:$4 sm:$0xff]  }
 0x256   : > { %3164 = vmatpush1.bf16.msra.mxu1 %v5204_v6  ;;  %3183 = vmatprep.mubr.bf16.mxu1 %v7758_v60 }
 0x257   : > { %3165 = vmatprep.subr.bf16.mxu1 %v5209_v39  ;;  %v5260_v39 = vld [vmem:[#allocation2 + $0x8] sm:$0xff]  }
 0x25a   : > { %3166 = vmatpush1.bf16.msra.mxu1 %v5207_v32  ;;  %v5261_v32 = vld [vmem:[#allocation2 + $0x88] sm:$0xff]  }
 0x25b   : > { %3622 = vmatprep.subr.bf16.mxu1 %v5212_v17  ;;  %v5262_v17 = vld [vmem:[#allocation2 + $0x40] sm:$0xff]  }
 0x25d   : > { %3184 = vmatmul.mubr.bf16.vlgmr.msra.gmra.mxu1 %v7239_v26  ;;  %v5221_v26 = vld [vmem:[%s7608_s3 + $0x244] ss:$8 sps:$4 sm:$0xff]  }
 0x25e   : > { %3623 = vmatpush1.bf16.msra.mxu1 %v5210_v46  ;;  %3193 = vmatprep.mubr.bf16.mxu1 %v7758_v60  ;;  %v5263_v46 = vld [vmem:[#allocation2 + $0xc0] sm:$0xff]  }
 0x25f   : > { %3624 = vmatprep.subr.bf16.mxu1 %v5215_v55 }
 0x262   : > { %3625 = vmatpush1.bf16.msra.mxu1 %v5213_v20 }
 0x263   : > { %3626 = vmatprep.subr.bf16.mxu1 %v5218_v9  ;;  %v5264_v9 = vld [vmem:[#allocation2] sm:$0xff]  }
 0x265   : > { %3194 = vmatmul.mubr.bf16.gmra.mxu1 %v7266_v43  ;;  %v5227_v43 = vld [vmem:[%s7608_s3 + $0x224] ss:$8 sps:$4 sm:$0xff]  }
 0x266   : > { %3627 = vmatpush1.bf16.msra.mxu1 %v5216_v1  ;;  %3203 = vmatprep.mubr.bf16.mxu1 %v7758_v60  ;;  %v5265_v1 = vld [vmem:[#allocation2 + $0x80] sm:$0xff]  }
 0x267   : > { %3628 = vmatprep.subr.bf16.mxu1 %v5221_v26 }
 0x26a   : > { %3629 = vmatpush1.bf16.msra.mxu1 %v5219_v16 }
 0x26b   : > { %3630 = vmatprep.subr.bf16.mxu1 %v5224_v12 }
 0x26d   : > { %3204 = vmatmul.mubr.bf16.gmra.mxu1 %v7291_v50  ;;  %v5240_v50 = vld [vmem:[#allocation2 + $0x30] sm:$0xff]  }
 0x26e   : > { %3631 = vmatpush1.bf16.msra.mxu1 %v5222_v48  ;;  %3213 = vmatprep.mubr.bf16.mxu1 %v7758_v60 }
 0x26f   : > { %3632 = vmatprep.subr.bf16.mxu1 %v5227_v43  ;;  %4938 = vmatpush3.bf16.msra.mxu0 %v5240_v50  ;;  %v5394_v43 = vmov 0.0  }
 0x270   : > { %4939 = vmatprep.subr.bf16.mxu0 %v5242_v36 }
 0x272   : > { %3633 = vmatpush1.bf16.msra.mxu1 %v5225_v0 }
 0x273   : > { %3634 = vmatprep.subr.bf16.mxu1 %v5230_v18  ;;  %4940 = vmatpush3.bf16.msra.mxu0 %v5244_v44 }
 0x274   : > { %4941 = vmatprep.subr.bf16.mxu0 %v5246_v23 }
 0x275   : > { %3214 = vmatmul.mubr.bf16.gmra.mxu1 %v7318_v31  ;;  %v5252_v31 = vld [vmem:[#allocation2 + $0x18] sm:$0xff]  }
 0x276   : > { %3635 = vmatpush1.bf16.msra.mxu1 %v5228_v42  ;;  %3654 = vmatprep.mubr.bf16.mxu1 %v7758_v60 }
 0x277   : > { %3636 = vmatprep.subr.bf16.mxu1 %v5233_v2  ;;  %4942 = vmatpush3.bf16.msra.mxu0 %v5248_v29 }
 0x278   : > { %4943 = vmatprep.subr.bf16.mxu0 %v5250_v11 }
 0x27a   : > { %3637 = vmatpush1.bf16.msra.mxu1 %v5231_v61 }
 0x27b   : > { %4957 = vmatprep.subr.bf16.mxu1 %v5235_v8  ;;  %4944 = vmatpush3.bf16.msra.mxu0 %v5252_v31 }
 0x27c   : > { %4945 = vmatprep.subr.bf16.mxu0 %v5254_v10 }
 0x27d   : > { %3655 = vmatmul.mubr.bf16.vlgmr.msra.gmra.mxu1 %v7289_v28  ;;  %v5239_v28 = vld [vmem:[#allocation2 + $0xf0] sm:$0xff]  }
 0x27e   : > { %3664 = vmatprep.mubr.bf16.mxu1 %v7758_v60  ;;  %4958 = vmatpush3.bf16.msra.mxu1 %v5237_v25 }
 0x27f   : > { %4959 = vmatprep.subr.bf16.mxu1 %v5239_v28  ;;  %4946 = vmatpush3.bf16.msra.mxu0 %v5256_v24 }
 0x280   : > { %4947 = vmatprep.subr.bf16.mxu0 %v5258_v57 }
 0x282   : > { %4960 = vmatpush3.bf16.msra.mxu1 %v5241_v19 }
 0x283   : > { %4961 = vmatprep.subr.bf16.mxu1 %v5243_v35  ;;  %4948 = vmatpush3.bf16.msra.mxu0 %v5260_v39 }
 0x284   : > { %4949 = vmatprep.subr.bf16.mxu0 %v5262_v17 }
 0x285   : > { %3665 = vmatmul.mubr.bf16.gmra.mxu1 %v3522_v62 }
 0x286   : > { %3674 = vmatprep.mubr.bf16.mxu1 %v7758_v60  ;;  %4962 = vmatpush3.bf16.msra.mxu1 %v5245_v4 }
 0x287   : > { %4963 = vmatprep.subr.bf16.mxu1 %v5247_v14  ;;  %4950 = vmatpush3.bf16.msra.mxu0 %v5264_v9 }
 0x288   : > { %4997 = vmatprep.subr.bf16.mxu0 %v5394_v43 }
 0x28a   : > { %4964 = vmatpush3.bf16.msra.mxu1 %v5249_v38 }
 0x28d   : > { %3675 = vmatmul.mubr.bf16.gmra.mxu1 %v7311_v56  ;;  %v5251_v56 = vld [vmem:[#allocation2 + $0xd8] sm:$0xff]  }
 0x28e   : > { %3684 = vmatprep.mubr.bf16.mxu1 %v7758_v60  ;;  %4965 = vmatprep.subr.bf16.mxu1 %v5251_v56 }
 0x28f   : > { %4966 = vmatpush3.bf16.msra.mxu1 %v5253_v33 }
 0x290   : > { %4967 = vmatprep.subr.bf16.mxu1 %v5255_v63 }
 0x293   : > { %4968 = vmatpush3.bf16.msra.mxu1 %v5257_v22 }
 0x294   : > { %4969 = vmatprep.subr.bf16.mxu1 %v5259_v34 }
 0x295   : > { %3685 = vmatmul.mubr.bf16.gmra.mxu1 %v7316_v21 }
 0x297   : > { %4970 = vmatpush3.bf16.msra.mxu1 %v5261_v32  ;;  %v3711_v32 = vld [vmem:[%s7609_s4] sm:$0x3] }
 0x298   : > { %4971 = vmatprep.subr.bf16.mxu1 %v5263_v46 }
 0x29b   : > { %4972 = vmatpush3.bf16.msra.mxu1 %v5265_v1 }
 0x29c   : > { %5017 = vmatprep.subr.bf16.mxu1 %v5394_v43 }
 0x2b0   : > { %v7434_v37 = vpop.f32.mrf.mxu1 }
 0x2b2   : > { %v7436_v53 = vpop.f32.mrf.mxu1  ;;  %v3450_v36 = vpop.f32.mrf.mxu0 }
 0x2b4   : > { %v7438_v47 = vpop.f32.mrf.mxu1  ;;  %v3452_v4 = vpop.f32.mrf.mxu0 }
 0x2b6   : > { %v7440_v30 = vpop.f32.mrf.mxu1 }
 0x2c6   : > { %v7442_v49 = vpop.f32.mrf.mxu1 }
 0x2c8   : > { %v7444_v59 = vpop.f32.mrf.mxu1 }
 0x2ca   : > { %v7446_v52 = vpop.f32.mrf.mxu1 }
 0x2cc   : > { %v7448_v60 = vpop.f32.mrf.mxu1 }
 0x2de   : > { %v7450_v15 = vpop.f32.mrf.mxu1 }
 0x2e0   : > { %v7452_v7 = vpop.f32.mrf.mxu1 }
 0x2e2   : > { %v7454_v41 = vpop.f32.mrf.mxu1 }
 0x2e4   : > { %v2809_v58 = vpop.f32.mrf.mxu1 }
 0x2f5   : > { %v2813_v21 = vpop.f32.mrf.mxu1 }
 0x2f7   : > { %v7456_v40 = vpop.f32.mrf.mxu1 }
 0x2f9   : > { %v7458_v45 = vpop.f32.mrf.mxu1 }
 0x2fb   : > { %v7460_v27 = vpop.f32.mrf.mxu1 }
 0x2fd   : > { %v7462_v6 = vpop.f32.mrf.mxu1 }
 0x2fe   : > { %v2937_v63 = vadd.f32 %v7462_v6, %v7434_v37  ;;  %v7776_v37 = vld [vmem:[#allocation59_spill] sm:$0xff] }
 0x2ff   : > { %v2938_v55 = vpop.f32.mrf.mxu1  ;;  %v7777_v6 = vsub.s32 0, %v7776_v37 }
 0x300   : > { %v2939_v22 = vadd.f32 %v2938_v55, %v7436_v53 }
 0x301   : > { %v2940_v20 = vpop.f32.mrf.mxu1 }
 0x302   : > { %v2941_v17 = vadd.f32 %v2940_v20, %v7438_v47 }
 0x303   : > { %v2942_v26 = vpop.f32.mrf.mxu1 }
 0x304   : > { %v2943_v16 = vadd.f32 %v2942_v26, %v7440_v30 }
 0x305   : > { %v2946_v12 = vpop.f32.mrf.mxu1 }
 0x306   : > { %v2947_v48 = vadd.f32 %v2946_v12, %v7442_v49  ;;  %v7517_v12 = vrot.slane %v3711_v32, %v7777_v6 }
 0x307   : > { %v2948_v0 = vpop.f32.mrf.mxu1 }
 0x308   : > { %v2949_v18 = vadd.f32 %v2948_v0, %v7444_v59 }
 0x309   : > { %v2950_v42 = vpop.f32.mrf.mxu1 }
 0x30a   : > { %v7470_v2 = vadd.f32 %v2950_v42, %v7446_v52 }
 0x30b   : > { %v2952_v61 = vpop.f32.mrf.mxu1 }
 0x30c   : > { %v7473_v13 = vadd.f32 %v2952_v61, %v7448_v60 }
 0x30d   : > { %v2956_v62 = vpop.f32.mrf.mxu1 }
 0x30e   : > { %v7476_v30 = vadd.f32 %v2956_v62, %v7450_v15  ;;  %v7778_v62 = vsub.s32 1, %v7776_v37 }
 0x30f   : > { %v2958_v49 = vpop.f32.mrf.mxu1 }
 0x310   : > { %v7479_v5 = vadd.f32 %v2958_v49, %v7452_v7  ;;  %v7521_v49 = vrot.slane %v3711_v32, %v7778_v62 }
 0x311   : > { %v2960_v8 = vpop.f32.mrf.mxu1 }
 0x312   : > { %v7482_v54 = vadd.f32 %v2960_v8, %v7454_v41  ;;  %v3454_v41 = vpop.f32.mrf.mxu0 }
 0x313   : > { %v2962_v59 = vpop.f32.mrf.mxu1 }
 0x314   : > { %v7484_v25 = vadd.f32 %v2962_v59, %v2809_v58  ;;  %v3456_v11 = vpop.f32.mrf.mxu0 }
 0x315   : > { %v2966_v52 = vpop.f32.mrf.mxu1 }
 0x316   : > { %v7486_v51 = vadd.f32 %v2966_v52, %v2813_v21  ;;  %v3460_v58 = vpop.f32.mrf.mxu0 }
 0x317   : > { %v7488_v60 = vpop.f32.mrf.mxu1 }
 0x318   : > { %v3462_v33 = vpop.f32.mrf.mxu0 }
 0x319   : > { %v7490_v28 = vpop.f32.mrf.mxu1 }
 0x31a   : > { %v3464_v34 = vpop.f32.mrf.mxu0 }
 0x31b   : > { %v7492_v15 = vpop.f32.mrf.mxu1 }
 0x31c   : > { %v3466_v53 = vpop.f32.mrf.mxu0 }
 0x31d   : > { %v3185_v50 = vpop.f32.mrf.mxu1 }
 0x31e   : > { %v3224_v57 = vadd.f32 %v3185_v50, %v2937_v63  ;;  %v3470_v8 = vpop.f32.mrf.mxu0 }
 0x31f   : > { %v3187_v19 = vpop.f32.mrf.mxu1 }
 0x320   : > { %v3225_v46 = vadd.f32 %v3187_v19, %v2939_v22  ;;  %v3489_v26 = vadd.f32 %v3450_v36, %v3224_v57 }
 0x321   : > { %v3189_v7 = vpop.f32.mrf.mxu1 }
 0x322   : > { %v3226_v1 = vadd.f32 %v3189_v7, %v2941_v17  ;;  %v3490_v61 = vadd.f32 %v3452_v4, %v3225_v46 }
 0x323   : > { %v3191_v35 = vpop.f32.mrf.mxu1 }
 0x324   : > { %v3227_v0 = vadd.f32 %v3191_v35, %v2943_v16  ;;  %v3491_v50 = vadd.f32 %v3454_v41, %v3226_v1  ;;  %v3472_v16 = vpop.f32.mrf.mxu0 }
 0x325   : > { %v3195_v44 = vpop.f32.mrf.mxu1 }
 0x326   : > { %v3228_v47 = vadd.f32 %v3195_v44, %v2947_v48  ;;  %v3492_v22 = vadd.f32 %v3456_v11, %v3227_v0  ;;  %v3474_v6 = vpop.f32.mrf.mxu0 }
 0x327   : > { %v3197_v23 = vpop.f32.mrf.mxu1 }
 0x328   : > { %v3229_v19 = vadd.f32 %v3197_v23, %v2949_v18  ;;  %v3493_v4 = vadd.f32 %v3460_v58, %v3228_v47 }
 0x329   : > { %v3199_v14 = vpop.f32.mrf.mxu1 }
 0x32a   : > { %v3230_v48 = vadd.f32 %v3199_v14, %v7470_v2 }
 0x32b   : > { %v3201_v29 = vpop.f32.mrf.mxu1 }
 0x32c   : > { %v3231_v41 = vadd.f32 %v3201_v29, %v7473_v13  ;;  %v3495_v2 = vadd.f32 %v3464_v34, %v3230_v48 }
 0x32d   : > { %v3205_v38 = vpop.f32.mrf.mxu1 }
 0x32e   : > { %v3232_v11 = vadd.f32 %v3205_v38, %v7476_v30 }
 0x32f   : > { %v7494_v56 = vpop.f32.mrf.mxu1 }
 0x330   : > { %v3233_v30 = vadd.f32 %v7494_v56, %v7479_v5 }
 0x331   : > { %v7496_v21 = vpop.f32.mrf.mxu1 }
 0x333   : > { %v7498_v31 = vpop.f32.mrf.mxu1 }
 0x335   : > { %v7500_v10 = vpop.f32.mrf.mxu1 }
 0x336   : > { %v3236_v48 = vadd.f32 %v7500_v10, %v7486_v51 }
 0x337   : > { %v7504_v24 = vpop.f32.mrf.mxu1 }
 0x339   : > { %v7507_v39 = vpop.f32.mrf.mxu1 }
 0x33b   : > { %v7513_v9 = vpop.f32.mrf.mxu1 }
 0x33d   : > { %v3656_v55 = vpop.f32.mrf.mxu1 }
 0x33e   : > { %v3695_v42 = vadd.f32 %v3656_v55, %v3489_v26  ;;  %v3494_v26 = vadd.f32 %v3462_v33, %v3229_v19  ;;  %v5395_v33 = vmov 1935823168   ;;  %v3497_v19 = vadd.f32 %v3470_v8, %v3232_v11 }
 0x33f   : > { %v3658_v20 = vpop.f32.mrf.mxu1  ;;  %v7532_v47 = vunpack.c.l.s4 %v5395_v33 }
 0x340   : > { %v3723_v59 = vadd.f32 %v7517_v12, %v3695_v42  ;;  %v3696_v52 = vadd.f32 %v3658_v20, %v3490_v61  ;;  %v3496_v20 = vadd.f32 %v3466_v53, %v3231_v41  ;;  %v3235_v53 = vadd.f32 %v7498_v31, %v7484_v25 }
 0x341   : > { %v3660_v7 = vpop.f32.mrf.mxu1  ;;  %v3869_v5 = vunpack.c.0.s8 %v7532_v47 }
 0x342   : > { %v3724_v36 = vadd.f32 %v7521_v49, %v3696_v52  ;;  %v3697_v63 = vadd.f32 %v3660_v7, %v3491_v50  ;;  %v3739_v57 = vmax.f32 %v3723_v59, 0.0  ;;  %v3476_v59 = vpop.f32.mrf.mxu0 }
 0x343   : > { %v3662_v35 = vpop.f32.mrf.mxu1  ;;  %v3500_v10 = vadd.f32 %v3476_v59, %v3235_v53 }
 0x344   : > { %v3740_v17 = vmax.f32 %v3724_v36, 0.0  ;;  %v3725_v32 = vadd.f32 %v7517_v12, %v3697_v63  ;;  %v3698_v46 = vadd.f32 %v3662_v35, %v3492_v22  ;;  %v3480_v22 = vpop.f32.mrf.mxu0  ;;  %v3234_v35 = vadd.f32 %v7496_v21, %v7482_v54 }
 0x345   : > { %v3666_v44 = vpop.f32.mrf.mxu1  ;;  %v3498_v21 = vadd.f32 %v3472_v16, %v3233_v30  ;;  %v2973_v16 = vadd.f32 %v7492_v15, %v7460_v27 }
 0x346   : > { %v3755_v18 = vmax.f32 %v3739_v57, %v3740_v17  ;;  %v3726_v23 = vadd.f32 %v7521_v49, %v3698_v46  ;;  %v3699_v1 = vadd.f32 %v3666_v44, %v3493_v4  ;;  %v3741_v55 = vmax.f32 %v3725_v32, 0.0 }
 0x347   : > { %v3668_v58 = vpop.f32.mrf.mxu1  ;;  %v2969_v46 = vadd.f32 %v7488_v60, %v7456_v40  ;;  %v2971_v40 = vadd.f32 %v7490_v28, %v7458_v45  ;;  %v3239_v27 = vadd.f32 %v7513_v9, %v2973_v16 }
 0x348   : > { %v3769_v0 = vrot.slane %v3755_v18, %v6582_v3  ;;  %v3742_v42 = vmax.f32 %v3726_v23, 0.0  ;;  %v3727_v61 = vadd.f32 %v7517_v12, %v3699_v1  ;;  %v3700_v62 = vadd.f32 %v3668_v58, %v3494_v26  ;;  %v3482_v18 = vpop.f32.mrf.mxu0 }
 0x349   : > { %v3670_v14 = vpop.f32.mrf.mxu1  ;;  %v3237_v23 = vadd.f32 %v7504_v24, %v2969_v46  ;;  %v3238_v24 = vadd.f32 %v7507_v39, %v2971_v40 }
 0x34a   : > { %v3756_v13 = vmax.f32 %v3741_v55, %v3742_v42  ;;  %v3728_v29 = vadd.f32 %v7521_v49, %v3700_v62  ;;  %v3827_v38 = vrot.slane %v3769_v0, 4  ;;  %v3701_v52 = vadd.f32 %v3670_v14, %v3495_v2  ;;  %v3484_v33 = vpop.f32.mrf.mxu0 }
 0x34b   : > { %v3672_v50 = vpop.f32.mrf.mxu1  ;;  %v3743_v36 = vmax.f32 %v3727_v61, 0.0  ;;  %v3499_v55 = vadd.f32 %v3474_v6, %v3234_v35  ;;  %v3501_v14 = vadd.f32 %v3480_v22, %v3236_v48  ;;  %v3503_v35 = vadd.f32 %v3484_v33, %v3238_v24 }
 0x34c   : > { %v3776_v7 = vrot.slane %v3756_v13, %v6582_v3  ;;  %v3744_v34 = vmax.f32 %v3728_v29, 0.0  ;;  %v3702_v63 = vadd.f32 %v3672_v50, %v3496_v20  ;;  %v3729_v4 = vadd.f32 %v7517_v12, %v3701_v52 }
 0x34d   : > { %v3676_v57 = vpop.f32.mrf.mxu1  ;;  %v3843_v54 = vmax.f32 %v3769_v0, %v3827_v38  ;;  %v3502_v29 = vadd.f32 %v3482_v18, %v3237_v23  ;;  %v3872_v50 = vsub.s32 %v3869_v5, %v7776_v37 }
 0x34e   : > { %v3828_v56 = vrot.slane %v3776_v7, 4  ;;  %v3757_v17 = vmax.f32 %v3743_v36, %v3744_v34  ;;  %v3730_v8 = vadd.f32 %v7521_v49, %v3702_v63  ;;  %v3703_v32 = vadd.f32 %v3676_v57, %v3497_v19  ;;  %v3486_v63 = vpop.f32.mrf.mxu0 }
 0x34f   : > { %v3678_v44 = vpop.f32.mrf.mxu1  ;;  %v3745_v26 = vmax.f32 %v3729_v4, 0.0 }
 0x350   : > { %v3844_v25 = vmax.f32 %v3776_v7, %v3828_v56  ;;  %v3783_v31 = vrot.slane %v3757_v17, %v6582_v3  ;;  %v3746_v41 = vmax.f32 %v3730_v8, 0.0  ;;  %v3731_v1 = vadd.f32 %v7517_v12, %v3703_v32 }
 0x351   : > { %v3704_v11 = vadd.f32 %v3678_v44, %v3498_v21  ;;  %v3680_v58 = vpop.f32.mrf.mxu1  ;;  %v3504_v56 = vadd.f32 %v3486_v63, %v3239_v27  ;;  %v5274_v63 = vld [vmem:[#allocation6 + $0x38] sm:$0xff]  }
 0x352   : > { %v3859_v51 = vcombine.low %v3843_v54, %v3844_v25  ;;  %v3758_v60 = vmax.f32 %v3745_v26, %v3746_v41  ;;  %v3829_v0 = vrot.slane %v3783_v31, 4  ;;  %v3705_v61 = vadd.f32 %v3680_v58, %v3499_v55 }
 0x353   : > { %v3732_v42 = vadd.f32 %v7521_v49, %v3704_v11  ;;  %v3682_v62 = vpop.f32.mrf.mxu1  ;;  %v3747_v47 = vmax.f32 %v3731_v1, 0.0 }
 0x354   : > { %v3790_v2 = vrot.slane %v3758_v60, %v6582_v3  ;;  %v3706_v6 = vadd.f32 %v3682_v62, %v3500_v10  ;;  %v3733_v28 = vadd.f32 %v7517_v12, %v3705_v61  ;;  %v3845_v30 = vmax.f32 %v3783_v31, %v3829_v0 }
 0x355   : > { %v3748_v45 = vmax.f32 %v3732_v42, 0.0  ;;  %v3686_v13 = vpop.f32.mrf.mxu1  ;;  %v3873_v5 = vrot.slane %v3859_v51, %v3872_v50  ;;  %v5396_v0 = vmov 1983009808  }
 0x356   : > { %v3830_v15 = vrot.slane %v3790_v2, 4  ;;  %v3734_v20 = vadd.f32 %v7521_v49, %v3706_v6  ;;  %v3707_v59 = vadd.f32 %v3686_v13, %v3501_v14  ;;  %v3749_v39 = vmax.f32 %v3733_v28, 0.0 }
 0x357   : > { %v3759_v38 = vmax.f32 %v3747_v47, %v3748_v45  ;;  %v3688_v52 = vpop.f32.mrf.mxu1  ;;  %v3904_v42 = vunpack.c.l.s4 %v5396_v0 }
 0x358   : > { %v3846_v19 = vmax.f32 %v3790_v2, %v3830_v15  ;;  %v3750_v7 = vmax.f32 %v3734_v20, 0.0  ;;  %v3735_v36 = vadd.f32 %v7517_v12, %v3707_v59  ;;  %v3708_v34 = vadd.f32 %v3688_v52, %v3502_v29  ;;  %v5266_v52 = vld [vmem:[#allocation4 + $0x38] sm:$0xff]  }
 0x359   : > { %v3797_v22 = vrot.slane %v3759_v38, %v6582_v3  ;;  %v3690_v9 = vpop.f32.mrf.mxu1  ;;  %v3905_v24 = vunpack.c.0.s8 %v3904_v42 }
 0x35a   : > { %v3860_v53 = vcombine.low %v3845_v30, %v3846_v19  ;;  %v3760_v4 = vmax.f32 %v3749_v39, %v3750_v7  ;;  %v3736_v57 = vadd.f32 %v7521_v49, %v3708_v34  ;;  %v3751_v8 = vmax.f32 %v3735_v36, 0.0  ;;  %v5269_v19 = vld [vmem:[#allocation4 + $0x20] sm:$0xff]   ;;  %v5270_v7 = vld [vmem:[#allocation4 + $0x18] sm:$0xff]   ;;  %v5271_v36 = vld [vmem:[#allocation4 + $0x10] sm:$0xff]  }
 0x35b   : > { %v3831_v17 = vrot.slane %v3797_v22, 4  ;;  %v3709_v32 = vadd.f32 %v3690_v9, %v3503_v35  ;;  %v3692_v46 = vpop.f32.mrf.mxu1  ;;  %v3908_v14 = vsub.s32 %v3905_v24, %v7776_v37  ;;  %v5267_v37 = vld [vmem:[#allocation4 + $0x30] sm:$0xff]   ;;  %v5272_v34 = vld [vmem:[#allocation4 + $0x8] sm:$0xff]   ;;  %v5273_v35 = vld [vmem:[#allocation4] sm:$0xff]  }
 0x35c   : > { %v3804_v48 = vrot.slane %v3760_v4, %v6582_v3  ;;  %v3752_v54 = vmax.f32 %v3736_v57, 0.0  ;;  %v3710_v21 = vadd.f32 %v3692_v46, %v3504_v56  ;;  %v3880_v44 = vrot.slane %v3860_v53, %v3872_v50  ;;  %v5276_v9 = vld [vmem:[#allocation6 + $0x28] sm:$0xff]   ;;  %v5277_v53 = vld [vmem:[#allocation6 + $0x20] sm:$0xff]   ;;  %v5278_v4 = vld [vmem:[#allocation6 + $0x18] sm:$0xff]  }
 0x35d   : > { %v3737_v25 = vadd.f32 %v7517_v12, %v3709_v32  ;;  %v3847_v23 = vmax.f32 %v3797_v22, %v3831_v17  ;;  %v5275_v22 = vld [vmem:[#allocation6 + $0x30] sm:$0xff]  }
 0x35e   : > { %v3832_v31 = vrot.slane %v3804_v48, 4  ;;  %v3761_v26 = vmax.f32 %v3751_v8, %v3752_v54  ;;  %v3738_v41 = vadd.f32 %v7521_v49, %v3710_v21  ;;  %v3899_v18 = vcombine.low %v3873_v5, %v3880_v44  ;;  %v5279_v57 = vld [vmem:[#allocation6 + $0x10] sm:$0xff]   ;;  %v4881_v8 = vld [vmem:[%s7611_s6] ss:$0 sm:$0xff] }
 0x35f   : > { %v3900_v1 = vcombine.high %v3873_v5, %v3880_v44  ;;  %v3753_v58 = vmax.f32 %v3737_v25, 0.0 }
 0x360   : > { %v3848_v11 = vmax.f32 %v3804_v48, %v3832_v31  ;;  %v3811_v55 = vrot.slane %v3761_v26, %v6582_v3  ;;  %v3754_v40 = vmax.f32 %v3738_v41, 0.0  ;;  %v3909_v45 = vrot.slane %v3899_v18, %v3908_v14 }
 0x361   : > { %v3916_v13 = vrot.slane %v3900_v1, %v3908_v14  ;;  %v5281_v1 = vld [vmem:[#allocation6] sm:$0xff]  }
 0x362   : > { %v3861_v51 = vcombine.low %v3847_v23, %v3848_v11  ;;  %v3762_v60 = vmax.f32 %v3753_v58, %v3754_v40  ;;  %v3833_v10 = vrot.slane %v3811_v55, 4  ;;  %v5280_v23 = vld [vmem:[#allocation6 + $0x8] sm:$0xff]   ;;  %v4914_v11 = vld [vmem:[%s7613_s8] ss:$0 sm:$0xff] }
 0x364   : > { %v3818_v16 = vrot.slane %v3762_v60, %v6582_v3  ;;  %v3849_v61 = vmax.f32 %v3811_v55, %v3833_v10  ;;  %v3887_v2 = vrot.slane %v3861_v51, %v3872_v50 }
 0x366   : > { %v3834_v12 = vrot.slane %v3818_v16, 4 }
 0x368   : > { %v3850_v62 = vmax.f32 %v3818_v16, %v3834_v12 }
 0x36a   : > { %v3862_v49 = vcombine.low %v3849_v61, %v3850_v62 }
 0x36c   : > { %v3894_v6 = vrot.slane %v3862_v49, %v3872_v50  ;;  %v5268_v50 = vld [vmem:[#allocation4 + $0x28] sm:$0xff]  }
 0x36e   : > { %v3901_v33 = vcombine.low %v3887_v2, %v3894_v6  ;;  %v3902_v47 = vcombine.high %v3887_v2, %v3894_v6 }
 0x370   : > { %v3923_v28 = vrot.slane %v3901_v33, %v3908_v14  ;;  %v3930_v29 = vrot.slane %v3902_v47, %v3908_v14 }
 0x372   : > { %v3931_v27 = vcombine.low %v3909_v45, %v3923_v28  ;;  %v3932_v15 = vcombine.high %v3909_v45, %v3923_v28  ;;  %v3933_v3 = vcombine.low %v3916_v13, %v3930_v29  ;;  %v3934_v20 = vcombine.high %v3916_v13, %v3930_v29 }
 0x374   : > { %v3939_v59 = vpack.c.bf16 %v3931_v27, %v3931_v27  ;;  %v3940_v30 = vpack.c.bf16 %v3932_v15, %v3932_v15  ;;  %v3941_v38 = vpack.c.bf16 %v3933_v3, %v3933_v3  ;;  %v3942_v39 = vpack.c.bf16 %v3934_v20, %v3934_v20 }
 0x376   : > { %4238 = vmatprep.mubr.bf16.mxu0 %v3940_v30  ;;  %4278 = vmatprep.mubr.bf16.mxu1 %v3942_v39 }
 0x377   : > { %4239 = vmatmul.mubr.bf16.vlgmr.msra.gmra.mxu0 %v3939_v59  ;;  %4279 = vmatmul.mubr.bf16.vlgmr.msra.gmra.mxu1 %v3941_v38 }
 0x378   : > { %4998 = vmatpush3.bf16.msra.mxu0 %v5266_v52  ;;  %5013 = vmatprep.mubr.msk.bf16.mxu0 %vm5397_vm14, %v5394_v43 }
 0x379   : > { %4999 = vmatprep.subr.bf16.mxu0 %v5394_v43  ;;  %5033 = vmatprep.mubr.msk.bf16.mxu1 %vm5397_vm14, %v5394_v43 }
 0x37a   : > { %5018 = vmatpush3.bf16.msra.mxu1 %v5274_v63 }
 0x37b   : > { %5019 = vmatprep.subr.bf16.mxu1 %v5394_v43 }
 0x37c   : > { %5000 = vmatpush3.bf16.msra.mxu0 %v5267_v37 }
 0x37d   : > { %5001 = vmatprep.subr.bf16.mxu0 %v5394_v43 }
 0x37e   : > { %5020 = vmatpush3.bf16.msra.mxu1 %v5275_v22 }
 0x37f   : > { %5021 = vmatprep.subr.bf16.mxu1 %v5394_v43 }
 0x380   : > { %5002 = vmatpush3.bf16.msra.mxu0 %v5268_v50 }
 0x381   : > { %5003 = vmatprep.subr.bf16.mxu0 %v5394_v43 }
 0x382   : > { %5022 = vmatpush3.bf16.msra.mxu1 %v5276_v9 }
 0x383   : > { %5023 = vmatprep.subr.bf16.mxu1 %v5394_v43 }
 0x384   : > { %5004 = vmatpush3.bf16.msra.mxu0 %v5269_v19 }
 0x385   : > { %5005 = vmatprep.subr.bf16.mxu0 %v5394_v43 }
 0x386   : > { %5024 = vmatpush3.bf16.msra.mxu1 %v5277_v53 }
 0x387   : > { %5025 = vmatprep.subr.bf16.mxu1 %v5394_v43 }
 0x388   : > { %5006 = vmatpush3.bf16.msra.mxu0 %v5270_v7 }
 0x389   : > { %5007 = vmatprep.subr.bf16.mxu0 %v5394_v43 }
 0x38a   : > { %5026 = vmatpush3.bf16.msra.mxu1 %v5278_v4 }
 0x38b   : > { %5027 = vmatprep.subr.bf16.mxu1 %v5394_v43 }
 0x38c   : > { %5008 = vmatpush3.bf16.msra.mxu0 %v5271_v36 }
 0x38d   : > { %5009 = vmatprep.subr.bf16.mxu0 %v5394_v43 }
 0x38e   : > { %5028 = vmatpush3.bf16.msra.mxu1 %v5279_v57 }
 0x38f   : > { %5029 = vmatprep.subr.bf16.mxu1 %v5394_v43 }
 0x390   : > { %5010 = vmatpush3.bf16.msra.mxu0 %v5272_v34 }
 0x391   : > { %5011 = vmatprep.subr.bf16.mxu0 %v5394_v43 }
 0x392   : > { %5030 = vmatpush3.bf16.msra.mxu1 %v5280_v23 }
 0x393   : > { %5031 = vmatprep.subr.bf16.mxu1 %v5394_v43  ;;  %v4923_v43 = vld [vmem:[%s7615_s10] ss:$0 sm:$0xff] }
 0x394   : > { %5012 = vmatpush3.bf16.msra.mxu0 %v5273_v35 }
 0x396   : > { %5032 = vmatpush3.bf16.msra.mxu1 %v5281_v1 }
 0x437   : > { %v4951_v56 = vpop.f32.mrf.mxu0  ;;  %v4973_v17 = vpop.f32.mrf.mxu1 }
 0x439   : > { %v4952_v32 = vpop.f32.mrf.mxu0  ;;  %v4974_v46 = vpop.f32.mrf.mxu1 }
 0x43a   : > { %v4953_v5 = vadd.f32 %v4952_v32, %v4951_v56  ;;  %v4975_v44 = vadd.f32 %v4974_v46, %v4973_v17 }
 0x43b   : > { %v4954_v48 = vpop.f32.mrf.mxu0  ;;  %v4976_v54 = vpop.f32.mrf.mxu1 }
 0x43c   : > { %v4241_v21 = vadd.f32 %v4953_v5, %v4881_v8 }
 0x43d   : > { %v4955_v25 = vpop.f32.mrf.mxu0  ;;  %v4977_v31 = vpop.f32.mrf.mxu1 }
 0x43e   : > { %v4281_v26 = vadd.f32 %v4975_v44, %v4241_v21 }
 0x440   : > { %v4286_v41 = vmax.f32 %v4281_v26, 0.0 }
 0x442   : > { %v4287_v18 = vpack.c.bf16 %v4286_v41, %v4286_v41 }
 0x444   : > { %5014 = vmatmul.mubr.bf16.vlgmr.msra.gmra.mxu0 %v4287_v18 }
 0x504   : > { %v4393_v55 = vpop.f32.mrf.mxu0 }
 0x505   : > { %v4394_v58 = vadd.f32 %v4914_v11, %v4393_v55 }
 0x506   : > { %v5015_v40 = vpop.f32.mrf.mxu0 }
 0x507   : > { %v4399_v51 = vmax.f32 %v4394_v58, 0.0 }
 0x508   : > { %v4396_v60 = vpop.f32.mrf.mxu0 }
 0x509   : > { %v4400_v10 = vpack.c.bf16 %v4399_v51, %v4399_v51 }
 0x50a   : > { %v5016_v16 = vpop.f32.mrf.mxu0 }
 0x50b   : > { %5034 = vmatmul.mubr.bf16.vlgmr.msra.gmra.mxu1 %v4400_v10 }
 0x5cb   : > { %v4506_v0 = vpop.f32.mrf.mxu1 }
 0x5cc   : > { %v4507_v42 = vadd.f32 %v4923_v43, %v4506_v0 }
 0x5cd   : > { %v5035_v12 = vpop.f32.mrf.mxu1 }
 0x5ce   : > { %4512 = vst [vmem:[%s433_s20] sm:$0xff] %v4507_v42 }
 0x5cf   : > { %v4509_v61 = vpop.f32.mrf.mxu1 }
 0x5d1   : > { %v5036_v62 = vpop.f32.mrf.mxu1 }
 0x5d2 PF: > { %s23_s17 = sadd.s32 1, %s5385_s17  }
 0x5d3   : > { %p20_p5 = scmp.ge.s32.totalorder %s23_s17, 4  }
 0x5d5   :  { %22 = sbr.rel (!%p20_p5) target bundleno = 2 (0x2), region = 115 }
 0x5da   :  { %4532 = vsyncpa [#allocation3], 1 }
 0x5db   :  { %4534 = vsyncpa [#allocation3 + $0x1], 1 }
 0x5dc   :  { %4535 = vsyncpa [#allocation5], 1 }

</bundles_post_ra>
